<compile_context>
chip_gen: v7x
topology: tpu7x:2x2x1
jax: 0.10.0
libtpu: 0.0.40
codegen_flags: <defaults>
</compile_context>

<pallas_src>
import functools

import jax
import jax.numpy as jnp
from jax.experimental import pallas as pl
from jax.experimental.pallas import tpu as pltpu

EPS_BN = 1e-5
NSAMPLE = 32


def _ceil_to(x, m):
    return ((x + m - 1) // m) * m


def _default_vmem_limit():
    # v5e/v6e: 128 MiB physical -> allow 64 MiB; v7x: 64 MiB physical -> 32 MiB.
    try:
        cap = pltpu.get_tpu_info().vmem_capacity_bytes
    except Exception:
        cap = 128 * 1024 * 1024
    return min(64 * 1024 * 1024, max(32 * 1024 * 1024, cap // 2))


_CP = pltpu.CompilerParams(dimension_semantics=("parallel",),
                           vmem_limit_bytes=_default_vmem_limit())


def _pick_tile(M, tmax, align=8):
    """Row-tile size + padded M. Ensures >=2 grid steps when possible so the
    two TensorCores of v7x both get work (costs ~0.35us on single-TC chips)."""
    TM = min(tmax, _ceil_to(M, align))
    Mp = _ceil_to(M, TM)
    if Mp // TM < 2 and M > align:
        TM = _ceil_to((M + 1) // 2, align)
        Mp = _ceil_to(M, TM)
    return TM, Mp


# ----------------------------------------------------------------------------
# Pallas kernels
# ----------------------------------------------------------------------------
def _mlp_chain_kernel(*refs, n_layers, relus):
    """refs = (x, w1, s1, t1, ..., wn, sn, tn, out); y = relu?((x@W)*s + t) chained.

    x/weights are bf16 (MXU-native); epilogue math stays f32 (v5e VPU has no
    bf16).  Conv bias is pre-folded into the shift t on the host.
    """
    x_ref = refs[0]
    o_ref = refs[-1]
    h = x_ref[...]
    for li in range(n_layers):
        w = refs[1 + 3 * li][...]                 # (Cin, Cout) bf16
        s = refs[2 + 3 * li][...]                 # (1, Cout)   f32
        t = refs[3 + 3 * li][...]                 # (1, Cout)   f32
        h = jnp.dot(h.astype(jnp.bfloat16), w, preferred_element_type=jnp.float32)
        h = h * s + t
        if relus[li]:
            h = jnp.maximum(h, 0.0)
    o_ref[...] = h.astype(o_ref.dtype)


def mlp_chain(x, layers, relus, *, tm=512, out_dtype=jnp.bfloat16):
    """Fused chain of 1x1-conv (+folded BN/bias) (+ReLU).  x:(M,Cin) -> (M,Cout_last)."""
    M, Cin = x.shape
    Cout = layers[-1][0].shape[1]
    x = x.astype(jnp.bfloat16)
    TM, Mp = _pick_tile(M, tm)
    if Mp != M:
        x = jnp.pad(x, ((0, Mp - M), (0, 0)))
    in_specs = [pl.BlockSpec((TM, Cin), lambda i: (i, 0))]
    args = [x]
    for (w, s, t) in layers:
        ci, co = w.shape
        in_specs += [pl.BlockSpec((ci, co), lambda i: (0, 0)),
                     pl.BlockSpec((1, co), lambda i: (0, 0)),
                     pl.BlockSpec((1, co), lambda i: (0, 0))]
        args += [w, s.reshape(1, -1), t.reshape(1, -1)]
    out = pl.pallas_call(
        functools.partial(_mlp_chain_kernel, n_layers=len(layers), relus=tuple(relus)),
        out_shape=jax.ShapeDtypeStruct((Mp, Cout), out_dtype),
        grid=(Mp // TM,),
        in_specs=in_specs,
        out_specs=pl.BlockSpec((TM, Cout), lambda i: (i, 0)),
        compiler_params=_CP,
    )(*args)
    return out[:M] if Mp != M else out


def _linear_kernel(x_ref, w_ref, o_ref):
    o_ref[...] = jnp.dot(x_ref[...], w_ref[...],
                         preferred_element_type=jnp.float32).astype(o_ref.dtype)


def linear(x, w, *, tm=512, out_dtype=jnp.bfloat16):
    """Single fused matmul x:(M,Cin) @ w:(Cin,Cout) -> (M,Cout)."""
    M, Cin = x.shape
    Cout = w.shape[1]
    x = x.astype(jnp.bfloat16)
    TM, Mp = _pick_tile(M, tm)
    if Mp != M:
        x = jnp.pad(x, ((0, Mp - M), (0, 0)))
    out = pl.pallas_call(
        _linear_kernel,
        out_shape=jax.ShapeDtypeStruct((Mp, Cout), out_dtype),
        grid=(Mp // TM,),
        in_specs=[pl.BlockSpec((TM, Cin), lambda i: (i, 0)),
                  pl.BlockSpec((Cin, Cout), lambda i: (0, 0))],
        out_specs=pl.BlockSpec((TM, Cout), lambda i: (i, 0)),
        compiler_params=_CP,
    )(x, w)
    return out[:M] if Mp != M else out


def _dual_chain_kernel(x_ref, *refs, n1, n2, relus1, relus2):
    """Two conv-chains (cla and vote/box heads) sharing one input tile read."""
    o1_ref, o2_ref = refs[-2], refs[-1]
    wrefs = refs[:-2]

    def run(base, n, relus):
        h = x_ref[...]
        for li in range(n):
            w = wrefs[base + 3 * li][...]
            s = wrefs[base + 3 * li + 1][...]
            t = wrefs[base + 3 * li + 2][...]
            h = jnp.dot(h.astype(jnp.bfloat16), w, preferred_element_type=jnp.float32)
            h = h * s + t
            if relus[li]:
                h = jnp.maximum(h, 0.0)
        return h

    o1_ref[...] = run(0, n1, relus1).astype(o1_ref.dtype)
    o2_ref[...] = run(3 * n1, n2, relus2).astype(o2_ref.dtype)


def dual_head_chains(x, layers1, relus1, layers2, relus2, *, tm=512):
    """x:(M,256) -> (cla_pad:(M,128) f32, votebox_pad:(M,128) f32), one HBM read of x."""
    M, Cin = x.shape
    c1 = layers1[-1][0].shape[1]
    c2 = layers2[-1][0].shape[1]
    x = x.astype(jnp.bfloat16)
    TM, Mp = _pick_tile(M, tm)
    if Mp != M:
        x = jnp.pad(x, ((0, Mp - M), (0, 0)))
    in_specs = [pl.BlockSpec((TM, Cin), lambda i: (i, 0))]
    args = [x]
    for (w, s, t) in list(layers1) + list(layers2):
        ci, co = w.shape
        in_specs += [pl.BlockSpec((ci, co), lambda i: (0, 0)),
                     pl.BlockSpec((1, co), lambda i: (0, 0)),
                     pl.BlockSpec((1, co), lambda i: (0, 0))]
        args += [w, s.reshape(1, -1), t.reshape(1, -1)]
    o1, o2 = pl.pallas_call(
        functools.partial(_dual_chain_kernel, n1=len(layers1), n2=len(layers2),
                          relus1=tuple(relus1), relus2=tuple(relus2)),
        out_shape=(jax.ShapeDtypeStruct((Mp, c1), jnp.float32),
                   jax.ShapeDtypeStruct((Mp, c2), jnp.float32)),
        grid=(Mp // TM,),
        in_specs=in_specs,
        out_specs=(pl.BlockSpec((TM, c1), lambda i: (i, 0)),
                   pl.BlockSpec((TM, c2), lambda i: (i, 0))),
        compiler_params=_CP,
    )(*args)
    if Mp != M:
        return o1[:M], o2[:M]
    return o1, o2


def _sa_mlp_kernel(gx_ref, gf_ref, wx1, wf1, s1, t1, w2, s2, t2, w3, s3, t3,
                   o_ref, *, tg, ns):
    # TG neighbourhoods per grid step: feature part goes through the MXU with
    # K exactly Cfeat; the 3 relative-xyz channels are added as VPU FMAs.
    cf = gf_ref.shape[-1]
    feat = gf_ref[...].reshape(tg * ns, cf)                         # bf16
    gx = gx_ref[...].reshape(tg * ns, 3).astype(jnp.float32)
    wx = wx1[...]                                                   # (3, C1) f32
    h = jnp.dot(feat, wf1[...], preferred_element_type=jnp.float32)
    h = (h + gx[:, 0:1] * wx[0:1, :]
           + gx[:, 1:2] * wx[1:2, :]
           + gx[:, 2:3] * wx[2:3, :])
    h = jnp.maximum(h * s1[...] + t1[...], 0.0)
    h = jnp.dot(h.astype(jnp.bfloat16), w2[...], preferred_element_type=jnp.float32)
    h = jnp.maximum(h * s2[...] + t2[...], 0.0)
    h = jnp.dot(h.astype(jnp.bfloat16), w3[...], preferred_element_type=jnp.float32)
    h = jnp.maximum(h * s3[...] + t3[...], 0.0)
    cout = h.shape[-1]
    o_ref[...] = jnp.max(h.reshape(tg, ns, cout), axis=1).astype(o_ref.dtype)


def sa_mlp_max(gxyz, gfeat, layers, *, tg=32):
    """(M,ns,3)+(M,ns,Cf) -> (M,Cout) via 3x(1x1conv+BN+ReLU) + max over neighbours."""
    M, ns, _ = gxyz.shape
    cf = gfeat.shape[-1]
    (wx1, wf1, s1, t1), (w2, s2, t2), (w3, s3, t3) = layers
    c1 = wf1.shape[1]
    Cout = w3.shape[1]
    gxyz = gxyz.astype(jnp.bfloat16)
    gfeat = gfeat.astype(jnp.bfloat16)
    TG, Mp = _pick_tile(M, tg)
    if Mp != M:
        gxyz = jnp.pad(gxyz, ((0, Mp - M), (0, 0), (0, 0)))
        gfeat = jnp.pad(gfeat, ((0, Mp - M), (0, 0), (0, 0)))
    wspec = lambda shape: pl.BlockSpec(shape, lambda i: (0, 0))
    out = pl.pallas_call(
        functools.partial(_sa_mlp_kernel, tg=TG, ns=ns),
        out_shape=jax.ShapeDtypeStruct((Mp, Cout), jnp.bfloat16),
        grid=(Mp // TG,),
        in_specs=[
            pl.BlockSpec((TG, ns, 3), lambda i: (i, 0, 0)),
            pl.BlockSpec((TG, ns, cf), lambda i: (i, 0, 0)),
            wspec(wx1.shape), wspec(wf1.shape), wspec((1, c1)), wspec((1, c1)),
            wspec(w2.shape), wspec((1, w2.shape[1])), wspec((1, w2.shape[1])),
            wspec(w3.shape), wspec((1, w3.shape[1])), wspec((1, w3.shape[1])),
        ],
        out_specs=pl.BlockSpec((TG, Cout), lambda i: (i, 0)),
        compiler_params=_CP,
    )(gxyz, gfeat,
      wx1, wf1, s1.reshape(1, -1), t1.reshape(1, -1),
      w2, s2.reshape(1, -1), t2.reshape(1, -1),
      w3, s3.reshape(1, -1), t3.reshape(1, -1))
    return out[:M] if Mp != M else out


def _attn_core_kernel(q_ref, k_ref, v_ref, r_ref, o_ref):
    # pre-projected single-head cosine attention + residual add + InstanceNorm,
    # one batch per grid step; q/k/v arrive bf16, stats/epilogue in f32.
    q = q_ref[0].astype(jnp.float32)
    k = k_ref[0].astype(jnp.float32)
    qn = (q * jax.lax.rsqrt(jnp.sum(q * q, axis=-1, keepdims=True) + 1e-12)
          ).astype(jnp.bfloat16)
    kn = (k * jax.lax.rsqrt(jnp.sum(k * k, axis=-1, keepdims=True) + 1e-12)
          ).astype(jnp.bfloat16)
    s = jax.lax.dot_general(qn, kn, (((1,), (1,)), ((), ())),
                            preferred_element_type=jnp.float32)       # (Nq,Nk)
    s = s - jnp.max(s, axis=-1, keepdims=True)
    e = jnp.exp(s)
    a = (e * pl.reciprocal(jnp.sum(e, axis=-1, keepdims=True), approx=True)
         ).astype(jnp.bfloat16)
    attn = jnp.dot(a, v_ref[0], preferred_element_type=jnp.float32)   # (Nq,C)
    x = r_ref[0].astype(jnp.float32) + attn                           # residual
    m = jnp.mean(x, axis=0, keepdims=True)                            # per-channel
    var = jnp.mean((x - m) ** 2, axis=0, keepdims=True)
    o_ref[0] = ((x - m) * jax.lax.rsqrt(var + 1e-5)).astype(o_ref.dtype)


def attention_core(q, k, v, resid, *, out_dtype=jnp.bfloat16):
    """out = InstanceNorm(resid + CosineAttention(q,k,v)); one batch per grid step."""
    B, Nq, Dk = q.shape
    Nk, C = k.shape[1], v.shape[2]
    q = q.astype(jnp.bfloat16)
    k = k.astype(jnp.bfloat16)
    v = v.astype(jnp.bfloat16)
    return pl.pallas_call(
        _attn_core_kernel,
        out_shape=jax.ShapeDtypeStruct((B, Nq, C), out_dtype),
        grid=(B,),
        in_specs=[
            pl.BlockSpec((1, Nq, Dk), lambda b: (b, 0, 0)),
            pl.BlockSpec((1, Nk, Dk), lambda b: (b, 0, 0)),
            pl.BlockSpec((1, Nk, C), lambda b: (b, 0, 0)),
            pl.BlockSpec((1, Nq, C), lambda b: (b, 0, 0)),
        ],
        out_specs=pl.BlockSpec((1, Nq, C), lambda b: (b, 0, 0)),
        compiler_params=_CP,
    )(q, k, v, resid)


# ----------------------------------------------------------------------------
# JAX glue: parameters, sampling/grouping, backbone, transformer, heads
# ----------------------------------------------------------------------------
def _conv_bn_layer(key, cin, cout, bn=True, gamma_uniform=False, pad_to=None):
    kw, kg = jax.random.split(key)
    w = jax.random.normal(kw, (cin, cout), jnp.float32) * jnp.sqrt(2.0 / cin)
    b = jnp.zeros((cout,), jnp.float32)
    if bn:
        # TODO(synk): BatchNorm uses eval-mode running stats (mean=0, var=1) folded
        # into a scale/shift, not training-mode batch statistics.
        gamma = (jax.random.uniform(kg, (cout,), jnp.float32) if gamma_uniform
                 else jnp.ones((cout,), jnp.float32))
        scale = gamma / jnp.sqrt(1.0 + EPS_BN)
        shift = jnp.zeros((cout,), jnp.float32)
    else:
        scale = jnp.ones((cout,), jnp.float32)
        shift = jnp.zeros((cout,), jnp.float32)
    shift = b * scale + shift                     # fold conv bias into the shift
    if pad_to is not None and cout < pad_to:      # lane-dense output padding
        w = jnp.pad(w, ((0, 0), (0, pad_to - cout)))
        scale = jnp.pad(scale, (0, pad_to - cout), constant_values=1.0)
        shift = jnp.pad(shift, (0, pad_to - cout))
    return (w.astype(jnp.bfloat16), scale, shift)


def init_params(key):
    keys = jax.random.split(key, 64)
    ki = iter(keys)
    p = {}
    # backbone SA modules; use_xyz=True adds 3 input channels to each SharedMLP
    sa_channels = [(3 + 3, [64, 64, 128]),
                   (128 + 3, [128, 128, 256]),
                   (256 + 3, [256, 256, 256])]
    p['sa'] = []
    for cin, mlps in sa_channels:
        layers, c = [], cin
        for j, cout in enumerate(mlps):
            w, s, t = _conv_bn_layer(next(ki), c, cout, bn=True)
            if j == 0:
                # split first layer: xyz part (3ch, f32, VPU FMAs) + feature part
                # (exact-K MXU matmul).
                layers.append((w[:3].astype(jnp.float32), w[3:], s, t))
            else:
                layers.append((w, s, t))
            c = cout
        p['sa'].append(layers)
    p['cov_final'] = [_conv_bn_layer(next(ki), 640, 256, bn=False)]
    for name in ('enc_pos', 'dec_pos'):           # PositionEmbeddingLearned
        p[name] = [_conv_bn_layer(next(ki), 3, 256, bn=True, gamma_uniform=True),
                   _conv_bn_layer(next(ki), 256, 256, bn=False)]

    def attn_params(k):
        k1, k2, k3 = jax.random.split(k, 3)
        wq = (jax.random.normal(k1, (256, 128), jnp.float32) * 0.05).astype(jnp.bfloat16)
        wk = (jax.random.normal(k2, (256, 128), jnp.float32) * 0.05).astype(jnp.bfloat16)
        wv = (jax.random.normal(k3, (256, 256), jnp.float32) * 0.05).astype(jnp.bfloat16)
        return {'wq': wq,
                'wkv': jnp.concatenate([wk, wv], axis=1),            # (256, 384)
                'wqkv': jnp.concatenate([wq, wk, wv], axis=1)}       # (256, 512)

    p['enc_attn'] = attn_params(next(ki))
    p['dec_self_attn'] = attn_params(next(ki))
    p['dec_cross_attn'] = attn_params(next(ki))
    p['fea'] = [_conv_bn_layer(next(ki), 256, 256, bn=True),
                _conv_bn_layer(next(ki), 256, 256, bn=False)]
    # cla head: 256->256->256->1 ; final layer padded to 128 output lanes
    p['cla'] = [_conv_bn_layer(next(ki), 256, 256, bn=True),
                _conv_bn_layer(next(ki), 256, 256, bn=True),
                _conv_bn_layer(next(ki), 256, 1, bn=False, pad_to=128)]
    # vote (2 layers) + fused box heads (xy2 + z1 + angle1 + centerness1 = 5 cols)
    p['votebox'] = [_conv_bn_layer(next(ki), 256, 256, bn=True),
                    _conv_bn_layer(next(ki), 256, 256, bn=True),
                    _conv_bn_layer(next(ki), 256, 5, bn=False, pad_to=128)]
    return p


def ball_query(xyz, new_xyz, radius, nsample):
    """xyz:(B,N,3) new_xyz:(B,S,3) -> (B,S,nsample) neighbour indices within radius."""
    B, N, _ = xyz.shape
    d2 = jnp.sum((new_xyz[:, :, None, :] - xyz[:, None, :, :]) ** 2, axis=-1)
    mask = d2 < radius * radius
    ar = jnp.arange(N, dtype=jnp.int32)
    key = jnp.where(mask, ar, N + ar)                       # in-radius indices first
    k = min(nsample, N)
    _, idx_k = jax.lax.top_k(-key, k)                       # k smallest keys
    cols = jnp.arange(nsample, dtype=jnp.int32) % k
    idx = idx_k[..., cols]
    valid = jnp.take_along_axis(mask, idx, axis=-1)
    idx = jnp.where(valid, idx, idx[..., :1])               # pad with first hit (=query pt)
    return idx.astype(jnp.int32)


def sa_module(xyz, feat, npoint, radius, layers):
    B, N, _ = xyz.shape
    # TODO(synk): furthest-point / feature-similarity / keep_first_half sampling is a
    # data-dependent CUDA op; replaced by deterministic first-npoint indices.
    idx = jnp.broadcast_to(jnp.arange(npoint, dtype=jnp.int32), (B, npoint))
    new_xyz = xyz[:, :npoint]
    gidx = ball_query(xyz, new_xyz, radius, NSAMPLE)        # (B,npoint,ns)
    bix = jnp.arange(B)[:, None, None]
    grouped_xyz = xyz[bix, gidx] - new_xyz[:, :, None, :]   # relative coords
    if feat is not None:
        grouped_feat = feat[bix, gidx]
    else:
        grouped_feat = jnp.zeros(grouped_xyz.shape[:-1] + (layers[0][1].shape[0],),
                                 jnp.bfloat16)
    # TODO(synk): the neighbourhood gather still materializes in HBM; a scalar-prefetch
    # + manual-DMA fused gather would remove this round-trip.
    gx = grouped_xyz.reshape(B * npoint, NSAMPLE, 3)
    gf = grouped_feat.reshape(B * npoint, NSAMPLE, grouped_feat.shape[-1])
    new_feat = sa_mlp_max(gx, gf, layers).reshape(B, npoint, -1)
    return new_xyz, new_feat, idx


def backbone(pc, numpoints, params):
    xyz = pc[..., 0:3]
    feat = pc[..., 3:] if pc.shape[-1] > 3 else None
    radii = (0.3, 0.5, 0.7)
    l_xyz, l_feat, idxs = [xyz], [feat], []
    for i in range(3):
        nx, nf, idx = sa_module(l_xyz[i], l_feat[i], numpoints[i], radii[i],
                                params['sa'][i])
        l_xyz.append(nx); l_feat.append(nf); idxs.append(idx)
    B, n3, _ = l_feat[3].shape
    layer3_f = l_feat[3]                                                    # (B,n3,256)
    layer2_f = jnp.take_along_axis(l_feat[2], idxs[2][..., None], axis=1)   # (B,n3,256)
    layer2_i = jnp.take_along_axis(idxs[1], idxs[2], axis=1)
    layer1_f = jnp.take_along_axis(l_feat[1], layer2_i[..., None], axis=1)  # (B,n3,128)
    final_f = jnp.concatenate([layer3_f, layer2_f, layer1_f], axis=-1)      # (B,n3,640) bf16
    feature = mlp_chain(final_f.reshape(B * n3, 640), params['cov_final'],
                        relus=(False,), out_dtype=jnp.bfloat16).reshape(B, n3, 256)
    return {'xyz': l_xyz[-1], 'feature': feature, 'idxs': idxs,
            'xyzs': l_xyz, 'features': l_feat}


def pos_embed(xyz, layers):
    B, N, _ = xyz.shape
    h = mlp_chain(xyz.reshape(B * N, 3), layers, relus=(True, False),
                  out_dtype=jnp.bfloat16)
    return h.reshape(B, N, 256)


def transform_fuse(search_feat, search_xyz, template_feat, template_xyz, params):
    # TODO(synk): MultiheadAttention / TransformerEncoder / TransformerDecoder internals
    # are not given in the reference; a standard 1-layer cosine-attention variant with
    # residual + InstanceNorm (fused into the attention epilogue) is implemented here.
    B, Nt, C = template_feat.shape
    Ns = search_feat.shape[1]
    Dk = 128

    # ---- encoder: self-attention over template (fused q|k|v projection) ----
    pe_t = pos_embed(template_xyz, params['enc_pos'])
    qkv = linear((template_feat + pe_t).reshape(B * Nt, C),
                 params['enc_attn']['wqkv']).reshape(B, Nt, 2 * Dk + C)
    memory = attention_core(qkv[..., :Dk], qkv[..., Dk:2 * Dk], qkv[..., 2 * Dk:],
                            template_feat)

    # ---- decoder: self-attention over search ----
    pe_s = pos_embed(search_xyz, params['dec_pos'])
    qkv = linear((search_feat + pe_s).reshape(B * Ns, C),
                 params['dec_self_attn']['wqkv']).reshape(B, Ns, 2 * Dk + C)
    tgt = attention_core(qkv[..., :Dk], qkv[..., Dk:2 * Dk], qkv[..., 2 * Dk:],
                         search_feat)

    # ---- decoder: cross-attention search -> template memory ----
    q = linear((tgt + pe_s).reshape(B * Ns, C),
               params['dec_cross_attn']['wq']).reshape(B, Ns, Dk)
    kv = linear(memory.reshape(B * Nt, C),
                params['dec_cross_attn']['wkv']).reshape(B, Nt, Dk + C)
    tgt = attention_core(q, kv[..., :Dk], kv[..., Dk:], tgt)

    h = mlp_chain(tgt.reshape(B * Ns, C), params['fea'], relus=(True, False),
                  out_dtype=jnp.bfloat16)
    return h.reshape(B, Ns, C)


def forward(input_dict, params, input_size):
    template = input_dict['template']
    search = input_dict['search']
    t_out = backbone(template, [input_size // 4, input_size // 8, input_size // 16], params)
    s_out = backbone(search, [input_size // 2, input_size // 4, input_size // 8], params)
    # ('cls_label' branch omitted: label not present in the synthetic input_dict)

    fusion = transform_fuse(s_out['feature'], s_out['xyz'],
                            t_out['feature'], t_out['xyz'], params)
    B, Ns, C = fusion.shape
    f2 = fusion.reshape(B * Ns, C)

    # fused cla (3 layers, 256->1 padded to 128 lanes) + vote/box (256->5 padded)
    # chains sharing one read of f2.
    cla_pad, vb_pad = dual_head_chains(f2, params['cla'], (True, True, False),
                                       params['votebox'], (True, True, False))
    cla = cla_pad[:, 0].reshape(B, Ns)
    heads = vb_pad[:, :5].reshape(B, Ns, 5)
    boxes = heads[..., :4]               # cat(boxes_xy, boxes_z, boxes_angle) on channels
    centerness = heads[..., 4:5]
    offset = boxes[..., :3]                                   # (B,Ns,3) == transpose(1,2)
    angles_scores = jnp.concatenate([boxes[..., 3:4], centerness], axis=-1)   # (B,Ns,2)

    return {'classification_scores': cla,
            'offsets': offset,
            'angles_scores': angles_scores,
            'center_xyz': jax.lax.stop_gradient(offset),
            'search_xyz': s_out['xyz'],
            'search_points': search}


if __name__ == "__main__":
    key = jax.random.PRNGKey(0)
    k_t, k_s, k_p = jax.random.split(key, 3)
    B = 2
    input_size = 64                       # original model: 1024 (template 512, search 1024)
    # points are (x, y, z, feat0, feat1, feat2) to match input_channels=3 + use_xyz=True
    template = jax.random.normal(k_t, (B, input_size // 2, 6), jnp.float32)
    search = jax.random.normal(k_s, (B, input_size, 6), jnp.float32)
    params = init_params(k_p)

    out = forward({'template': template, 'search': search}, params, input_size)
    out = jax.block_until_ready(out)

    n_out = input_size // 8
    assert out['classification_scores'].shape == (B, n_out)
    assert out['offsets'].shape == (B, n_out, 3)
    assert out['angles_scores'].shape == (B, n_out, 2)
    assert out['search_xyz'].shape == (B, n_out, 3)
    print("KERNEL_OK")
</pallas_src>

<mosaic_0001>
module attributes {stable_mosaic.version = 11 : i64} {
  func.func @_sa_mlp_kernel(%arg0: i32, %arg1: memref<16x32x3xbf16, #tpu.memory_space<vmem>>, %arg2: memref<16x32x3xbf16, #tpu.memory_space<vmem>>, %arg3: memref<3x64xf32, #tpu.memory_space<vmem>>, %arg4: memref<3x64xbf16, #tpu.memory_space<vmem>>, %arg5: memref<1x64xf32, #tpu.memory_space<vmem>>, %arg6: memref<1x64xf32, #tpu.memory_space<vmem>>, %arg7: memref<64x64xbf16, #tpu.memory_space<vmem>>, %arg8: memref<1x64xf32, #tpu.memory_space<vmem>>, %arg9: memref<1x64xf32, #tpu.memory_space<vmem>>, %arg10: memref<64x128xbf16, #tpu.memory_space<vmem>>, %arg11: memref<1x128xf32, #tpu.memory_space<vmem>>, %arg12: memref<1x128xf32, #tpu.memory_space<vmem>>, %arg13: memref<16x128xbf16, #tpu.memory_space<vmem>>) attributes {dimension_semantics = [#tpu.dimension_semantics<parallel>], iteration_bounds = array<i64: 2>, scalar_prefetch = 0 : i64, scratch_operands = 0 : i64, tpu.core_type = #tpu.core_type<tc>, window_params = [{transform_indices = @transform_0, window_bounds = array<i64: 16, 32, 3>}, {transform_indices = @transform_1, window_bounds = array<i64: 16, 32, 3>}, {pipeline_mode = #tpu.pipeline_mode<synchronous>, transform_indices = @transform_2, window_bounds = array<i64: 3, 64>}, {pipeline_mode = #tpu.pipeline_mode<synchronous>, transform_indices = @transform_3, window_bounds = array<i64: 3, 64>}, {pipeline_mode = #tpu.pipeline_mode<synchronous>, transform_indices = @transform_4, window_bounds = array<i64: 1, 64>}, {pipeline_mode = #tpu.pipeline_mode<synchronous>, transform_indices = @transform_5, window_bounds = array<i64: 1, 64>}, {pipeline_mode = #tpu.pipeline_mode<synchronous>, transform_indices = @transform_6, window_bounds = array<i64: 64, 64>}, {pipeline_mode = #tpu.pipeline_mode<synchronous>, transform_indices = @transform_7, window_bounds = array<i64: 1, 64>}, {pipeline_mode = #tpu.pipeline_mode<synchronous>, transform_indices = @transform_8, window_bounds = array<i64: 1, 64>}, {pipeline_mode = #tpu.pipeline_mode<synchronous>, transform_indices = @transform_9, window_bounds = array<i64: 64, 128>}, {pipeline_mode = #tpu.pipeline_mode<synchronous>, transform_indices = @transform_10, window_bounds = array<i64: 1, 128>}, {pipeline_mode = #tpu.pipeline_mode<synchronous>, transform_indices = @transform_11, window_bounds = array<i64: 1, 128>}, {transform_indices = @transform_12, window_bounds = array<i64: 16, 128>}]} {
    %c0 = arith.constant 0 : index
    %c0_0 = arith.constant 0 : index
    %c0_1 = arith.constant 0 : index
    %0 = vector.load %arg2[%c0, %c0_0, %c0_1] : memref<16x32x3xbf16, #tpu.memory_space<vmem>>, vector<16x32x3xbf16>
    %1 = vector.shape_cast %0 : vector<16x32x3xbf16> to vector<512x3xbf16>
    %c0_2 = arith.constant 0 : index
    %c0_3 = arith.constant 0 : index
    %c0_4 = arith.constant 0 : index
    %2 = vector.load %arg1[%c0_2, %c0_3, %c0_4] : memref<16x32x3xbf16, #tpu.memory_space<vmem>>, vector<16x32x3xbf16>
    %3 = vector.shape_cast %2 : vector<16x32x3xbf16> to vector<512x3xbf16>
    %4 = arith.extf %3 : vector<512x3xbf16> to vector<512x3xf32>
    %c0_5 = arith.constant 0 : index
    %c0_6 = arith.constant 0 : index
    %5 = vector.load %arg3[%c0_5, %c0_6] : memref<3x64xf32, #tpu.memory_space<vmem>>, vector<3x64xf32>
    %c0_7 = arith.constant 0 : index
    %c0_8 = arith.constant 0 : index
    %6 = vector.load %arg4[%c0_7, %c0_8] : memref<3x64xbf16, #tpu.memory_space<vmem>>, vector<3x64xbf16>
    %cst = arith.constant dense<0.000000e+00> : vector<512x64xf32>
    %7 = tpu.matmul %1, %6, %cst {dimension_numbers = #tpu.dot_dimension_numbers<[1], [0], [0], [1], [0, 0, 1, 1], [], []>} : vector<512x3xbf16>, vector<3x64xbf16>, vector<512x64xf32> -> vector<512x64xf32>
    %8 = vector.extract_strided_slice %4 {offsets = [0, 0], sizes = [512, 1], strides = [1, 1]} : vector<512x3xf32> to vector<512x1xf32>
    %9 = vector.extract_strided_slice %5 {offsets = [0, 0], sizes = [1, 64], strides = [1, 1]} : vector<3x64xf32> to vector<1x64xf32>
    %10 = vector.broadcast %8 : vector<512x1xf32> to vector<512x64xf32>
    %11 = vector.broadcast %9 : vector<1x64xf32> to vector<512x64xf32>
    %12 = arith.mulf %10, %11 : vector<512x64xf32>
    %13 = arith.addf %7, %12 : vector<512x64xf32>
    %14 = vector.extract_strided_slice %4 {offsets = [0, 1], sizes = [512, 1], strides = [1, 1]} : vector<512x3xf32> to vector<512x1xf32>
    %15 = vector.extract_strided_slice %5 {offsets = [1, 0], sizes = [1, 64], strides = [1, 1]} : vector<3x64xf32> to vector<1x64xf32>
    %16 = vector.broadcast %14 : vector<512x1xf32> to vector<512x64xf32>
    %17 = vector.broadcast %15 : vector<1x64xf32> to vector<512x64xf32>
    %18 = arith.mulf %16, %17 : vector<512x64xf32>
    %19 = arith.addf %13, %18 : vector<512x64xf32>
    %20 = vector.extract_strided_slice %4 {offsets = [0, 2], sizes = [512, 1], strides = [1, 1]} : vector<512x3xf32> to vector<512x1xf32>
    %21 = vector.extract_strided_slice %5 {offsets = [2, 0], sizes = [1, 64], strides = [1, 1]} : vector<3x64xf32> to vector<1x64xf32>
    %22 = vector.broadcast %20 : vector<512x1xf32> to vector<512x64xf32>
    %23 = vector.broadcast %21 : vector<1x64xf32> to vector<512x64xf32>
    %24 = arith.mulf %22, %23 : vector<512x64xf32>
    %25 = arith.addf %19, %24 : vector<512x64xf32>
    %c0_9 = arith.constant 0 : index
    %c0_10 = arith.constant 0 : index
    %26 = vector.load %arg5[%c0_9, %c0_10] : memref<1x64xf32, #tpu.memory_space<vmem>>, vector<1x64xf32>
    %27 = vector.broadcast %26 : vector<1x64xf32> to vector<512x64xf32>
    %28 = arith.mulf %25, %27 : vector<512x64xf32>
    %c0_11 = arith.constant 0 : index
    %c0_12 = arith.constant 0 : index
    %29 = vector.load %arg6[%c0_11, %c0_12] : memref<1x64xf32, #tpu.memory_space<vmem>>, vector<1x64xf32>
    %30 = vector.broadcast %29 : vector<1x64xf32> to vector<512x64xf32>
    %31 = arith.addf %28, %30 : vector<512x64xf32>
    %cst_13 = arith.constant 0.000000e+00 : f32
    %32 = vector.broadcast %cst_13 : f32 to vector<512x64xf32>
    %33 = arith.maximumf %31, %32 : vector<512x64xf32>
    %34 = arith.truncf %33 : vector<512x64xf32> to vector<512x64xbf16>
    %c0_14 = arith.constant 0 : index
    %c0_15 = arith.constant 0 : index
    %35 = vector.load %arg7[%c0_14, %c0_15] : memref<64x64xbf16, #tpu.memory_space<vmem>>, vector<64x64xbf16>
    %cst_16 = arith.constant dense<0.000000e+00> : vector<512x64xf32>
    %36 = tpu.matmul %34, %35, %cst_16 {dimension_numbers = #tpu.dot_dimension_numbers<[1], [0], [0], [1], [0, 0, 1, 1], [], []>} : vector<512x64xbf16>, vector<64x64xbf16>, vector<512x64xf32> -> vector<512x64xf32>
    %c0_17 = arith.constant 0 : index
    %c0_18 = arith.constant 0 : index
    %37 = vector.load %arg8[%c0_17, %c0_18] : memref<1x64xf32, #tpu.memory_space<vmem>>, vector<1x64xf32>
    %38 = vector.broadcast %37 : vector<1x64xf32> to vector<512x64xf32>
    %39 = arith.mulf %36, %38 : vector<512x64xf32>
    %c0_19 = arith.constant 0 : index
    %c0_20 = arith.constant 0 : index
    %40 = vector.load %arg9[%c0_19, %c0_20] : memref<1x64xf32, #tpu.memory_space<vmem>>, vector<1x64xf32>
    %41 = vector.broadcast %40 : vector<1x64xf32> to vector<512x64xf32>
    %42 = arith.addf %39, %41 : vector<512x64xf32>
    %cst_21 = arith.constant 0.000000e+00 : f32
    %43 = vector.broadcast %cst_21 : f32 to vector<512x64xf32>
    %44 = arith.maximumf %42, %43 : vector<512x64xf32>
    %45 = arith.truncf %44 : vector<512x64xf32> to vector<512x64xbf16>
    %c0_22 = arith.constant 0 : index
    %c0_23 = arith.constant 0 : index
    %46 = vector.load %arg10[%c0_22, %c0_23] : memref<64x128xbf16, #tpu.memory_space<vmem>>, vector<64x128xbf16>
    %cst_24 = arith.constant dense<0.000000e+00> : vector<512x128xf32>
    %47 = tpu.matmul %45, %46, %cst_24 {dimension_numbers = #tpu.dot_dimension_numbers<[1], [0], [0], [1], [0, 0, 1, 1], [], []>} : vector<512x64xbf16>, vector<64x128xbf16>, vector<512x128xf32> -> vector<512x128xf32>
    %c0_25 = arith.constant 0 : index
    %c0_26 = arith.constant 0 : index
    %48 = vector.load %arg11[%c0_25, %c0_26] : memref<1x128xf32, #tpu.memory_space<vmem>>, vector<1x128xf32>
    %49 = vector.broadcast %48 : vector<1x128xf32> to vector<512x128xf32>
    %50 = arith.mulf %47, %49 : vector<512x128xf32>
    %c0_27 = arith.constant 0 : index
    %c0_28 = arith.constant 0 : index
    %51 = vector.load %arg12[%c0_27, %c0_28] : memref<1x128xf32, #tpu.memory_space<vmem>>, vector<1x128xf32>
    %52 = vector.broadcast %51 : vector<1x128xf32> to vector<512x128xf32>
    %53 = arith.addf %50, %52 : vector<512x128xf32>
    %cst_29 = arith.constant 0.000000e+00 : f32
    %54 = vector.broadcast %cst_29 : f32 to vector<512x128xf32>
    %55 = arith.maximumf %53, %54 : vector<512x128xf32>
    %56 = vector.shape_cast %55 : vector<512x128xf32> to vector<16x32x128xf32>
    %cst_30 = arith.constant dense<0xFF800000> : vector<16x128xf32>
    %57 = vector.multi_reduction <maximumf>, %56, %cst_30 [1] : vector<16x32x128xf32> to vector<16x128xf32>
    %58 = arith.truncf %57 : vector<16x128xf32> to vector<16x128xbf16>
    %c0_31 = arith.constant 0 : index
    %c0_32 = arith.constant 0 : index
    %59 = vector.load %arg13[%c0_31, %c0_32] : memref<16x128xbf16, #tpu.memory_space<vmem>>, vector<16x128xbf16>
    tpu.vector_store %arg13[%c0_31, %c0_32], %58 {strides = array<i32>} : memref<16x128xbf16, #tpu.memory_space<vmem>>, vector<16x128xbf16>,
    return
  }
  func.func @transform_0(%arg0: i32) -> (i32, i32, i32) {
    %c0_i32 = arith.constant 0 : i32
    %c0_i32_0 = arith.constant 0 : i32
    %c0_i32_1 = arith.constant 0 : i32
    return %arg0, %c0_i32, %c0_i32_0 : i32, i32, i32
  }
  func.func @transform_1(%arg0: i32) -> (i32, i32, i32) {
    %c0_i32 = arith.constant 0 : i32
    %c0_i32_0 = arith.constant 0 : i32
    %c0_i32_1 = arith.constant 0 : i32
    return %arg0, %c0_i32, %c0_i32_0 : i32, i32, i32
  }
  func.func @transform_2(%arg0: i32) -> (i32, i32) {
    %c0_i32 = arith.constant 0 : i32
    %c0_i32_0 = arith.constant 0 : i32
    %c0_i32_1 = arith.constant 0 : i32
    return %c0_i32, %c0_i32_0 : i32, i32
  }
  func.func @transform_3(%arg0: i32) -> (i32, i32) {
    %c0_i32 = arith.constant 0 : i32
    %c0_i32_0 = arith.constant 0 : i32
    %c0_i32_1 = arith.constant 0 : i32
    return %c0_i32, %c0_i32_0 : i32, i32
  }
  func.func @transform_4(%arg0: i32) -> (i32, i32) {
    %c0_i32 = arith.constant 0 : i32
    %c0_i32_0 = arith.constant 0 : i32
    %c0_i32_1 = arith.constant 0 : i32
    return %c0_i32, %c0_i32_0 : i32, i32
  }
  func.func @transform_5(%arg0: i32) -> (i32, i32) {
    %c0_i32 = arith.constant 0 : i32
    %c0_i32_0 = arith.constant 0 : i32
    %c0_i32_1 = arith.constant 0 : i32
    return %c0_i32, %c0_i32_0 : i32, i32
  }
  func.func @transform_6(%arg0: i32) -> (i32, i32) {
    %c0_i32 = arith.constant 0 : i32
    %c0_i32_0 = arith.constant 0 : i32
    %c0_i32_1 = arith.constant 0 : i32
    return %c0_i32, %c0_i32_0 : i32, i32
  }
  func.func @transform_7(%arg0: i32) -> (i32, i32) {
    %c0_i32 = arith.constant 0 : i32
    %c0_i32_0 = arith.constant 0 : i32
    %c0_i32_1 = arith.constant 0 : i32
    return %c0_i32, %c0_i32_0 : i32, i32
  }
  func.func @transform_8(%arg0: i32) -> (i32, i32) {
    %c0_i32 = arith.constant 0 : i32
    %c0_i32_0 = arith.constant 0 : i32
    %c0_i32_1 = arith.constant 0 : i32
    return %c0_i32, %c0_i32_0 : i32, i32
  }
  func.func @transform_9(%arg0: i32) -> (i32, i32) {
    %c0_i32 = arith.constant 0 : i32
    %c0_i32_0 = arith.constant 0 : i32
    %c0_i32_1 = arith.constant 0 : i32
    return %c0_i32, %c0_i32_0 : i32, i32
  }
  func.func @transform_10(%arg0: i32) -> (i32, i32) {
    %c0_i32 = arith.constant 0 : i32
    %c0_i32_0 = arith.constant 0 : i32
    %c0_i32_1 = arith.constant 0 : i32
    return %c0_i32, %c0_i32_0 : i32, i32
  }
  func.func @transform_11(%arg0: i32) -> (i32, i32) {
    %c0_i32 = arith.constant 0 : i32
    %c0_i32_0 = arith.constant 0 : i32
    %c0_i32_1 = arith.constant 0 : i32
    return %c0_i32, %c0_i32_0 : i32, i32
  }
  func.func @transform_12(%arg0: i32) -> (i32, i32) {
    %c0_i32 = arith.constant 0 : i32
    %c0_i32_0 = arith.constant 0 : i32
    return %arg0, %c0_i32 : i32, i32
  }
}

</mosaic_0001>

<bundles_post_ra>
// kernel: tpu_custom_call.1
= control target key start
LH: loop header
LB: loop body
LE: loop exit
PB: predicated region body
PF: predicated region fallthrough
CT: control target
= control target key end

     0   :  { %s8531_s0 = inlined_call_operand.hbm [shape: bf16[32,32,3], index: 0, kind: input, shape index: {}]   ;;  %s8532_s1 = inlined_call_operand.hbm [shape: bf16[32,32,3], index: 1, kind: input, shape index: {}]   ;;  %s8533_s2 = inlined_call_operand.hbm [shape: f32[3,64], index: 2, kind: input, shape index: {}]   ;;  %s8534_s3 = inlined_call_operand.hbm [shape: bf16[3,64], index: 3, kind: input, shape index: {}]   ;;  %s8535_s4 = inlined_call_operand.hbm [shape: f32[1,64], index: 4, kind: input, shape index: {}]   ;;  %s8536_s5 = inlined_call_operand.hbm [shape: f32[1,64], index: 5, kind: input, shape index: {}]   ;;  %s8537_s6 = inlined_call_operand.hbm [shape: bf16[64,64], index: 6, kind: input, shape index: {}]   ;;  %s8538_s7 = inlined_call_operand.hbm [shape: f32[1,64], index: 7, kind: input, shape index: {}]   ;;  %s8539_s8 = inlined_call_operand.hbm [shape: f32[1,64], index: 8, kind: input, shape index: {}]   ;;  %s8540_s9 = inlined_call_operand.hbm [shape: bf16[64,128], index: 9, kind: input, shape index: {}]   ;;  %s8541_s10 = inlined_call_operand.hbm [shape: f32[1,128], index: 10, kind: input, shape index: {}]   ;;  %s8542_s11 = inlined_call_operand.hbm [shape: f32[1,128], index: 11, kind: input, shape index: {}]   ;;  %s8543_s12 = inlined_call_operand.hbm [shape: bf16[32,128], index: 12, kind: output, shape index: {}]  }
   0x1   :  { %8570 = sst [smem:[#allocation73_spill]] %s8532_s1 }
   0x2   :  { %8571 = sst [smem:[#allocation74_spill]] %s8533_s2 }
   0x3   :  { %8572 = sst [smem:[#allocation75_spill]] %s8534_s3 }
   0x4   :  { %8573 = sst [smem:[#allocation76_spill]] %s8535_s4 }
   0x5   :  { %8574 = sst [smem:[#allocation77_spill]] %s8536_s5 }
   0x6   :  { %8575 = sst [smem:[#allocation78_spill]] %s8537_s6 }
   0x7   :  { %8576 = sst [smem:[#allocation79_spill]] %s8538_s7 }
   0x8   :  { %8577 = sst [smem:[#allocation80_spill]] %s8539_s8 }
   0x9   :  { %8578 = sst [smem:[#allocation81_spill]] %s8543_s12 }
   0xa   :  { %17 = vsyncpa [#allocation3], 0 }
   0xb   :  { %19 = vsyncpa [#allocation3 + $0x1], 0 }
   0xc   :  { %20 = vsyncpa [#allocation6], 0 }
   0xd   :  { %22 = vsyncpa [#allocation6 + $0x1], 0 }
   0xe   :  { %23 = vsyncpa [#allocation9], 0 }
   0xf   :  { %24 = vsyncpa [#allocation12], 0 }
  0x10   :  { %25 = vsyncpa [#allocation15], 0 }
  0x11   :  { %26 = vsyncpa [#allocation18], 0 }
  0x12   :  { %27 = vsyncpa [#allocation21], 0 }
  0x13   :  { %28 = vsyncpa [#allocation4], 0 }
  0x14   :  { %30 = vsyncpa [#allocation4 + $0x1], 0  ;;  %s6441_s21 = smov 0   ;;  %s6443_s22 = smov 0  }
  0x15   :  { %s6445_s23 = smov 0   ;;  %s6447_s24 = smov 0  }
  0x16 LB: > { %s6355_s25 = smov [#allocation7]   ;;  %s6462_s27 = sadd.s32 4294967295, %s6353_s24   ;;  %s6353_s24 = sphi %s6447_s24, %s8743_s24   ;;  %s6349_s23 = sphi %s6445_s23, %s8742_s23   ;;  %s6345_s22 = sphi %s6443_s22, %s8741_s22   ;;  %s6341_s21 = sphi %s6441_s21, %s8740_s21  }
  0x17   : > { %s342_s26 = sshll.u32 %s6355_s25, 4  ;;  %p4492_p0 = scmp.ge.s32.totalorder %s6353_s24, 1  ;;  %s6467_s26 = int_to_ptr.vmem [resolvable:$true] %s342_s26 }
  0x18   : > { %p8547_p1 = scmp.eq.s32.totalorder %s6462_s27, 0  ;;  %p329_p2 = scmp.lt.s32.totalorder %s6353_s24, 3 }
  0x19   : > { %s6356_s29 = smov [#allocation8]   ;;  %s6357_s13 = smov [#allocation11]  }
  0x1a   : > { %p6469_p3 = pnand %p4492_p0, %p329_p2  ;;  %s353_s30 = sshll.u32 %s6356_s29, 4  ;;  %s6476_s30 = int_to_ptr.vmem [resolvable:$true] %s353_s30 }
  0x1b   : > { %s375_s14 = sshll.u32 %s6357_s13, 4  ;;  %s6358_s16 = smov [#allocation14]   ;;  %s6484_s14 = int_to_ptr.vmem [resolvable:$true] %s375_s14 }
  0x1c   : > { %s8579_s28 = scalar_select %p6469_p3, 1, 0 }
  0x1d   : > { %p5232_p5 = pneg %p6469_p3  ;;  %s6486_s17 = sshll.u32 %s6358_s16, 4  ;;  %s400_s17 = int_to_ptr.vmem [resolvable:$true] %s6486_s17 }
  0x1e   : > { %8580 = sst [smem:[#allocation32_spill]] %s8579_s28 }
  0x1f   : > { %p6480_p6 = pnand %p5232_p5, %p8547_p1  ;;  %s8582_s2 = sld [smem:[#allocation74_spill]] }
  0x21   : > { %p6496_p8 = pneg %p6480_p6 }
  0x25   : > { %s5919_s20 = scalar_lea.hbm %s8582_s2, 64 }
  0x26   : > { %p5920_p7 = scmp.ne.s32.totalorder %s8582_s2, %s5919_s20  ;;  %p5926_p11 = scmp.lt.u32.totalorder %s5919_s20, %s8582_s2 }
  0x28   : > { %p5922_p9 = pnand %p6496_p8, %p5920_p7 }
  0x2a   : > { %p5923_p10 = pneg %p5922_p9 }
  0x2c   : > { %p5928_p12 = pnand %p5926_p11, %p5923_p10 }
  0x2e   : > { %5931 = shalt.err (!%p5928_p12)
}
  0x2f   : > { %s5932_s18 = scalar_lea.vmem %s6467_s26, 64  ;;  %p5940_p5 = scmp.lt.s32.totalorder %s6467_s26, %s6467_s26 }
  0x30   : > { %p5933_p13 = scmp.ne.s32.totalorder %s6467_s26, %s5932_s18  ;;  %p5941_p4 = scmp.lt.s32.totalorder %s5932_s18, %s5932_s18 }
  0x32   : > { %p5935_p0 = pnand %p5933_p13, %p6496_p8  ;;  %p5942_p7 = por %p5941_p4, %p5940_p5 }
  0x34   : > { %p5936_p2 = pneg %p5935_p0 }
  0x36   : > { %p5943_p9 = pnand %p5942_p7, %p5936_p2 }
  0x38   : > { %5946 = shalt.err (!%p5943_p9)
}
  0x39   : > { %5235 = dma.hbm_to_vmem [thread:$0]  (!%p6480_p6), %s8582_s2, 64, %s6467_s26, [#allocation6]  }
  0x3a   : > { %s8584_s3 = sld [smem:[#allocation75_spill]] }
  0x40   : > { %s5947_s29 = scalar_lea.hbm %s8584_s3, 32 }
  0x41   : > { %p5948_p10 = scmp.ne.s32.totalorder %s8584_s3, %s5947_s29  ;;  %p5954_p12 = scmp.lt.u32.totalorder %s5947_s29, %s8584_s3 }
  0x43   : > { %p5950_p4 = pnand %p5948_p10, %p6496_p8 }
  0x45   : > { %p5951_p11 = pneg %p5950_p4 }
  0x47   : > { %p5956_p13 = pnand %p5954_p12, %p5951_p11 }
  0x49   : > { %5959 = shalt.err (!%p5956_p13)
}
  0x4a   : > { %s5960_s26 = scalar_lea.vmem %s6476_s30, 32  ;;  %p5968_p7 = scmp.lt.s32.totalorder %s6476_s30, %s6476_s30 }
  0x4b   : > { %p5961_p0 = scmp.ne.s32.totalorder %s6476_s30, %s5960_s26  ;;  %p5969_p9 = scmp.lt.s32.totalorder %s5960_s26, %s5960_s26 }
  0x4d   : > { %p5963_p2 = pnand %p5961_p0, %p6496_p8  ;;  %p5970_p10 = por %p5969_p9, %p5968_p7 }
  0x4f   : > { %p5964_p5 = pneg %p5963_p2 }
  0x51   : > { %p5971_p4 = pnand %p5970_p10, %p5964_p5 }
  0x53   : > { %5974 = shalt.err (!%p5971_p4)
}
  0x54   : > { %5238 = dma.hbm_to_vmem [thread:$0]  (!%p6480_p6), %s8584_s3, 32, %s6476_s30, [#allocation9]  }
  0x55   : > { %s8585_s5 = sld [smem:[#allocation77_spill]] }
  0x5b   : > { %s5975_s20 = scalar_lea.hbm %s8585_s5, 16 }
  0x5c   : > { %p5976_p11 = scmp.ne.s32.totalorder %s8585_s5, %s5975_s20  ;;  %p5982_p0 = scmp.lt.u32.totalorder %s5975_s20, %s8585_s5 }
  0x5e   : > { %p5978_p12 = pnand %p5976_p11, %p6496_p8 }
  0x60   : > { %p5979_p13 = pneg %p5978_p12 }
  0x62   : > { %p5984_p2 = pnand %p5982_p0, %p5979_p13 }
  0x64   : > { %5987 = shalt.err (!%p5984_p2)
}
  0x65   : > { %s5988_s30 = scalar_lea.vmem %s6484_s14, 16  ;;  %s5995_s26 = scalar_lea.vmem %s6484_s14, 32 }
  0x66   : > { %p5989_p5 = scmp.ne.s32.totalorder %s6484_s14, %s5988_s30  ;;  %p5996_p10 = scmp.lt.s32.totalorder %s6484_s14, %s6484_s14 }
  0x67   : > { %p5997_p4 = scmp.lt.s32.totalorder %s5995_s26, %s5988_s30 }
  0x68   : > { %p5991_p7 = pnand %p5989_p5, %p6496_p8 }
  0x69   : > { %p5998_p11 = por %p5997_p4, %p5996_p10 }
  0x6a   : > { %p5992_p9 = pneg %p5991_p7 }
  0x6c   : > { %p5999_p12 = pnand %p5998_p11, %p5992_p9 }
  0x6e   : > { %6002 = shalt.err (!%p5999_p12)
}
  0x6f   : > { %5244 = dma.hbm_to_vmem [thread:$0]  (!%p6480_p6), %s8585_s5, 16, %s6484_s14, [#allocation12]  }
  0x70   : > { %s8586_s7 = sld [smem:[#allocation79_spill]] }
  0x76   : > { %s6003_s20 = scalar_lea.hbm %s8586_s7, 16 }
  0x77   : > { %p6004_p13 = scmp.ne.s32.totalorder %s8586_s7, %s6003_s20  ;;  %p6010_p5 = scmp.lt.u32.totalorder %s6003_s20, %s8586_s7 }
  0x79   : > { %p6006_p0 = pnand %p6004_p13, %p6496_p8 }
  0x7b   : > { %p6007_p2 = pneg %p6006_p0 }
  0x7d   : > { %p6012_p7 = pnand %p6010_p5, %p6007_p2 }
  0x7f   : > { %6015 = shalt.err (!%p6012_p7)
}
  0x80   : > { %s6016_s30 = scalar_lea.vmem %s400_s17, 16  ;;  %s6023_s14 = scalar_lea.vmem %s400_s17, 32 }
  0x81   : > { %p6017_p9 = scmp.ne.s32.totalorder %s400_s17, %s6016_s30  ;;  %p6024_p11 = scmp.lt.s32.totalorder %s400_s17, %s400_s17 }
  0x82   : > { %p6025_p12 = scmp.lt.s32.totalorder %s6023_s14, %s6016_s30 }
  0x83   : > { %p6019_p10 = pnand %p6017_p9, %p6496_p8 }
  0x84   : > { %p6026_p1 = por %p6025_p12, %p6024_p11 }
  0x85   : > { %p6020_p4 = pneg %p6019_p10 }
  0x87   : > { %p6027_p3 = pnand %p6026_p1, %p6020_p4 }
  0x89   : > { %6030 = shalt.err (!%p6027_p3)
}
  0x8a   : > { %5250 = dma.hbm_to_vmem [thread:$0]  (!%p6480_p6), %s8586_s7, 16, %s400_s17, [#allocation15]  }
  0x8b   : > { %s6359_s28 = smov [#allocation17]   ;;  %s6360_s19 = smov [#allocation10]  }
  0x8c   : > { %s420_s12 = sshll.u32 %s6359_s28, 4  ;;  %s364_s20 = sshll.u32 %s6360_s19, 4  ;;  %s421_s12 = int_to_ptr.vmem [resolvable:$true] %s420_s12  ;;  %s6583_s20 = int_to_ptr.vmem [resolvable:$true] %s364_s20 }
  0x8d   : > { %s6031_s16 = scalar_lea.hbm %s8540_s9, 512 }
  0x8e   : > { %p6032_p1 = scmp.ne.s32.totalorder %s8540_s9, %s6031_s16  ;;  %p6038_p0 = scmp.lt.u32.totalorder %s6031_s16, %s8540_s9 }
  0x90   : > { %p6034_p3 = pnand %p6032_p1, %p6496_p8 }
  0x92   : > { %p6035_p13 = pneg %p6034_p3 }
  0x94   : > { %p6040_p2 = pnand %p6038_p0, %p6035_p13 }
  0x96   : > { %6043 = shalt.err (!%p6040_p2)
}
  0x97   : > { %s6044_s26 = scalar_lea.vmem %s421_s12, 512  ;;  %p6052_p10 = scmp.lt.s32.totalorder %s421_s12, %s421_s12 }
  0x98   : > { %p6045_p5 = scmp.ne.s32.totalorder %s421_s12, %s6044_s26  ;;  %p6053_p4 = scmp.lt.s32.totalorder %s6044_s26, %s6044_s26 }
  0x9a   : > { %p6047_p7 = pnand %p6045_p5, %p6496_p8  ;;  %p6054_p11 = por %p6053_p4, %p6052_p10 }
  0x9c   : > { %p6048_p9 = pneg %p6047_p7 }
  0x9e   : > { %p6055_p12 = pnand %p6054_p11, %p6048_p9 }
  0xa0   : > { %6058 = shalt.err (!%p6055_p12)
}
  0xa1   : > { %s8549_s1 = smov 64   ;;  %s8551_s28 = smov 4  }
  0xa2   : > { %5256 = dma.hbm_to_vmem [thread:$0]  (!%p6480_p6), %s8540_s9, 512, %s421_s12, [#allocation18], %s8549_s1, %s8549_s1, %s8551_s28  }
  0xa3   : > { %s8587_s4 = sld [smem:[#allocation76_spill]] }
  0xa9   : > { %s6059_s18 = scalar_lea.hbm %s8587_s4, 16 }
  0xaa   : > { %p6060_p1 = scmp.ne.s32.totalorder %s8587_s4, %s6059_s18  ;;  %p6066_p0 = scmp.lt.u32.totalorder %s6059_s18, %s8587_s4 }
  0xac   : > { %p6062_p3 = pnand %p6060_p1, %p6496_p8 }
  0xae   : > { %p6063_p13 = pneg %p6062_p3 }
  0xb0   : > { %p6068_p2 = pnand %p6066_p0, %p6063_p13 }
  0xb2   : > { %6071 = shalt.err (!%p6068_p2)
}
  0xb3   : > { %s6072_s12 = scalar_lea.vmem %s6583_s20, 16  ;;  %s6079_s19 = scalar_lea.vmem %s6583_s20, 32 }
  0xb4   : > { %p6073_p5 = scmp.ne.s32.totalorder %s6583_s20, %s6072_s12  ;;  %p6080_p10 = scmp.lt.s32.totalorder %s6583_s20, %s6583_s20 }
  0xb5   : > { %p6081_p4 = scmp.lt.s32.totalorder %s6079_s19, %s6072_s12 }
  0xb6   : > { %p6075_p7 = pnand %p6073_p5, %p6496_p8 }
  0xb7   : > { %p6082_p11 = por %p6081_p4, %p6080_p10 }
  0xb8   : > { %p6076_p9 = pneg %p6075_p7 }
  0xba   : > { %p6083_p12 = pnand %p6082_p11, %p6076_p9 }
  0xbc   : > { %6086 = shalt.err (!%p6083_p12)
}
  0xbd   : > { %5241 = dma.hbm_to_vmem [thread:$0]  (!%p6480_p6), %s8587_s4, 16, %s6583_s20, [#allocation9]  }
  0xbe   : > { %s6363_s16 = smov [#allocation13]   ;;  %s6364_s30 = smov [#allocation16]  }
  0xbf   : > { %s385_s18 = sshll.u32 %s6363_s16, 4  ;;  %s410_s14 = sshll.u32 %s6364_s30, 4  ;;  %s386_s18 = int_to_ptr.vmem [resolvable:$true] %s385_s18  ;;  %s6630_s14 = int_to_ptr.vmem [resolvable:$true] %s410_s14 }
  0xc0   : > { %s8588_s6 = sld [smem:[#allocation78_spill]] }
  0xc6   : > { %s6087_s12 = scalar_lea.hbm %s8588_s6, 512 }
  0xc7   : > { %p6088_p1 = scmp.ne.s32.totalorder %s8588_s6, %s6087_s12  ;;  %p6094_p0 = scmp.lt.u32.totalorder %s6087_s12, %s8588_s6 }
  0xc9   : > { %p6090_p3 = pnand %p6088_p1, %p6496_p8 }
  0xcb   : > { %p6091_p13 = pneg %p6090_p3 }
  0xcd   : > { %p6096_p2 = pnand %p6094_p0, %p6091_p13 }
  0xcf   : > { %6099 = shalt.err (!%p6096_p2)
}
  0xd0   : > { %s6100_s29 = scalar_lea.vmem %s386_s18, 512  ;;  %p6108_p10 = scmp.lt.s32.totalorder %s386_s18, %s386_s18 }
  0xd1   : > { %p6101_p5 = scmp.ne.s32.totalorder %s386_s18, %s6100_s29  ;;  %p6109_p4 = scmp.lt.s32.totalorder %s6100_s29, %s6100_s29 }
  0xd3   : > { %p6103_p7 = pnand %p6101_p5, %p6496_p8  ;;  %p6110_p11 = por %p6109_p4, %p6108_p10 }
  0xd5   : > { %p6104_p9 = pneg %p6103_p7 }
  0xd7   : > { %p6111_p12 = pnand %p6110_p11, %p6104_p9 }
  0xd9   : > { %6114 = shalt.err (!%p6111_p12)
}
  0xda   : > { %s8589_s1 = smov 64   ;;  %s8590_s8 = sld [smem:[#allocation80_spill]] }
  0xdb   : > { %5247 = dma.hbm_to_vmem [thread:$0]  (!%p6480_p6), %s8588_s6, 512, %s386_s18, [#allocation12], %s8589_s1, %s8589_s1, %s8551_s28  }
  0xe0   : > { %s6115_s12 = scalar_lea.hbm %s8590_s8, 16 }
  0xe1   : > { %p6116_p1 = scmp.ne.s32.totalorder %s8590_s8, %s6115_s12  ;;  %p6122_p0 = scmp.lt.u32.totalorder %s6115_s12, %s8590_s8 }
  0xe3   : > { %p6118_p3 = pnand %p6116_p1, %p6496_p8 }
  0xe5   : > { %p6119_p13 = pneg %p6118_p3 }
  0xe7   : > { %p6124_p2 = pnand %p6122_p0, %p6119_p13 }
  0xe9   : > { %6127 = shalt.err (!%p6124_p2)
}
  0xea   : > { %s6128_s18 = scalar_lea.vmem %s6630_s14, 16  ;;  %s6135_s16 = scalar_lea.vmem %s6630_s14, 32 }
  0xeb   : > { %p6129_p5 = scmp.ne.s32.totalorder %s6630_s14, %s6128_s18  ;;  %p6136_p10 = scmp.lt.s32.totalorder %s6630_s14, %s6630_s14 }
  0xec   : > { %p6137_p4 = scmp.lt.s32.totalorder %s6135_s16, %s6128_s18 }
  0xed   : > { %p6131_p7 = pnand %p6129_p5, %p6496_p8 }
  0xee   : > { %p6138_p11 = por %p6137_p4, %p6136_p10 }
  0xef   : > { %p6132_p9 = pneg %p6131_p7 }
  0xf1   : > { %p6139_p12 = pnand %p6138_p11, %p6132_p9 }
  0xf3   : > { %6142 = shalt.err (!%p6139_p12)
}
  0xf4   : > { %5253 = dma.hbm_to_vmem [thread:$0]  (!%p6480_p6), %s8590_s8, 16, %s6630_s14, [#allocation15]  }
  0xf5   : > { %s6365_s26 = smov [#allocation19]   ;;  %s6366_s19 = smov [#allocation20]  }
  0xf6   : > { %s434_s12 = sshll.u32 %s6365_s26, 4  ;;  %s445_s25 = sshll.u32 %s6366_s19, 4  ;;  %s435_s12 = int_to_ptr.vmem [resolvable:$true] %s434_s12  ;;  %s6677_s25 = int_to_ptr.vmem [resolvable:$true] %s445_s25 }
  0xf7   : > { %s6143_s18 = scalar_lea.hbm %s8541_s10, 16 }
  0xf8   : > { %p6144_p1 = scmp.ne.s32.totalorder %s8541_s10, %s6143_s18  ;;  %p6150_p0 = scmp.lt.u32.totalorder %s6143_s18, %s8541_s10 }
  0xfa   : > { %p6146_p3 = pnand %p6144_p1, %p6496_p8 }
  0xfc   : > { %p6147_p13 = pneg %p6146_p3 }
  0xfe   : > { %p6152_p2 = pnand %p6150_p0, %p6147_p13 }
 0x100   : > { %6155 = shalt.err (!%p6152_p2)
}
 0x101   : > { %s6156_s17 = scalar_lea.vmem %s435_s12, 16  ;;  %s6163_s26 = scalar_lea.vmem %s435_s12, 32 }
 0x102   : > { %p6157_p5 = scmp.ne.s32.totalorder %s435_s12, %s6156_s17  ;;  %p6164_p10 = scmp.lt.s32.totalorder %s435_s12, %s435_s12 }
 0x103   : > { %p6165_p4 = scmp.lt.s32.totalorder %s6163_s26, %s6156_s17 }
 0x104   : > { %p6159_p7 = pnand %p6157_p5, %p6496_p8 }
 0x105   : > { %p6166_p11 = por %p6165_p4, %p6164_p10 }
 0x106   : > { %p6160_p9 = pneg %p6159_p7 }
 0x108   : > { %p6167_p12 = pnand %p6166_p11, %p6160_p9 }
 0x10a   : > { %6170 = shalt.err (!%p6167_p12)
}
 0x10b   : > { %5259 = dma.hbm_to_vmem [thread:$0]  (!%p6480_p6), %s8541_s10, 16, %s435_s12, [#allocation18]  }
 0x10c   : > { %s6171_s18 = scalar_lea.hbm %s8542_s11, 16 }
 0x10d   : > { %p6172_p1 = scmp.ne.s32.totalorder %s8542_s11, %s6171_s18  ;;  %p6178_p0 = scmp.lt.u32.totalorder %s6171_s18, %s8542_s11 }
 0x10f   : > { %p6174_p3 = pnand %p6172_p1, %p6496_p8 }
 0x111   : > { %p6175_p13 = pneg %p6174_p3 }
 0x113   : > { %p6180_p2 = pnand %p6178_p0, %p6175_p13 }
 0x115   : > { %6183 = shalt.err (!%p6180_p2)
}
 0x116   : > { %s6184_s12 = scalar_lea.vmem %s6677_s25, 16  ;;  %s6191_s26 = scalar_lea.vmem %s6677_s25, 32 }
 0x117   : > { %p6185_p5 = scmp.ne.s32.totalorder %s6677_s25, %s6184_s12  ;;  %p6192_p10 = scmp.lt.s32.totalorder %s6677_s25, %s6677_s25 }
 0x118   : > { %p6193_p4 = scmp.lt.s32.totalorder %s6191_s26, %s6184_s12 }
 0x119   : > { %p6187_p7 = pnand %p6185_p5, %p6496_p8 }
 0x11a   : > { %p6194_p11 = por %p6193_p4, %p6192_p10 }
 0x11b   : > { %p6188_p9 = pneg %p6187_p7 }
 0x11d   : > { %p6195_p12 = pnand %p6194_p11, %p6188_p9 }
 0x11f   : > { %6198 = shalt.err (!%p6195_p12)
}
 0x120   : > { %5262 = dma.hbm_to_vmem [thread:$0]  (!%p6480_p6), %s8542_s11, 16, %s6677_s25, [#allocation21]  }
 0x121   : > { %s4491_s15 = sadd.s32 4294967294, %s6353_s24   ;;  %s6723_s13 = sadd.s32 1, %s6353_s24  }
 0x122   : > { %s40_s20 = ssub.s32 %s6353_s24, %s6723_s13  ;;  %s43_s29 = sadd.s32 1, %s6349_s23 }
 0x123   : > { %p41_p8 = scmp.eq.s32.totalorder %s40_s20, 0  ;;  %p50_p1 = scmp.ne.s32.totalorder %s6349_s23, %s6345_s22 }
 0x124   : > { %p51_p3 = scmp.eq.s32.totalorder %s6353_s24, 0  ;;  %p56_p13 = scmp.ne.s32.totalorder %s6345_s22, %s6341_s21 }
 0x125   : > { %s6734_s18 = scalar_select %p41_p8, %s6349_s23, %s43_s29  }
 0x126   : > { %p6736_p0 = por %p51_p3, %p50_p1  ;;  %p8592_p2 = scmp.eq.s32.totalorder %s6462_s27, 0 }
 0x127   : > { %p316_p5 = scmp.eq.s32.totalorder %s6462_s27, 1  ;;  %p322_p7 = scmp.eq.s32.totalorder %s4491_s15, 1 }
 0x128   : > { %p6742_p6 = por %p8592_p2, %p56_p13  ;;  %p5284_p9 = scmp.lt.s32.totalorder %s6353_s24, 2 }
 0x129   : > { %s456_s30 = sand.u32 1, %s6349_s23   ;;  %p6749_p10 = por %p316_p5, %p50_p1 }
 0x12a   : > { %p6753_p4 = por %p322_p7, %p56_p13  ;;  %s4504_s12 = sshll.u32 %s456_s30, 8 }
 0x12b   : > { %s8594_s14 = scalar_select %p6749_p10, 1, 0 }
 0x12c   : > { %s8595_s17 = scalar_select %p6753_p4, 1, 0 }
 0x12d   : > { %s4690_s26 = sshll.u32 %s6353_s24, 12  ;;  %s460_s15 = scalar_lea.vmem [#allocation2], %s4504_s12 }
 0x12e   : > { %s6761_s20 = scalar_lea.hbm %s8531_s0, %s4690_s26  ;;  %s468_s29 = sshll.u32 %s460_s15, 4  ;;  %s6763_s29 = int_to_ptr.vmem [resolvable:$true] %s468_s29 }
 0x12f   : > { %p6767_p11 = pnand %p5284_p9, %p6736_p0  ;;  %s8597_s5 = sld [smem:[#allocation73_spill]] }
 0x130   : > { %s482_s19 = scalar_lea.vmem [#allocation5], %s4504_s12  ;;  %s6778_s7 = scalar_lea.sflag [#allocation3], %s456_s30 }
 0x131   : > { %s6776_s6 = sshll.u32 %s482_s19, 4  ;;  %s6199_s15 = scalar_lea.hbm %s6761_s20, 4096  ;;  %s6810_s6 = int_to_ptr.vmem [resolvable:$true] %s6776_s6 }
 0x132   : > { %p6200_p12 = scmp.ne.s32.totalorder %s6761_s20, %s6199_s15  ;;  %p6201_p8 = pneg %p6767_p11 }
 0x133   : > { %s6204_s3 = scalar_lea.hbm %s8531_s0, 8192  ;;  %p6205_p13 = scmp.lt.u32.totalorder %s6761_s20, %s8531_s0 }
 0x134   : > { %p6202_p1 = pnand %p6201_p8, %p6200_p12  ;;  %p6206_p0 = scmp.lt.u32.totalorder %s6204_s3, %s6199_s15 }
 0x135   : > { %s6774_s28 = scalar_lea.hbm %s8597_s5, %s4690_s26  ;;  %p6208_p5 = scmp.lt.u32.totalorder %s6199_s15, %s6761_s20 }
 0x136   : > { %p6203_p3 = pneg %p6202_p1  ;;  %p6207_p2 = por %p6206_p0, %p6205_p13 }
 0x138   : > { %p6209_p7 = por %p6208_p5, %p6207_p2 }
 0x13a   : > { %p6210_p9 = pnand %p6209_p7, %p6203_p3 }
 0x13c   : > { %6213 = shalt.err (!%p6210_p9)
}
 0x13d   : > { %s6214_s30 = scalar_lea.vmem %s6763_s29, 4096  ;;  %s6367_s8 = smov [#allocation2]  }
 0x13e   : > { %p6215_p12 = scmp.ne.s32.totalorder %s6763_s29, %s6214_s30  ;;  %s6219_s12 = sshll.u32 %s6367_s8, 4  ;;  %s6220_s12 = int_to_ptr.vmem [resolvable:$false] %s6219_s12 }
 0x13f   : > { %s6221_s19 = scalar_lea.vmem %s6220_s12, 8192  ;;  %p6222_p10 = scmp.lt.s32.totalorder %s6763_s29, %s6220_s12 }
 0x140   : > { %p6217_p1 = pnand %p6215_p12, %p6201_p8  ;;  %p6223_p13 = scmp.lt.s32.totalorder %s6221_s19, %s6214_s30 }
 0x142   : > { %p6218_p4 = pneg %p6217_p1  ;;  %p6224_p0 = por %p6223_p13, %p6222_p10 }
 0x144   : > { %p6225_p2 = pnand %p6224_p0, %p6218_p4 }
 0x146   : > { %6228 = shalt.err (!%p6225_p2)
}
 0x147   : > { %s8598_s15 = smov 4   ;;  %s478_s16 = sand.u32 1, %s6353_s24  }
 0x148   : > { %5266 = dma.hbm_to_vmem [thread:$0]  (!%p6767_p11), %s6761_s20, 4096, %s6763_s29, %s6778_s7, %s8589_s1, %s8589_s1, %s8598_s15  }
 0x149   : > { %s6813_s3 = scalar_lea.sflag [#allocation6], %s478_s16  ;;  %s6229_s4 = scalar_lea.hbm %s6774_s28, 4096 }
 0x14a   : > { %p6230_p10 = scmp.ne.s32.totalorder %s6774_s28, %s6229_s4  ;;  %s6234_s8 = scalar_lea.hbm %s8597_s5, 8192 }
 0x14b   : > { %p6235_p5 = scmp.lt.u32.totalorder %s6774_s28, %s8597_s5  ;;  %p6236_p7 = scmp.lt.u32.totalorder %s6234_s8, %s6229_s4 }
 0x14c   : > { %p6232_p4 = pnand %p6230_p10, %p6201_p8  ;;  %p6238_p12 = scmp.lt.u32.totalorder %s6229_s4, %s6774_s28 }
 0x14d   : > { %p6237_p9 = por %p6236_p7, %p6235_p5 }
 0x14e   : > { %p6233_p3 = pneg %p6232_p4 }
 0x14f   : > { %p6239_p1 = por %p6238_p12, %p6237_p9 }
 0x151   : > { %p6240_p13 = pnand %p6239_p1, %p6233_p3 }
 0x153   : > { %6243 = shalt.err (!%p6240_p13)
}
 0x154   : > { %s6244_s7 = scalar_lea.vmem %s6810_s6, 4096  ;;  %s6368_s20 = smov [#allocation5]  }
 0x155   : > { %p6245_p0 = scmp.ne.s32.totalorder %s6810_s6, %s6244_s7  ;;  %s6249_s29 = sshll.u32 %s6368_s20, 4  ;;  %s6250_s29 = int_to_ptr.vmem [resolvable:$false] %s6249_s29 }
 0x156   : > { %s6251_s16 = scalar_lea.vmem %s6250_s29, 8192  ;;  %p6252_p4 = scmp.lt.s32.totalorder %s6810_s6, %s6250_s29 }
 0x157   : > { %p6247_p2 = pnand %p6245_p0, %p6201_p8  ;;  %p6253_p5 = scmp.lt.s32.totalorder %s6251_s16, %s6244_s7 }
 0x159   : > { %p6248_p10 = pneg %p6247_p2  ;;  %p6254_p7 = por %p6253_p5, %p6252_p4 }
 0x15b   : > { %p6255_p9 = pnand %p6254_p7, %p6248_p10 }
 0x15d   : > { %6258 = shalt.err (!%p6255_p9)
}
 0x15e   : > { %5269 = dma.hbm_to_vmem [thread:$0]  (!%p6767_p11), %s6774_s28, 4096, %s6810_s6, %s6813_s3, %s8589_s1, %s8589_s1, %s8598_s15  }
 0x15f   : > { %s8599_s4 = sld [smem:[#allocation32_spill]] }
 0x165   : > { %p8600_p8 = scmp.ne.s32.totalorder %s8599_s4, 0 }
 0x167   : > { %502 = sbr.rel (%p8600_p8) target bundleno = 1304 (0x518), region = 68 }
 0x16e   : > { %s6845_s26 = sand.u32 1, %s6345_s22  }
 0x16f   : > { %s4513_s30 = sshll.u32 %s6845_s26, 8  ;;  %s505_s8 = scalar_lea.sflag [#allocation3], %s6845_s26 }
 0x170   : > { %s6849_s12 = scalar_lea.vmem [#allocation2], %s4513_s30 }
 0x171   : > { %6304 = dma.done.wait (%p6742_p6), %s505_s8, 4096  }
 0x172   : > { %6306 = vsyncadd (%p6742_p6), %s505_s8, 4294963200  ;;  %s513_s2 = sand.u32 1, %s6462_s27   ;;  %s6856_s1 = scalar_lea.vmem [#allocation5], %s4513_s30 }
 0x173   : > { %s514_s6 = scalar_lea.sflag [#allocation6], %s513_s2 }
 0x174   : > { %6308 = dma.done.wait (%p6742_p6), %s514_s6, 4096  }
 0x175   : > { %6310 = vsyncadd (%p6742_p6), %s514_s6, 4294963200  ;;  %p8601_p11 = scmp.eq.s32.totalorder %s6462_s27, 0 }
 0x177   : > { %6312 = dma.done.wait (%p8601_p11), [#allocation6], 64   ;;  %p8602_p3 = pmov %p8601_p11 }
 0x179   : > { %6314 = vsyncadd (%p8602_p3), [#allocation6], 4294967232  ;;  %p8603_p12 = pmov %p8602_p3 }
 0x17a   : > { %p8604_p1 = pmov %p8602_p3 }
 0x17b   : > { %6316 = dma.done.wait (%p8603_p12), [#allocation9], 48  }
 0x17c   : > { %6318 = vsyncadd (%p8604_p1), [#allocation9], 4294967248  ;;  %p8605_p13 = pmov %p8604_p1 }
 0x17d   : > { %p8606_p0 = pmov %p8604_p1 }
 0x17e   : > { %6320 = dma.done.wait (%p8605_p13), [#allocation12], 528  }
 0x17f   : > { %6322 = vsyncadd (%p8606_p0), [#allocation12], 4294966768  ;;  %p8607_p6 = pmov %p8606_p0 }
 0x180   : > { %p8608_p2 = pmov %p8606_p0 }
 0x181   : > { %6324 = dma.done.wait (%p8607_p6), [#allocation15], 32  }
 0x182   : > { %6326 = vsyncadd (%p8608_p2), [#allocation15], 4294967264  ;;  %p8609_p10 = pmov %p8606_p0 }
 0x183   : > { %p8610_p4 = pmov %p8606_p0 }
 0x184   : > { %6328 = dma.done.wait (%p8609_p10), [#allocation18], 528  }
 0x185   : > { %6330 = vsyncadd (%p8610_p4), [#allocation18], 4294966768  ;;  %p8611_p5 = pmov %p8606_p0 }
 0x186   : > { %p8612_p7 = pmov %p8606_p0 }
 0x187   : > { %6332 = dma.done.wait (%p8611_p5), [#allocation21], 16  }
 0x188   : > { %6334 = vsyncadd (%p8612_p7), [#allocation21], 4294967280  ;;  %vm1446_vm0 = vcmask 1040384   ;;  %v8554_v0 = vmov 0   ;;  %vm1447_vm1 = vcmask 1041408   ;;  %v6370_v1 = vmov 65535  }
 0x189   : > { %5357 = vset.pattern.permute.xlu1 %v8554_v0  ;;  %5346 = vset.pattern.permute.xlu0 %v8554_v0  ;;  %v1448_v2 = vsel %vm1446_vm0, 4294967295, %v6370_v1  ;;  %v800_v4 = vld [vmem:[#allocation8] sm:$0x3]  ;;  %v4839_v5 = vld [vmem:[%s6849_s12 + $0x10] sm:$0xff]   ;;  %vm1349_vm2 = vcmask 23552   ;;  %v5878_v10 = vld [vmem:[%s6856_s1 + $0x8] sm:$0xff]  }
 0x18a   : > { %v1449_v3 = vsel %vm1447_vm1, %v1448_v2, 0  ;;  %v4720_v7 = vunpack.c.l.bf16 %v4839_v5  ;;  %v4721_v8 = vunpack.c.h.bf16 %v4839_v5  ;;  %v5877_v9 = vld [vmem:[%s6856_s1] sm:$0xff]   ;;  %v4840_v11 = vld [vmem:[%s6849_s12 + $0x18] sm:$0xff]   ;;  %v4842_v15 = vld [vmem:[%s6849_s12 + $0x28] sm:$0xff]   ;;  %vm2788_vm3 = vcmask 523264   ;;  %s4525_s25 = sshll.u32 %s6845_s26, 3 }
 0x18b   : > { %v1451_v6 = vand.u32 %v1449_v3, %v800_v4  ;;  %4976 = vmatprep.mubr.msk.bf16.mxu0 %vm1349_vm2, %v5877_v9  ;;  %v4724_v13 = vunpack.c.l.bf16 %v4840_v11  ;;  %v4725_v14 = vunpack.c.h.bf16 %v4840_v11  ;;  %v4732_v16 = vunpack.c.l.bf16 %v4842_v15  ;;  %v5879_v18 = vld [vmem:[%s6856_s1 + $0x10] sm:$0xff]   ;;  %v4846_v20 = vld [vmem:[%s6849_s12 + $0x48] sm:$0xff]   ;;  %v4844_v21 = vld [vmem:[%s6849_s12 + $0x38] sm:$0xff]   ;;  %s8429_s28 = scalar_lea.vmem [#allocation22], %s4525_s25  ;;  %s4709_s15 = sshll.u32 %s6462_s27, 7 }
 0x18c   : > { %v6892_v12 = vpack.i.bf16 %v4721_v8, %v4720_v7  ;;  %v4733_v17 = vunpack.c.h.bf16 %v4842_v15  ;;  %v4748_v23 = vunpack.c.l.bf16 %v4846_v20  ;;  %v4749_v24 = vunpack.c.h.bf16 %v4846_v20  ;;  %v4848_v25 = vld [vmem:[%s6849_s12 + $0x58] sm:$0xff]   ;;  %v4711_v26 = vld [vmem:[%s6849_s12] sm:$0xff]   ;;  %v4838_v35 = vld [vmem:[%s6849_s12 + $0x8] sm:$0xff]   ;;  %s4300_s3 = sshll.u32 %s8429_s28, 4  ;;  %s8736_s20 = sld [smem:[#allocation81_spill]]  ;;  %s8486_s3 = int_to_ptr.vmem [resolvable:$true] %s4300_s3 }
 0x18d   : > { %4974 = vmatprep.subr.bf16.mxu0 %v1451_v6  ;;  %5184 = vmatprep.subr.bf16.mxu1 %v1451_v6  ;;  %v6898_v19 = vpack.i.bf16 %v4725_v14, %v4724_v13  ;;  %v4740_v27 = vunpack.c.l.bf16 %v4844_v21  ;;  %v4741_v28 = vunpack.c.h.bf16 %v4844_v21  ;;  %v4756_v29 = vunpack.c.l.bf16 %v4848_v25  ;;  %v5880_v32 = vld [vmem:[%s6856_s1 + $0x18] sm:$0xff]   ;;  %v5881_v37 = vld [vmem:[%s6856_s1 + $0x20] sm:$0xff]   ;;  %v5890_v47 = vld [vmem:[%s6856_s1 + $0x88] sm:$0xff]   ;;  %s4287_s16 = scalar_lea.sflag [#allocation4], %s6845_s26  ;;  %s6259_s4 = scalar_lea.vmem %s8486_s3, 128 }
 0x18e   : > { %4975 = vmatpush3.bf16.msra.mxu0 %v1451_v6  ;;  %5359 = vperm.xlu1 %5357, %v6892_v12   ;;  %v6903_v22 = vpack.i.bf16 %v4733_v17, %v4732_v16  ;;  %v4757_v30 = vunpack.c.h.bf16 %v4848_v25  ;;  %v6909_v31 = vpack.i.bf16 %v4749_v24, %v4748_v23  ;;  %v4712_v33 = vunpack.c.l.bf16 %v4711_v26  ;;  %v4841_v43 = vld [vmem:[%s6849_s12 + $0x20] sm:$0xff]   ;;  %v4843_v48 = vld [vmem:[%s6849_s12 + $0x30] sm:$0xff]   ;;  %v5882_v51 = vld [vmem:[%s6856_s1 + $0x28] sm:$0xff]   ;;  %p6260_p9 = scmp.ne.s32.totalorder %s8486_s3, %s6259_s4  ;;  %p8737_p8 = scmp.ne.s32.totalorder %s8594_s14, 0 }
 0x18f   : > { %5185 = vmatpush3.bf16.msra.mxu1 %v1451_v6  ;;  %v4713_v34 = vunpack.c.h.bf16 %v4711_v26  ;;  %v6917_v38 = vpack.i.bf16 %v4741_v28, %v4740_v27  ;;  %v4716_v39 = vunpack.c.l.bf16 %v4838_v35  ;;  %v4717_v40 = vunpack.c.h.bf16 %v4838_v35  ;;  %v5889_v46 = vld [vmem:[%s6856_s1 + $0x80] sm:$0xff]   ;;  %v5883_v52 = vld [vmem:[%s6856_s1 + $0x30] sm:$0xff]   ;;  %v5896_v63 = vld [vmem:[%s6856_s1 + $0x98] sm:$0xff]   ;;  %s6373_s27 = smov [#allocation22]  }
 0x190   : > { %v6913_v36 = vpack.i.bf16 %v4757_v30, %v4756_v29  ;;  %v4728_v44 = vunpack.c.l.bf16 %v4841_v43  ;;  %v4729_v45 = vunpack.c.h.bf16 %v4841_v43  ;;  %5008 = vmatprep.mubr.msk.bf16.mxu1 %vm1349_vm2, %v5889_v46  ;;  %v4736_v49 = vunpack.c.l.bf16 %v4843_v48  ;;  %v4845_v54 = vld [vmem:[%s6849_s12 + $0x40] sm:$0xff]   ;;  %v4847_v56 = vld [vmem:[%s6849_s12 + $0x50] sm:$0xff]   ;;  %v5884_v3 = vld [vmem:[%s6856_s1 + $0x38] sm:$0xff]   ;;  %p6261_p11 = pnand %p6260_p9, %p8737_p8  ;;  %s6263_s30 = sshll.u32 %s6373_s27, 4  ;;  %s6264_s30 = int_to_ptr.vmem [resolvable:$false] %s6263_s30 }
 0x191   : > { %4977 = vmatmul.mubr.msk.bf16.vlgmr.msra.gmra.mrb[0].mxu0 %vm1349_vm2, %v5878_v10  ;;  %v5347_v41 = vpack.i.bf16 %v4713_v34, %v4712_v33  ;;  %v6920_v42 = vpack.i.bf16 %v4717_v40, %v4716_v39  ;;  %v4737_v50 = vunpack.c.h.bf16 %v4843_v48  ;;  %v4849_v57 = vld [vmem:[%s6849_s12 + $0x60] sm:$0xff]   ;;  %v4744_v58 = vunpack.c.l.bf16 %v4845_v54  ;;  %v5895_v62 = vld [vmem:[%s6856_s1 + $0x90] sm:$0xff]   ;;  %v5898_v10 = vld [vmem:[%s6856_s1 + $0xa8] sm:$0xff]   ;;  %s6265_s8 = scalar_lea.vmem %s6264_s30, 256  ;;  %p6266_p12 = scmp.lt.s32.totalorder %s8486_s3, %s6264_s30 }
 0x192   : > { %4980 = vmatprep.mubr.msk.bf16.mxu0 %vm1349_vm2, %v5879_v18  ;;  %5364 = vperm.xlu1 %5357, %v6898_v19   ;;  %v6932_v53 = vpack.i.bf16 %v4729_v45, %v4728_v44  ;;  %v4745_v59 = vunpack.c.h.bf16 %v4845_v54  ;;  %v4760_v60 = vunpack.c.l.bf16 %v4849_v57  ;;  %v4761_v61 = vunpack.c.h.bf16 %v4849_v57  ;;  %v5897_v1 = vld [vmem:[%s6856_s1 + $0xa0] sm:$0xff]   ;;  %v5899_v11 = vld [vmem:[%s6856_s1 + $0xb0] sm:$0xff]   ;;  %v5886_v14 = vld [vmem:[%s6856_s1 + $0x48] sm:$0xff]   ;;  %s8484_s29 = scalar_lea.hbm %s8736_s20, %s4709_s15  ;;  %p6262_p3 = pneg %p6261_p11 }
 0x193   : > { %5348 = vperm.xlu0 %5346, %v5347_v41   ;;  %5009 = vmatmul.mubr.msk.bf16.vlgmr.msra.gmra.mrb[0].mxu1 %vm1349_vm2, %v5890_v47  ;;  %v6937_v55 = vpack.i.bf16 %v4737_v50, %v4736_v49  ;;  %v4752_v5 = vunpack.c.l.bf16 %v4847_v56  ;;  %v4753_v6 = vunpack.c.h.bf16 %v4847_v56  ;;  %v5885_v7 = vld [vmem:[%s6856_s1 + $0x40] sm:$0xff]   ;;  %v8558_v8 = vmov 1   ;;  %v5887_v15 = vld [vmem:[%s6856_s1 + $0x50] sm:$0xff]   ;;  %v5900_v16 = vld [vmem:[%s6856_s1 + $0xb8] sm:$0xff]   ;;  %p6267_p1 = scmp.lt.s32.totalorder %s6265_s8, %s6259_s4 }
 0x194   : > { %5012 = vmatprep.mubr.msk.bf16.mxu1 %vm1349_vm2, %v5895_v62  ;;  %v6949_v2 = vpack.i.bf16 %v4761_v61, %v4760_v60  ;;  %v6953_v4 = vpack.i.bf16 %v4745_v59, %v4744_v58  ;;  %v8556_v13 = vmov 2   ;;  %v5901_v17 = vld [vmem:[%s6856_s1 + $0xc0] sm:$0xff]   ;;  %v5888_v18 = vld [vmem:[%s6856_s1 + $0x58] sm:$0xff]   ;;  %v4858_v20 = vld [vmem:[%s6849_s12 + $0xa8] sm:$0xff]   ;;  %vm4259_vm4 = vcmask 1041409  }
 0x195   : > { %v6961_v9 = vpack.i.bf16 %v4753_v6, %v4752_v5  ;;  %v5891_v21 = vld [vmem:[%s6856_s1 + $0x60] sm:$0xff]   ;;  %v4796_v23 = vunpack.c.l.bf16 %v4858_v20  ;;  %v4797_v24 = vunpack.c.h.bf16 %v4858_v20  ;;  %v5892_v26 = vld [vmem:[%s6856_s1 + $0x68] sm:$0xff]   ;;  %v5893_v28 = vld [vmem:[%s6856_s1 + $0x70] sm:$0xff]   ;;  %vm4261_vm5 = vcmask 1042434   ;;  %p6268_p13 = por %p6267_p1, %p6266_p12 }
 0x196   : > { %5374 = vperm.xlu1 %5357, %v6903_v22   ;;  %v5902_v27 = vld [vmem:[%s6856_s1 + $0xc8] sm:$0xff]   ;;  %v5903_v29 = vld [vmem:[%s6856_s1 + $0xd0] sm:$0xff]   ;;  %v4857_v30 = vld [vmem:[%s6849_s12 + $0xa0] sm:$0xff]   ;;  %vm4263_vm6 = vcmask 1043459   ;;  %vm4265_vm7 = vcmask 1044484   ;;  %vm4267_vm8 = vcmask 1045509  }
 0x197   : > { %5353 = vperm.xlu0 %5346, %v6920_v42   ;;  %v6990_v25 = vpack.i.bf16 %v4797_v24, %v4796_v23  ;;  %v4859_v34 = vld [vmem:[%s6849_s12 + $0xb0] sm:$0xff]   ;;  %v5894_v35 = vld [vmem:[%s6856_s1 + $0x78] sm:$0xff]   ;;  %v5905_v39 = vld [vmem:[%s6856_s1 + $0xe0] sm:$0xff]   ;;  %vm4269_vm9 = vcmask 1046534   ;;  %vm4271_vm10 = vcmask 1047559   ;;  %p6269_p0 = pnand %p6268_p13, %p6262_p3 }
 0x198   : > { %v4800_v40 = vunpack.c.l.bf16 %v4859_v34  ;;  %v5906_v43 = vld [vmem:[%s6856_s1 + $0xe8] sm:$0xff]   ;;  %v5907_v44 = vld [vmem:[%s6856_s1 + $0xf0] sm:$0xff]   ;;  %v5908_v50 = vld [vmem:[%s6856_s1 + $0xf8] sm:$0xff]  }
 0x199   : > { %4981 = vmatmul.mubr.msk.bf16.gmra.mrb[4].mxu0 %vm1349_vm2, %v5880_v32  ;;  %v4793_v32 = vunpack.c.h.bf16 %v4857_v30  ;;  %v4851_v46 = vld [vmem:[%s6849_s12 + $0x70] sm:$0xff]   ;;  %v4850_v54 = vld [vmem:[%s6849_s12 + $0x68] sm:$0xff]   ;;  %v4852_v57 = vld [vmem:[%s6849_s12 + $0x78] sm:$0xff]  }
 0x19a   : > { %4984 = vmatprep.mubr.msk.bf16.mxu0 %vm1349_vm2, %v5881_v37  ;;  %5384 = vperm.xlu1 %5357, %v6917_v38   ;;  %v5904_v37 = vld [vmem:[%s6856_s1 + $0xd8] sm:$0xff]   ;;  %v4768_v48 = vunpack.c.l.bf16 %v4851_v46  ;;  %v4769_v49 = vunpack.c.h.bf16 %v4851_v46  ;;  %v4862_v56 = vld [vmem:[%s6849_s12 + $0xc8] sm:$0xff]   ;;  %v4764_v60 = vunpack.c.l.bf16 %v4850_v54  ;;  %v4765_v61 = vunpack.c.h.bf16 %v4850_v54  ;;  %v4853_v23 = vld [vmem:[%s6849_s12 + $0x80] sm:$0xff]  }
 0x19b   : > { %5369 = vperm.xlu0 %5346, %v6932_v53   ;;  %5013 = vmatmul.mubr.msk.bf16.gmra.mrb[4].mxu1 %vm1349_vm2, %v5896_v63  ;;  %v4812_v58 = vunpack.c.l.bf16 %v4862_v56  ;;  %v4813_v59 = vunpack.c.h.bf16 %v4862_v56  ;;  %v4854_v5 = vld [vmem:[%s6849_s12 + $0x88] sm:$0xff]   ;;  %v4864_v24 = vld [vmem:[%s6849_s12 + $0xd8] sm:$0xff]  }
 0x19c   : > { %5016 = vmatprep.mubr.msk.bf16.mxu1 %vm1349_vm2, %v5897_v1  ;;  %v5587_v63 = vpack.i.bf16 %v4765_v61, %v4764_v60  ;;  %v4772_v1 = vunpack.c.l.bf16 %v4852_v57  ;;  %v4780_v6 = vunpack.c.l.bf16 %v4854_v5  ;;  %v4868_v60 = vld [vmem:[%s6849_s12 + $0xf8] sm:$0xff]  }
 0x19d   : > { %v7055_v62 = vpack.i.bf16 %v4813_v59, %v4812_v58  ;;  %v4867_v59 = vld [vmem:[%s6849_s12 + $0xf0] sm:$0xff]  }
 0x19e   : > { %5394 = vperm.xlu1 %5357, %v6909_v31   ;;  %v4832_v61 = vunpack.c.l.bf16 %v4867_v59 }
 0x19f   : > { %5379 = vperm.xlu0 %5346, %v6937_v55  }
 0x1a1   : > { %4985 = vmatmul.mubr.msk.bf16.gmra.mrb[8].mxu0 %vm1349_vm2, %v5882_v51  ;;  %v4861_v51 = vld [vmem:[%s6849_s12 + $0xc0] sm:$0xff]  }
 0x1a2   : > { %4988 = vmatprep.mubr.msk.bf16.mxu0 %vm1349_vm2, %v5883_v52  ;;  %5404 = vperm.xlu1 %5357, %v6913_v36   ;;  %v7043_v52 = vpack.i.bf16 %v4769_v49, %v4768_v48 }
 0x1a3   : > { %5389 = vperm.xlu0 %5346, %v6953_v4   ;;  %5017 = vmatmul.mubr.msk.bf16.gmra.mrb[8].mxu1 %vm1349_vm2, %v5898_v10  ;;  %v5909_v10 = vld [vmem:[#allocation13] sm:$0xff]  }
 0x1a4   : > { %5020 = vmatprep.mubr.msk.bf16.mxu1 %vm1349_vm2, %v5899_v11  ;;  %v4856_v11 = vld [vmem:[%s6849_s12 + $0x98] sm:$0xff]   ;;  %5040 = vmatprep.subr.bf16.mxu1 %v5909_v10 }
 0x1a5   : > { %5041 = vmatpush3.bf16.msra.mxu1 %v5909_v10 }
 0x1a6   : > { %5413 = vset.pattern.permute.xlu1 %v8558_v8 }
 0x1a7   : > { %5415 = vperm.xlu1 %5413, %v5347_v41   ;;  %5399 = vperm.xlu0 %5346, %v6961_v9  }
 0x1a9   : > { %4989 = vmatmul.mubr.msk.bf16.gmra.mrb[12].mxu0 %vm1349_vm2, %v5884_v3  ;;  %v4773_v3 = vunpack.c.h.bf16 %v4852_v57 }
 0x1aa   : > { %4992 = vmatprep.mubr.msk.bf16.mxu0 %vm1349_vm2, %v5885_v7  ;;  %v4781_v7 = vunpack.c.h.bf16 %v4854_v5 }
 0x1ab   : > { %5419 = vset.pattern.permute.xlu1 %v8556_v13  ;;  %5409 = vperm.xlu0 %5346, %v6949_v2  }
 0x1ac   : > { %5421 = vperm.xlu1 %5419, %v5347_v41   ;;  %5021 = vmatmul.mubr.msk.bf16.gmra.mrb[12].mxu1 %vm1349_vm2, %v5900_v16  ;;  %v4801_v41 = vunpack.c.h.bf16 %v4859_v34  ;;  %v4863_v16 = vld [vmem:[%s6849_s12 + $0xd0] sm:$0xff]  }
 0x1ad   : > { %5024 = vmatprep.mubr.msk.bf16.mxu1 %vm1349_vm2, %v5901_v17  ;;  %v4817_v20 = vunpack.c.h.bf16 %v4863_v16 }
 0x1af   : > { %5436 = vset.pattern.permute.xlu0 %v8556_v13 }
 0x1b0   : > { %5426 = vperm.xlu1 %5419, %v6920_v42   ;;  %5438 = vperm.xlu0 %5436, %v6892_v12  }
 0x1b1   : > { %4993 = vmatmul.mubr.msk.bf16.gmra.mrb[16].mxu0 %vm1349_vm2, %v5886_v14  ;;  %v4789_v14 = vunpack.c.h.bf16 %v4856_v11 }
 0x1b2   : > { %4996 = vmatprep.mubr.msk.bf16.mxu0 %vm1349_vm2, %v5887_v15  ;;  %v5910_v15 = vld [vmem:[#allocation13 + $0x8] sm:$0xff]  }
 0x1b3   : > { %5042 = vmatprep.subr.bf16.mxu1 %v5910_v15 }
 0x1b4   : > { %5430 = vset.pattern.permute.xlu1 %v8558_v8  ;;  %5472 = vperm.xlu0 %5436, %v6937_v55  }
 0x1b5   : > { %5432 = vperm.xlu1 %5430, %v6898_v19   ;;  %5025 = vmatmul.mubr.msk.bf16.gmra.mrb[16].mxu1 %vm1349_vm2, %v5902_v27  ;;  %v4820_v27 = vunpack.c.l.bf16 %v4864_v24 }
 0x1b6   : > { %5028 = vmatprep.mubr.msk.bf16.mxu1 %vm1349_vm2, %v5903_v29  ;;  %5043 = vmatpush3.bf16.msra.mxu1 %v5910_v15  ;;  %v4776_v29 = vunpack.c.l.bf16 %v4853_v23 }
 0x1b8   : > { %5476 = vset.pattern.permute.xlu0 %v8558_v8 }
 0x1b9   : > { %4997 = vmatmul.mubr.msk.bf16.gmra.mrb[20].mxu0 %vm1349_vm2, %v5888_v18  ;;  %5442 = vset.pattern.permute.xlu1 %v8556_v13  ;;  %v4816_v18 = vunpack.c.l.bf16 %v4863_v16 }
 0x1ba   : > { %5000 = vmatprep.mubr.msk.bf16.mxu0 %vm1349_vm2, %v5891_v21  ;;  %5444 = vperm.xlu1 %5442, %v6898_v19   ;;  %v4792_v19 = vunpack.c.l.bf16 %v4857_v30  ;;  %v5911_v21 = vld [vmem:[#allocation13 + $0x10] sm:$0xff]   ;;  %v4777_v30 = vunpack.c.h.bf16 %v4853_v23 }
 0x1bb   : > { %5478 = vperm.xlu0 %5476, %v6920_v42   ;;  %v4860_v42 = vld [vmem:[%s6849_s12 + $0xb8] sm:$0xff]   ;;  %5044 = vmatprep.subr.bf16.mxu1 %v5911_v21 }
 0x1bc   : > { %v7009_v33 = vpack.i.bf16 %v4793_v32, %v4792_v19  ;;  %v4805_v45 = vunpack.c.h.bf16 %v4860_v42  ;;  %5045 = vmatpush3.bf16.msra.mxu1 %v5911_v21  ;;  %v4855_v19 = vld [vmem:[%s6849_s12 + $0x90] sm:$0xff]   ;;  %v5694_v34 = vpack.i.bf16 %v4777_v30, %v4776_v29 }
 0x1bd   : > { %5029 = vmatmul.mubr.msk.bf16.gmra.mrb[20].mxu1 %vm1349_vm2, %v5904_v37  ;;  %v4785_v37 = vunpack.c.h.bf16 %v4855_v19 }
 0x1be   : > { %5448 = vset.pattern.permute.xlu1 %v8558_v8  ;;  %5032 = vmatprep.mubr.msk.bf16.mxu1 %vm1349_vm2, %v5905_v39 }
 0x1bf   : > { %5450 = vperm.xlu1 %5448, %v6932_v53   ;;  %5483 = vperm.xlu0 %5476, %v6892_v12   ;;  %v7019_v12 = vpack.i.bf16 %v4801_v41, %v4800_v40  ;;  %v4865_v40 = vld [vmem:[%s6849_s12 + $0xe0] sm:$0xff]  }
 0x1c0   : > { %v4824_v41 = vunpack.c.l.bf16 %v4865_v40 }
 0x1c1   : > { %5001 = vmatmul.mubr.msk.bf16.gmra.mrb[24].mxu0 %vm1349_vm2, %v5892_v26  ;;  %v5912_v26 = vld [vmem:[#allocation13 + $0x18] sm:$0xff]  }
 0x1c2   : > { %5004 = vmatprep.mubr.msk.bf16.mxu0 %vm1349_vm2, %v5893_v28  ;;  %v4821_v28 = vunpack.c.h.bf16 %v4864_v24  ;;  %5046 = vmatprep.subr.bf16.mxu1 %v5912_v26 }
 0x1c3   : > { %5454 = vset.pattern.permute.xlu1 %v8556_v13  ;;  %5488 = vperm.xlu0 %5476, %v6903_v22  }
 0x1c4   : > { %5456 = vperm.xlu1 %5454, %v6932_v53   ;;  %v4809_v53 = vunpack.c.h.bf16 %v4861_v51  ;;  %v7083_v32 = vpack.i.bf16 %v4821_v28, %v4820_v27  ;;  %5047 = vmatpush3.bf16.msra.mxu1 %v5912_v26 }
 0x1c5   : > { %5033 = vmatmul.mubr.msk.bf16.gmra.mrb[24].mxu1 %vm1349_vm2, %v5906_v43  ;;  %v4866_v43 = vld [vmem:[%s6849_s12 + $0xe8] sm:$0xff]  }
 0x1c6   : > { %5036 = vmatprep.mubr.msk.bf16.mxu1 %vm1349_vm2, %v5907_v44 }
 0x1c7   : > { %5493 = vperm.xlu0 %5476, %v6937_v55  }
 0x1c8   : > { %5461 = vperm.xlu1 %5454, %v6903_v22   ;;  %v4804_v22 = vunpack.c.l.bf16 %v4860_v42  ;;  %v4825_v42 = vunpack.c.h.bf16 %v4865_v40 }
 0x1c9   : > { %5005 = vmatmul.mubr.msk.bf16.gmra.mrb[28].mxu0 %vm1349_vm2, %v5894_v35  ;;  %v4784_v35 = vunpack.c.l.bf16 %v4855_v19 }
 0x1ca   : > { %v7033_v47 = vpack.i.bf16 %v4805_v45, %v4804_v22  ;;  %v7097_v44 = vpack.i.bf16 %v4825_v42, %v4824_v41  ;;  %v4829_v22 = vunpack.c.h.bf16 %v4866_v43 }
 0x1cb   : > { %5510 = vperm.xlu0 %5476, %v6909_v31   ;;  %v7088_v39 = vpack.i.bf16 %v4785_v37, %v4784_v35 }
 0x1cc   : > { %5465 = vset.pattern.permute.xlu1 %v8558_v8  ;;  %8613 = vst [vmem:[#allocation33_spill] sm:$0xff] %v7097_v44 }
 0x1cd   : > { %5467 = vperm.xlu1 %5465, %v6917_v38   ;;  %5037 = vmatmul.mubr.msk.bf16.gmra.mrb[28].mxu1 %vm1349_vm2, %v5908_v50 }
 0x1cf   : > { %5526 = vperm.xlu0 %5476, %v6961_v9  }
 0x1d1   : > { %5497 = vset.pattern.permute.xlu1 %v8556_v13 }
 0x1d2   : > { %5499 = vperm.xlu1 %5497, %v6917_v38   ;;  %v4808_v38 = vunpack.c.l.bf16 %v4861_v51 }
 0x1d3   : > { %5549 = vperm.xlu0 %5476, %v6949_v2  }
 0x1d4   : > { %v7049_v55 = vpack.i.bf16 %v4809_v53, %v4808_v38 }
 0x1d6   : > { %5503 = vset.pattern.permute.xlu1 %v8558_v8 }
 0x1d7   : > { %5505 = vperm.xlu1 %5503, %v6953_v4   ;;  %5577 = vperm.xlu0 %5476, %v7043_v52  }
 0x1db   : > { %5514 = vset.pattern.permute.xlu1 %v8556_v13  ;;  %5581 = vset.pattern.permute.xlu0 %v8556_v13 }
 0x1dc   : > { %5516 = vperm.xlu1 %5514, %v6953_v4   ;;  %5583 = vperm.xlu0 %5581, %v6961_v9   ;;  %v7061_v4 = vpack.i.bf16 %v4773_v3, %v4772_v1  ;;  %v4788_v9 = vunpack.c.l.bf16 %v4856_v11  ;;  %v4836_v1 = vunpack.c.l.bf16 %v4868_v60  ;;  %v4837_v3 = vunpack.c.h.bf16 %v4868_v60 }
 0x1de   : > { %v7072_v17 = vpack.i.bf16 %v4789_v14, %v4788_v9 }
 0x1e0   : > { %5521 = vperm.xlu1 %5514, %v6909_v31   ;;  %5588 = vperm.xlu0 %5581, %v5587_v63   ;;  %v7066_v31 = vpack.i.bf16 %v4781_v7, %v4780_v6  ;;  %v7158_v7 = vpack.i.bf16 %v4837_v3, %v4836_v1 }
 0x1e2   : > { %8616 = vst [vmem:[#allocation36_spill] sm:$0xff] %v7158_v7 }
 0x1e4   : > { %5530 = vset.pattern.permute.xlu1 %v8558_v8  ;;  %5605 = vperm.xlu0 %5581, %v7061_v4  }
 0x1e5   : > { %5532 = vperm.xlu1 %5530, %v6913_v36  }
 0x1e8   : > { %5633 = vperm.xlu0 %5581, %v7066_v31  }
 0x1e9   : > { %5536 = vset.pattern.permute.xlu1 %v8556_v13 }
 0x1ea   : > { %5538 = vperm.xlu1 %5536, %v6913_v36   ;;  %v7077_v36 = vpack.i.bf16 %v4817_v20, %v4816_v18  ;;  %v799_v20 = vld [vmem:[#allocation7] sm:$0x7] }
 0x1ec   : > { %5661 = vperm.xlu0 %5581, %v7072_v17  }
 0x1ee   : > { %5542 = vset.pattern.permute.xlu1 %v8554_v0 }
 0x1ef   : > { %5544 = vperm.xlu1 %5542, %v5587_v63  }
 0x1f0   : > { %5689 = vperm.xlu0 %5581, %v6990_v25  }
 0x1f3   : > { %5553 = vset.pattern.permute.xlu1 %v8558_v8 }
 0x1f4   : > { %5555 = vperm.xlu1 %5553, %v5587_v63   ;;  %5693 = vset.pattern.permute.xlu0 %v8558_v8  ;;  %v4833_v63 = vunpack.c.h.bf16 %v4867_v59 }
 0x1f5   : > { %5695 = vperm.xlu0 %5693, %v5694_v34  }
 0x1f6   : > { %v7153_v6 = vpack.i.bf16 %v4833_v63, %v4832_v61 }
 0x1f8   : > { %5559 = vset.pattern.permute.xlu1 %v8556_v13  ;;  %8615 = vst [vmem:[#allocation35_spill] sm:$0xff] %v7153_v6 }
 0x1f9   : > { %5561 = vperm.xlu1 %5559, %v6949_v2   ;;  %5700 = vperm.xlu0 %5693, %v7088_v39   ;;  %v4828_v2 = vunpack.c.l.bf16 %v4866_v43 }
 0x1fb   : > { %v7102_v45 = vpack.i.bf16 %v4829_v22, %v4828_v2 }
 0x1fd   : > { %5565 = vset.pattern.permute.xlu1 %v8554_v0  ;;  %5705 = vperm.xlu0 %5693, %v7009_v33   ;;  %8614 = vst [vmem:[#allocation34_spill] sm:$0xff] %v7102_v45 }
 0x1fe   : > { %5567 = vperm.xlu1 %5565, %v7043_v52  }
 0x201   : > { %5721 = vperm.xlu0 %5693, %v7019_v12  }
 0x202   : > { %5572 = vperm.xlu1 %5565, %v7061_v4  }
 0x205   : > { %5749 = vperm.xlu0 %5693, %v7049_v55  }
 0x206   : > { %5592 = vset.pattern.permute.xlu1 %v8558_v8 }
 0x207   : > { %5594 = vperm.xlu1 %5592, %v7061_v4  }
 0x209   : > { %5777 = vperm.xlu0 %5693, %v7077_v36  }
 0x20b   : > { %5598 = vset.pattern.permute.xlu1 %v8556_v13 }
 0x20c   : > { %5600 = vperm.xlu1 %5598, %v7043_v52  }
 0x20d   : > { %v7107_v46 = vpop.permute.xlu1 %5359  ;;  %5781 = vset.pattern.permute.xlu0 %v8556_v13 }
 0x20e   : > { %5783 = vperm.xlu0 %5781, %v7033_v47   ;;  %v5362_v27 = vunpack.i.h.bf16 %v7107_v46  ;;  %v5361_v28 = vunpack.i.l.bf16 %v7107_v46 }
 0x210   : > { %5609 = vset.pattern.permute.xlu1 %v8554_v0 }
 0x211   : > { %v7111_v48 = vpop.permute.xlu1 %5364  ;;  %5611 = vperm.xlu1 %5609, %v5694_v34  }
 0x212   : > { %5788 = vperm.xlu0 %5781, %v7055_v62   ;;  %v7119_v50 = vpop.permute.xlu0 %5348  ;;  %v5366_v29 = vunpack.i.l.bf16 %v7111_v48  ;;  %v5367_v19 = vunpack.i.h.bf16 %v7111_v48 }
 0x213   : > { %v5351_v42 = vunpack.i.h.bf16 %v7119_v50 }
 0x215   : > { %v7115_v49 = vpop.permute.xlu1 %5374  ;;  %5616 = vperm.xlu1 %5609, %v7066_v31  }
 0x216   : > { %5805 = vperm.xlu0 %5781, %v7083_v32   ;;  %v7126_v52 = vpop.permute.xlu0 %5353  ;;  %v5377_v35 = vunpack.i.h.bf16 %v7115_v49 }
 0x217   : > { %v5356_v60 = vunpack.i.h.bf16 %v7126_v52  ;;  %v5355_v61 = vunpack.i.l.bf16 %v7126_v52 }
 0x219   : > { %v7121_v51 = vpop.permute.xlu1 %5384  ;;  %5620 = vset.pattern.permute.xlu1 %v8558_v8 }
 0x21a   : > { %5622 = vperm.xlu1 %5620, %v7066_v31   ;;  %5833 = vperm.xlu0 %5781, %v7102_v45   ;;  %v7132_v53 = vpop.permute.xlu0 %5369  ;;  %v1121_v31 = vlaneseq  ;;  %v5387_v46 = vunpack.i.h.bf16 %v7121_v51  ;;  %v5386_v48 = vunpack.i.l.bf16 %v7121_v51 }
 0x21b   : > { %v5372_v1 = vunpack.i.h.bf16 %v7132_v53  ;;  %v5371_v3 = vunpack.i.l.bf16 %v7132_v53 }
 0x21c   : > { %v1122_v15 = vshrl.u32 %v1121_v31, 7 }
 0x21d   : > { %v7128_v38 = vpop.permute.xlu1 %5394 }
 0x21e   : > { %5626 = vset.pattern.permute.xlu1 %v8556_v13  ;;  %5837 = vset.pattern.permute.xlu0 %v8558_v8  ;;  %v7138_v56 = vpop.permute.xlu0 %5379  ;;  %v1123_v18 = vsub.s32 0, %v1122_v15  ;;  %v2388_v21 = vsub.s32 2, %v1122_v15  ;;  %v2000_v23 = vsub.s32 1, %v1122_v15  ;;  %v5396_v59 = vunpack.i.l.bf16 %v7128_v38 }
 0x21f   : > { %5628 = vperm.xlu1 %5626, %v5694_v34   ;;  %5839 = vperm.xlu0 %5837, %v7097_v44   ;;  %v5376_v34 = vunpack.i.l.bf16 %v7115_v49  ;;  %v5397_v51 = vunpack.i.h.bf16 %v7128_v38  ;;  %v5382_v53 = vunpack.i.h.bf16 %v7138_v56 }
 0x220   : > { %v7187_v30 = vrot.slane %v799_v20, %v1123_v18  ;;  %v7193_v37 = vrot.slane %v799_v20, %v2388_v21  ;;  %v7196_v40 = vrot.slane %v799_v20, %v2000_v23 }
 0x221   : > { %v7134_v54 = vpop.permute.xlu1 %5404 }
 0x222   : > { %v7144_v58 = vpop.permute.xlu0 %5389  ;;  %8617 = vst [vmem:[#allocation37_spill] sm:$0xff] %v7187_v30  ;;  %v7204_v2 = vmul.f32 %v5366_v29, %v7187_v30  ;;  %v7207_v22 = vmul.f32 %v5361_v28, %v7187_v30  ;;  %v7216_v49 = vmul.f32 %v5367_v19, %v7187_v30  ;;  %v7226_v63 = vmul.f32 %v5377_v35, %v7187_v30 }
 0x223   : > { %5637 = vset.pattern.permute.xlu1 %v8554_v0  ;;  %5855 = vperm.xlu0 %5837, %v7153_v6   ;;  %v5407_v18 = vunpack.i.h.bf16 %v7134_v54  ;;  %v5406_v52 = vunpack.i.l.bf16 %v7134_v54  ;;  %v7242_v21 = vmul.f32 %v5351_v42, %v7187_v30  ;;  %v7247_v23 = vmul.f32 %v5386_v48, %v7187_v30 }
 0x224   : > { %5639 = vperm.xlu1 %5637, %v7088_v39   ;;  %v7255_v54 = vmul.f32 %v5355_v61, %v7187_v30  ;;  %v7258_v29 = vmul.f32 %v5356_v60, %v7187_v30  ;;  %v7261_v19 = vmul.f32 %v5396_v59, %v7187_v30  ;;  %v7268_v35 = vmul.f32 %v5371_v3, %v7187_v30 }
 0x225   : > { %8618 = vst [vmem:[#allocation38_spill] sm:$0xff] %v7247_v23  ;;  %v5392_v42 = vunpack.i.h.bf16 %v7144_v58  ;;  %v7281_v48 = vmul.f32 %v5406_v52, %v7187_v30  ;;  %v7284_v59 = vmul.f32 %v5407_v18, %v7187_v30 }
 0x226   : > { %v7142_v57 = vpop.permute.xlu1 %5415  ;;  %v7151_v4 = vpop.permute.xlu0 %5399  ;;  %8620 = vst [vmem:[#allocation40_spill] sm:$0xff] %v7261_v19 }
 0x227   : > { %5871 = vset.pattern.permute.xlu0 %v8556_v13  ;;  %v5417_v38 = vunpack.i.l.bf16 %v7142_v57  ;;  %v5418_v28 = vunpack.i.h.bf16 %v7142_v57  ;;  %v7271_v57 = vmul.f32 %v5372_v1, %v7187_v30  ;;  %8624 = vst [vmem:[#allocation44_spill] sm:$0xff] %v7281_v48  ;;  %8625 = vst [vmem:[#allocation45_spill] sm:$0xff] %v7284_v59  ;;  %v5402_v52 = vunpack.i.h.bf16 %v7151_v4 }
 0x228   : > { %5644 = vperm.xlu1 %5637, %v7072_v17   ;;  %5873 = vperm.xlu0 %5871, %v7158_v7   ;;  %v7315_v7 = vmul.f32 %v5392_v42, %v7187_v30 }
 0x229   : > { %8621 = vst [vmem:[#allocation41_spill] sm:$0xff] %v7271_v57  ;;  %v7300_v18 = vmul.f32 %v5418_v28, %v7196_v40 }
 0x22a   : > { %v7162_v11 = vpop.permute.xlu0 %5409  ;;  %8628 = vst [vmem:[#allocation48_spill] sm:$0xff] %v7315_v7  ;;  %v8631_v7 = vmov 1  }
 0x22b   : > { %v7149_v5 = vpop.permute.xlu1 %5421 }
 0x22c   : > { %5648 = vset.pattern.permute.xlu1 %v8558_v8  ;;  %v5424_v60 = vunpack.i.h.bf16 %v7149_v5  ;;  %v5423_v61 = vunpack.i.l.bf16 %v7149_v5  ;;  %v5412_v5 = vunpack.i.h.bf16 %v7162_v11 }
 0x22d   : > { %5650 = vperm.xlu1 %5648, %v7072_v17  }
 0x22e   : > { %v7321_v6 = vmul.f32 %v5423_v61, %v7193_v37 }
 0x22f   : > { %v7160_v10 = vpop.permute.xlu1 %5426  ;;  %v7169_v14 = vpop.permute.xlu0 %5438 }
 0x230   : > { %v5429_v3 = vunpack.i.h.bf16 %v7160_v10  ;;  %v5441_v28 = vunpack.i.h.bf16 %v7169_v14 }
 0x231   : > { %5654 = vset.pattern.permute.xlu1 %v8556_v13 }
 0x232   : > { %5656 = vperm.xlu1 %5654, %v7088_v39   ;;  %v5350_v39 = vunpack.i.l.bf16 %v7119_v50  ;;  %v7219_v50 = vmul.f32 %v5376_v34, %v7187_v30  ;;  %v7326_v59 = vmul.f32 %v5429_v3, %v7193_v37 }
 0x233   : > { %v7176_v17 = vpop.permute.xlu0 %5472 }
 0x234   : > { %v7167_v9 = vpop.permute.xlu1 %5432  ;;  %v7234_v15 = vmul.f32 %v5350_v39, %v7187_v30  ;;  %v7274_v39 = vmul.f32 %v5397_v51, %v7187_v30  ;;  %v7291_v51 = vmul.f32 %v5417_v38, %v7196_v40  ;;  %v5411_v38 = vunpack.i.l.bf16 %v7162_v11 }
 0x236   : > { %5665 = vset.pattern.permute.xlu1 %v8554_v0  ;;  %8622 = vst [vmem:[#allocation42_spill] sm:$0xff] %v7274_v39  ;;  %v7345_v3 = vmul.f32 %v5411_v38, %v7187_v30 }
 0x237   : > { %5667 = vperm.xlu1 %5665, %v7009_v33  }
 0x238   : > { %8632 = vst [vmem:[#allocation51_spill] sm:$0xff] %v7345_v3 }
 0x239   : > { %v7174_v16 = vpop.permute.xlu1 %5444 }
 0x23a   : > { %v7181_v26 = vpop.permute.xlu0 %5478  ;;  %v5447_v11 = vunpack.i.h.bf16 %v7174_v16 }
 0x23b   : > { %5672 = vperm.xlu1 %5665, %v6990_v25  }
 0x23e   : > { %v7179_v24 = vpop.permute.xlu1 %5450  ;;  %v7198_v41 = vpop.permute.xlu0 %5483 }
 0x23f   : > { %5676 = vset.pattern.permute.xlu1 %v8558_v8  ;;  %v5435_v8 = vunpack.i.h.bf16 %v7167_v9  ;;  %v5453_v38 = vunpack.i.h.bf16 %v7179_v24 }
 0x240   : > { %5678 = vperm.xlu1 %5676, %v6990_v25   ;;  %v7210_v25 = vmul.f32 %v5362_v27, %v7187_v30  ;;  %v7250_v27 = vmul.f32 %v5387_v46, %v7187_v30 }
 0x242   : > { %v7231_v31 = vpop.permute.xlu0 %5488  ;;  %8619 = vst [vmem:[#allocation39_spill] sm:$0xff] %v7250_v27  ;;  %v8642_v27 = vmov 0  }
 0x243   : > { %v7201_v43 = vpop.permute.xlu1 %5456  ;;  %v5490_v19 = vunpack.i.l.bf16 %v7231_v31 }
 0x244   : > { %5682 = vset.pattern.permute.xlu1 %v8556_v13 }
 0x245   : > { %5684 = vperm.xlu1 %5682, %v7009_v33   ;;  %v5381_v33 = vunpack.i.l.bf16 %v7138_v56  ;;  %v5391_v56 = vunpack.i.l.bf16 %v7144_v58  ;;  %v7294_v58 = vmul.f32 %v5382_v53, %v7187_v30 }
 0x246   : > { %v7265_v34 = vpop.permute.xlu0 %5493 }
 0x247   : > { %v7239_v20 = vpop.permute.xlu1 %5461  ;;  %v7278_v46 = vmul.f32 %v5381_v33, %v7187_v30  ;;  %8626 = vst [vmem:[#allocation46_spill] sm:$0xff] %v7294_v58  ;;  %v5401_v33 = vunpack.i.l.bf16 %v7151_v4  ;;  %v7309_v53 = vmul.f32 %v5391_v56, %v7187_v30  ;;  %v5434_v4 = vunpack.i.l.bf16 %v7167_v9 }
 0x248   : > { %v5440_v56 = vunpack.i.l.bf16 %v7169_v14  ;;  %v5446_v9 = vunpack.i.l.bf16 %v7174_v16  ;;  %v5475_v14 = vunpack.i.h.bf16 %v7176_v17  ;;  %v7348_v16 = vmul.f32 %v5412_v5, %v7187_v30 }
 0x249   : > { %5709 = vset.pattern.permute.xlu1 %v8554_v0  ;;  %8623 = vst [vmem:[#allocation43_spill] sm:$0xff] %v7278_v46  ;;  %v5428_v0 = vunpack.i.l.bf16 %v7160_v10  ;;  %8627 = vst [vmem:[#allocation47_spill] sm:$0xff] %v7309_v53  ;;  %v7318_v10 = vmul.f32 %v5424_v60, %v7193_v37  ;;  %v7332_v42 = vmul.f32 %v5401_v33, %v7187_v30  ;;  %v5452_v5 = vunpack.i.l.bf16 %v7179_v24 }
 0x24a   : > { %5711 = vperm.xlu1 %5709, %v7019_v12   ;;  %v7306_v13 = vpop.permute.xlu0 %5510  ;;  %v7335_v60 = vmul.f32 %v5402_v52, %v7187_v30  ;;  %8633 = vst [vmem:[#allocation52_spill] sm:$0xff] %v7348_v16  ;;  %v7351_v33 = vmul.f32 %v5441_v28, %v7193_v37  ;;  %v7356_v52 = vmul.f32 %v5434_v4, %v7196_v40  ;;  %v5480_v4 = vunpack.i.l.bf16 %v7181_v26 }
 0x24b   : > { %8629 = vst [vmem:[#allocation49_spill] sm:$0xff] %v7332_v42  ;;  %v7338_v61 = vmul.f32 %v5428_v0, %v7193_v37  ;;  %v5474_v0 = vunpack.i.l.bf16 %v7176_v17  ;;  %v7362_v42 = vmul.f32 %v5447_v11, %v7193_v37  ;;  %v7367_v28 = vmul.f32 %v5440_v56, %v7193_v37 }
 0x24c   : > { %v7288_v1 = vpop.permute.xlu1 %5467  ;;  %8630 = vst [vmem:[#allocation50_spill] sm:$0xff] %v7335_v60  ;;  %v7359_v60 = vmul.f32 %v5435_v8, %v7196_v40  ;;  %v5481_v17 = vunpack.i.h.bf16 %v7181_v26  ;;  %v5486_v8 = vunpack.i.h.bf16 %v7198_v41  ;;  %v5459_v16 = vunpack.i.h.bf16 %v7201_v43 }
 0x24d   : > { %v5458_v11 = vunpack.i.l.bf16 %v7201_v43  ;;  %v7378_v30 = vmul.f32 %v5475_v14, %v7193_v37  ;;  %v5485_v24 = vunpack.i.l.bf16 %v7198_v41  ;;  %v7383_v39 = vmul.f32 %v5474_v0, %v7193_v37 }
 0x24e   : > { %5716 = vperm.xlu1 %5709, %v7033_v47   ;;  %v7342_v45 = vpop.permute.xlu0 %5526  ;;  %v8636_v53 = vmov 2   ;;  %v5491_v26 = vunpack.i.h.bf16 %v7231_v31  ;;  %v7389_v43 = vmul.f32 %v5453_v38, %v7196_v40  ;;  %v7392_v14 = vmul.f32 %v5452_v5, %v7196_v40 }
 0x24f   : > { %8634 = vst [vmem:[#allocation53_spill] sm:$0xff] %v7378_v30  ;;  %8635 = vst [vmem:[#allocation54_spill] sm:$0xff] %v7383_v39  ;;  %v5463_v41 = vunpack.i.l.bf16 %v7239_v20  ;;  %v5496_v30 = vunpack.i.h.bf16 %v7265_v34  ;;  %v7398_v0 = vmul.f32 %v5481_v17, %v7196_v40  ;;  %v7401_v44 = vmul.f32 %v5480_v4, %v7196_v40 }
 0x250   : > { %8637 = vst [vmem:[#allocation55_spill] sm:$0xff] %v7389_v43  ;;  %v7404_v31 = vmul.f32 %v5486_v8, %v7196_v40  ;;  %v5495_v38 = vunpack.i.l.bf16 %v7265_v34  ;;  %v7408_v5 = vmul.f32 %v5459_v16, %v7193_v37  ;;  %v7415_v58 = vmul.f32 %v5485_v24, %v7196_v40 }
 0x251   : > { %v7329_v48 = vpop.permute.xlu1 %5499  ;;  %v5469_v8 = vunpack.i.l.bf16 %v7288_v1  ;;  %v7422_v34 = vmul.f32 %v5491_v26, %v7196_v40  ;;  %v7425_v16 = vmul.f32 %v5490_v19, %v7196_v40  ;;  %v7432_v24 = vmul.f32 %v5496_v30, %v7196_v40 }
 0x252   : > { %5725 = vset.pattern.permute.xlu1 %v8631_v7  ;;  %v5550_v56 = vpop.permute.xlu0 %5549  ;;  %8638 = vst [vmem:[#allocation56_spill] sm:$0xff] %v7408_v5  ;;  %v5512_v46 = vunpack.i.l.bf16 %v7306_v13  ;;  %v5501_v26 = vunpack.i.l.bf16 %v7329_v48  ;;  %v7440_v19 = vmul.f32 %v5495_v38, %v7196_v40  ;;  %v5528_v5 = vunpack.i.l.bf16 %v7342_v45 }
 0x253   : > { %5727 = vperm.xlu1 %5725, %v7033_v47   ;;  %v7370_v47 = vmul.f32 %v5446_v9, %v7193_v37  ;;  %v5464_v9 = vunpack.i.h.bf16 %v7239_v20  ;;  %v7411_v20 = vmul.f32 %v5458_v11, %v7193_v37  ;;  %8641 = vst [vmem:[#allocation59_spill] sm:$0xff] %v7422_v34  ;;  %v7428_v11 = vmul.f32 %v5463_v41, %v7193_v37 }
 0x254   : > { %8643 = vst [vmem:[#allocation60_spill] sm:$0xff] %v7432_v24  ;;  %8644 = vst [vmem:[#allocation61_spill] sm:$0xff] %v7440_v19  ;;  %v5529_v41 = vunpack.i.h.bf16 %v7342_v45  ;;  %v5552_v43 = vunpack.i.h.bf16 %v5550_v56  ;;  %v7454_v19 = vmul.f32 %v5512_v46, %v7196_v40  ;;  %v7460_v45 = vmul.f32 %v5501_v26, %v7193_v37 }
 0x255   : > { %8639 = vst [vmem:[#allocation57_spill] sm:$0xff] %v7411_v20  ;;  %v7418_v4 = vmul.f32 %v5464_v9, %v7193_v37  ;;  %v5513_v9 = vunpack.i.h.bf16 %v7306_v13  ;;  %v7448_v13 = vmul.f32 %v5469_v8, %v7196_v40 }
 0x256   : > { %v5506_v3 = vpop.permute.xlu1 %5505  ;;  %v5578_v17 = vpop.permute.xlu0 %5577  ;;  %v7476_v26 = vmul.f32 %v5552_v43, %v7196_v40 }
 0x257   : > { %5731 = vset.pattern.permute.xlu1 %v8636_v53  ;;  %8640 = vst [vmem:[#allocation58_spill] sm:$0xff] %v7418_v4  ;;  %v5508_v30 = vunpack.i.h.bf16 %v5506_v3  ;;  %v5507_v24 = vunpack.i.l.bf16 %v5506_v3  ;;  %v5580_v34 = vunpack.i.h.bf16 %v5578_v17  ;;  %v7451_v38 = vmul.f32 %v5513_v9, %v7196_v40 }
 0x258   : > { %5733 = vperm.xlu1 %5731, %v7019_v12   ;;  %v5470_v12 = vunpack.i.h.bf16 %v7288_v1  ;;  %v5502_v1 = vunpack.i.h.bf16 %v7329_v48  ;;  %v5551_v48 = vunpack.i.l.bf16 %v5550_v56  ;;  %v7464_v56 = vmul.f32 %v5529_v41, %v7196_v40  ;;  %8650 = vst [vmem:[#allocation67_spill] sm:$0xff] %v7476_v26 }
 0x259   : > { %8646 = vst [vmem:[#allocation63_spill] sm:$0xff] %v7451_v38  ;;  %v7470_v9 = vmul.f32 %v5507_v24, %v7196_v40  ;;  %v7482_v41 = vmul.f32 %v5580_v34, %v7196_v40 }
 0x25a   : > { %v7444_v23 = vmul.f32 %v5470_v12, %v7196_v40  ;;  %v5579_v12 = vunpack.i.l.bf16 %v5578_v17  ;;  %v7457_v3 = vmul.f32 %v5502_v1, %v7193_v37  ;;  %8647 = vst [vmem:[#allocation64_spill] sm:$0xff] %v7464_v56  ;;  %v7473_v17 = vmul.f32 %v5528_v5, %v7196_v40 }
 0x25b   : > { %v5517_v39 = vpop.permute.xlu1 %5516  ;;  %v5584_v20 = vpop.permute.xlu0 %5583  ;;  %8652 = vst [vmem:[#allocation69_spill] sm:$0xff] %v7482_v41 }
 0x25c   : > { %5737 = vset.pattern.permute.xlu1 %v8642_v27  ;;  %8645 = vst [vmem:[#allocation62_spill] sm:$0xff] %v7444_v23  ;;  %v5519_v57 = vunpack.i.h.bf16 %v5517_v39  ;;  %v5518_v8 = vunpack.i.l.bf16 %v5517_v39  ;;  %v7467_v23 = vmul.f32 %v5508_v30, %v7196_v40  ;;  %8649 = vst [vmem:[#allocation66_spill] sm:$0xff] %v7473_v17  ;;  %v7479_v39 = vmul.f32 %v5551_v48, %v7196_v40 }
 0x25d   : > { %5739 = vperm.xlu1 %5737, %v7049_v55   ;;  %v5586_v17 = vunpack.i.h.bf16 %v5584_v20  ;;  %v5585_v41 = vunpack.i.l.bf16 %v5584_v20 }
 0x25e   : > { %8648 = vst [vmem:[#allocation65_spill] sm:$0xff] %v7467_v23  ;;  %8651 = vst [vmem:[#allocation68_spill] sm:$0xff] %v7479_v39  ;;  %v7485_v56 = vmul.f32 %v5519_v57, %v7193_v37  ;;  %v7492_v43 = vmul.f32 %v5518_v8, %v7193_v37 }
 0x25f   : > { %v5522_v4 = vpop.permute.xlu1 %5521  ;;  %v5589_v30 = vpop.permute.xlu0 %5588 }
 0x260   : > { %v5524_v46 = vunpack.i.h.bf16 %v5522_v4  ;;  %v5523_v1 = vunpack.i.l.bf16 %v5522_v4  ;;  %8653 = vst [vmem:[#allocation70_spill] sm:$0xff] %v7485_v56  ;;  %v7489_v4 = vmul.f32 %v5579_v12, %v7196_v40  ;;  %v5591_v26 = vunpack.i.h.bf16 %v5589_v30 }
 0x261   : > { %5744 = vperm.xlu1 %5737, %v7055_v62  }
 0x262   : > { %8654 = vst [vmem:[#allocation71_spill] sm:$0xff] %v7489_v4  ;;  %v7497_v57 = vmul.f32 %v5524_v46, %v7193_v37  ;;  %v5590_v4 = vunpack.i.l.bf16 %v5589_v30  ;;  %v7503_v8 = vmul.f32 %v5523_v1, %v7193_v37 }
 0x264   : > { %v4978_v38 = vpop.f32.mrb[0].mxu0  ;;  %v5533_v23 = vpop.permute.xlu1 %5532 }
 0x265   : > { %v1496_v24 = vadd.f32 %v4978_v38, %v7255_v54  ;;  %v1487_v5 = vpop.f32.mrb[1].mxu0  ;;  %5753 = vset.pattern.permute.xlu1 %v8631_v7  ;;  %v5534_v56 = vunpack.i.l.bf16 %v5533_v23 }
 0x266   : > { %v1488_v48 = vadd.f32 %v1487_v5, %v7234_v15  ;;  %v4979_v34 = vpop.f32.mrb[2].mxu0  ;;  %5755 = vperm.xlu1 %5753, %v7055_v62   ;;  %v7505_v15 = vld [vmem:[#allocation10] ss:$0 sm:$0xff]  ;;  %v5535_v5 = vunpack.i.h.bf16 %v5533_v23  ;;  %v7514_v62 = vld [vmem:[#allocation11] ss:$0 sm:$0xff] }
 0x267   : > { %v2068_v54 = vadd.f32 %v7401_v44, %v1496_v24  ;;  %v1499_v38 = vadd.f32 %v4979_v34, %v7258_v29  ;;  %v1490_v12 = vpop.f32.mrb[3].mxu0  ;;  %v7512_v29 = vmul.f32 %v5586_v17, %v7193_v37  ;;  %v7519_v34 = vmul.f32 %v5585_v41, %v7193_v37 }
 0x268   : > { %v2066_v20 = vadd.f32 %v7291_v51, %v1488_v48  ;;  %v1491_v39 = vadd.f32 %v1490_v12, %v7242_v21  ;;  %v7522_v21 = vmul.f32 %v5591_v26, %v7193_v37  ;;  %v5606_v51 = vpop.permute.xlu0 %5605  ;;  %v7538_v48 = vmul.f32 %v5534_v56, %v7196_v40 }
 0x269   : > { %v2456_v46 = vadd.f32 %v7338_v61, %v2068_v54  ;;  %v2069_v44 = vadd.f32 %v7398_v0, %v1499_v38  ;;  %v5539_v24 = vpop.permute.xlu1 %5538  ;;  %v7528_v0 = vmul.f32 %v5590_v4, %v7193_v37  ;;  %v5607_v41 = vunpack.i.l.bf16 %v5606_v51 }
 0x26a   : > { %v2454_v1 = vadd.f32 %v7321_v6, %v2066_v20  ;;  %v2067_v30 = vadd.f32 %v7300_v18, %v1491_v39  ;;  %5759 = vset.pattern.permute.xlu1 %v8636_v53  ;;  %v5608_v6 = vunpack.i.h.bf16 %v5606_v51  ;;  %v7531_v18 = vmul.f32 %v5535_v5, %v7196_v40 }
 0x26b   : > { %v2527_v23 = vmul.f32 %v7505_v15, %v2456_v46  ;;  %v2457_v61 = vadd.f32 %v7326_v59, %v2069_v44  ;;  %5761 = vperm.xlu1 %5759, %v7049_v55   ;;  %v5541_v54 = vunpack.i.h.bf16 %v5539_v24  ;;  %v5540_v44 = vunpack.i.l.bf16 %v5539_v24  ;;  %v7559_v24 = vpop.f32.mrb[0].mxu1 }
 0x26c   : > { %v2525_v17 = vmul.f32 %v7505_v15, %v2454_v1  ;;  %v2455_v26 = vadd.f32 %v7318_v10, %v2067_v30  ;;  %v4982_v39 = vpop.f32.mrb[4].mxu0  ;;  %v7550_v51 = vmul.f32 %v5608_v6, %v7193_v37  ;;  %v7563_v6 = vpop.f32.mrb[1].mxu1 }
 0x26d   : > { %v2598_v59 = vadd.f32 %v7514_v62, %v2527_v23  ;;  %v2528_v4 = vmul.f32 %v7505_v15, %v2457_v61  ;;  %v1503_v38 = vpop.f32.mrb[5].mxu0  ;;  %v1512_v20 = vadd.f32 %v4982_v39, %v7204_v2 }
 0x26e   : > { %v2596_v12 = vadd.f32 %v7514_v62, %v2525_v17  ;;  %v2526_v5 = vmul.f32 %v7505_v15, %v2455_v26  ;;  %v1504_v10 = vadd.f32 %v1503_v38, %v7207_v22  ;;  %v4983_v55 = vpop.f32.mrb[6].mxu0  ;;  %v7547_v56 = vpop.permute.xlu1 %5544  ;;  %v7557_v22 = vmul.f32 %v5607_v41, %v7193_v37 }
 0x26f   : > { %v2599_v46 = vadd.f32 %v7514_v62, %v2528_v4  ;;  %v1515_v1 = vadd.f32 %v4983_v55, %v7216_v49  ;;  %v1506_v30 = vpop.f32.mrb[7].mxu0  ;;  %v2072_v61 = vadd.f32 %v7356_v52, %v1512_v20  ;;  %5765 = vset.pattern.permute.xlu1 %v8642_v27  ;;  %v2662_v49 = vmax.f32 %v2598_v59, 0.0  ;;  %v7568_v41 = vpop.permute.xlu0 %5633 }
 0x270   : > { %v2597_v23 = vadd.f32 %v7514_v62, %v2526_v5  ;;  %v2070_v2 = vadd.f32 %v7415_v58, %v1504_v10  ;;  %v2660_v17 = vmax.f32 %v2596_v12, 0.0  ;;  %5767 = vperm.xlu1 %5765, %v7077_v36   ;;  %v1507_v38 = vadd.f32 %v1506_v30, %v7210_v25  ;;  %v7570_v5 = vpop.f32.mrb[2].mxu1 }
 0x271   : > { %v2663_v26 = vmax.f32 %v2599_v46, 0.0  ;;  %v2073_v39 = vadd.f32 %v7359_v60, %v1515_v1  ;;  %v2460_v52 = vadd.f32 %v7370_v47, %v2072_v61  ;;  %v7573_v12 = vmul.f32 %v5541_v54, %v7193_v37  ;;  %v7577_v10 = vpop.f32.mrb[3].mxu1 }
 0x272   : > { %v2661_v4 = vmax.f32 %v2597_v23, 0.0  ;;  %v2458_v58 = vadd.f32 %v7367_v28, %v2070_v2  ;;  %v5636_v20 = vunpack.i.h.bf16 %v7568_v41  ;;  %v2071_v25 = vadd.f32 %v7404_v31, %v1507_v38 }
 0x273   : > { %v2725_v59 = vpack.c.bf16 %v2663_v26, %v2662_v49  ;;  %v2461_v60 = vadd.f32 %v7362_v42, %v2073_v39  ;;  %v2531_v47 = vmul.f32 %v7505_v15, %v2460_v52  ;;  %v7582_v55 = vpop.permute.xlu1 %5555  ;;  %v7585_v30 = vmul.f32 %v5540_v44, %v7193_v37 }
 0x274   : > { %v2529_v28 = vmul.f32 %v7505_v15, %v2458_v58  ;;  %v4986_v46 = vpop.f32.mrb[8].mxu0  ;;  %v2724_v1 = vpack.c.bf16 %v2661_v4, %v2660_v17  ;;  %5772 = vperm.xlu1 %5765, %v7083_v32   ;;  %v2459_v49 = vadd.f32 %v7351_v33, %v2071_v25  ;;  %v7601_v52 = vmul.f32 %v5636_v20, %v7193_v37  ;;  %v8656_v25 = vld [vmem:[#allocation41_spill] sm:$0xff] }
 0x275   : > { %v2532_v54 = vmul.f32 %v7505_v15, %v2461_v60  ;;  %v1528_v23 = vadd.f32 %v4986_v46, %v7219_v50  ;;  %v1519_v61 = vpop.f32.mrb[9].mxu0  ;;  %v2602_v2 = vadd.f32 %v7514_v62, %v2531_v47  ;;  %v7606_v60 = vpop.f32.mrb[4].mxu1 }
 0x276   : > { %v2600_v31 = vadd.f32 %v7514_v62, %v2529_v28  ;;  %v1520_v17 = vadd.f32 %v1519_v61, %v7268_v35  ;;  %v4987_v26 = vpop.f32.mrb[10].mxu0  ;;  %5048 = vmatprep.mubr.msk.bf16.mxu1 %vm2788_vm3, %v2724_v1  ;;  %v2530_v33 = vmul.f32 %v7505_v15, %v2459_v49  ;;  %v5558_v35 = vunpack.i.h.bf16 %v7582_v55  ;;  %8655 = vst [vmem:[#allocation72_spill] sm:$0xff] %v7606_v60  ;;  %v8659_v49 = vld [vmem:[#allocation55_spill] sm:$0xff]  ;;  %v8679_v60 = vld [vmem:[#allocation42_spill] sm:$0xff] }
 0x277   : > { %v2603_v44 = vadd.f32 %v7514_v62, %v2532_v54  ;;  %v2076_v50 = vadd.f32 %v7425_v16, %v1528_v23  ;;  %v1522_v4 = vpop.f32.mrb[11].mxu0  ;;  %5049 = vmatmul.mubr.msk.bf16.vlgmr.msra.gmra.mrb[32].mxu1 %vm2788_vm3, %v2725_v59  ;;  %v2666_v58 = vmax.f32 %v2602_v2, 0.0  ;;  %v1531_v16 = vadd.f32 %v4987_v26, %v7226_v63  ;;  %v8657_v23 = vld [vmem:[#allocation57_spill] sm:$0xff]  ;;  %v8658_v2 = vld [vmem:[#allocation59_spill] sm:$0xff] }
 0x278   : > { %v2074_v38 = vadd.f32 %v7392_v14, %v1520_v17  ;;  %v1523_v46 = vadd.f32 %v1522_v4, %v8656_v25  ;;  %5792 = vset.pattern.permute.xlu1 %v8631_v7  ;;  %v5562_v59 = vpop.permute.xlu1 %5561  ;;  %v2664_v20 = vmax.f32 %v2600_v31, 0.0  ;;  %v2601_v1 = vadd.f32 %v7514_v62, %v2530_v33  ;;  %v7616_v14 = vpop.f32.mrb[5].mxu1 }
 0x279   : > { %v2667_v47 = vmax.f32 %v2603_v44, 0.0  ;;  %v2464_v28 = vadd.f32 %v7428_v11, %v2076_v50  ;;  %v5557_v54 = vunpack.i.l.bf16 %v7582_v55  ;;  %5794 = vperm.xlu1 %5792, %v7083_v32   ;;  %v2077_v63 = vadd.f32 %v8658_v2, %v1531_v16  ;;  %v7621_v44 = vpop.f32.mrb[6].mxu1  ;;  %v8661_v32 = vld [vmem:[#allocation58_spill] sm:$0xff] }
 0x27a   : > { %v2462_v61 = vadd.f32 %v8657_v23, %v2074_v38  ;;  %v2075_v17 = vadd.f32 %v8659_v49, %v1523_v46  ;;  %8660 = vst [vmem:[#allocation41_spill] sm:$0xff] %v7621_v44  ;;  %v2665_v31 = vmax.f32 %v2601_v1, 0.0  ;;  %v5564_v4 = vunpack.i.h.bf16 %v5562_v59  ;;  %v7624_v38 = vpop.f32.mrb[7].mxu1  ;;  %v8662_v23 = vld [vmem:[#allocation56_spill] sm:$0xff]  ;;  %v8664_v1 = vld [vmem:[#allocation43_spill] sm:$0xff] }
 0x27b   : > { %v2535_v11 = vmul.f32 %v7505_v15, %v2464_v28  ;;  %v2727_v26 = vpack.c.bf16 %v2667_v47, %v2666_v58  ;;  %v5563_v55 = vunpack.i.l.bf16 %v5562_v59  ;;  %v2465_v25 = vadd.f32 %v8661_v32, %v2077_v63  ;;  %v8663_v28 = vld [vmem:[#allocation38_spill] sm:$0xff] }
 0x27c   : > { %v2533_v50 = vmul.f32 %v7505_v15, %v2462_v61  ;;  %v4990_v33 = vpop.f32.mrb[12].mxu0  ;;  %v2463_v42 = vadd.f32 %v8662_v23, %v2075_v17  ;;  %v5635_v46 = vunpack.i.l.bf16 %v7568_v41  ;;  %v7631_v58 = vmul.f32 %v5558_v35, %v7196_v40 }
 0x27d   : > { %v1544_v39 = vadd.f32 %v4990_v33, %v8663_v28  ;;  %v1535_v16 = vpop.f32.mrb[13].mxu0  ;;  %v2606_v47 = vadd.f32 %v7514_v62, %v2535_v11  ;;  %5798 = vset.pattern.permute.xlu1 %v8636_v53  ;;  %v7636_v59 = vpop.permute.xlu1 %5567  ;;  %v2726_v63 = vpack.c.bf16 %v2665_v31, %v2664_v20  ;;  %v2536_v17 = vmul.f32 %v7505_v15, %v2465_v25  ;;  %v8665_v20 = vld [vmem:[#allocation61_spill] sm:$0xff]  ;;  %v8668_v25 = vld [vmem:[#allocation54_spill] sm:$0xff] }
 0x27e   : > { %v1536_v61 = vadd.f32 %v1535_v16, %v8664_v1  ;;  %v4991_v2 = vpop.f32.mrb[14].mxu0  ;;  %v2604_v49 = vadd.f32 %v7514_v62, %v2533_v50  ;;  %v2534_v33 = vmul.f32 %v7505_v15, %v2463_v42  ;;  %5800 = vperm.xlu1 %5798, %v7077_v36   ;;  %v7644_v11 = vmul.f32 %v5557_v54, %v7196_v40  ;;  %v7659_v54 = vpop.f32.mrb[8].mxu1  ;;  %v8669_v28 = vld [vmem:[#allocation46_spill] sm:$0xff] }
 0x27f   : > { %v2080_v41 = vadd.f32 %v7448_v13, %v1544_v39  ;;  %v1538_v35 = vpop.f32.mrb[15].mxu0  ;;  %v7647_v32 = vmul.f32 %v5564_v4, %v7193_v37  ;;  %v7650_v23 = vmul.f32 %v5563_v55, %v7193_v37  ;;  %5052 = vmatprep.mubr.msk.bf16.mxu1 %vm2788_vm3, %v2726_v63  ;;  %v2607_v42 = vadd.f32 %v7514_v62, %v2536_v17  ;;  %v8666_v39 = vld [vmem:[#allocation39_spill] sm:$0xff]  ;;  %v7668_v63 = vpop.f32.mrb[9].mxu1 }
 0x280   : > { %v2078_v31 = vadd.f32 %v8665_v20, %v1536_v61  ;;  %v2605_v13 = vadd.f32 %v7514_v62, %v2534_v33  ;;  %v1547_v50 = vadd.f32 %v4991_v2, %v8666_v39  ;;  %5053 = vmatmul.mubr.msk.bf16.gmra.mrb[36].mxu1 %vm2788_vm3, %v2727_v26  ;;  %8667 = vst [vmem:[#allocation57_spill] sm:$0xff] %v7659_v54  ;;  %v2670_v4 = vmax.f32 %v2606_v47, 0.0  ;;  %v8671_v2 = vld [vmem:[#allocation62_spill] sm:$0xff]  ;;  %v7672_v26 = vpop.f32.mrb[10].mxu1  ;;  %v8674_v39 = vld [vmem:[#allocation33_spill] sm:$0xff]  ;;  %v8678_v20 = vld [vmem:[#allocation47_spill] sm:$0xff] }
 0x281   : > { %v2468_v36 = vadd.f32 %v7460_v45, %v2080_v41  ;;  %v1539_v16 = vadd.f32 %v1538_v35, %v8669_v28  ;;  %v7663_v1 = vpop.permute.xlu1 %5572  ;;  %v7666_v61 = vmul.f32 %v5635_v46, %v7193_v37  ;;  %8670 = vst [vmem:[#allocation59_spill] sm:$0xff] %v7668_v63  ;;  %v2668_v17 = vmax.f32 %v2604_v49, 0.0  ;;  %8672 = vst [vmem:[#allocation55_spill] sm:$0xff] %v7672_v26  ;;  %v7679_v49 = vpop.f32.mrb[11].mxu1 }
 0x282   : > { %v2466_v55 = vadd.f32 %v8668_v25, %v2078_v31  ;;  %v2671_v45 = vmax.f32 %v2607_v42, 0.0  ;;  %v2669_v33 = vmax.f32 %v2605_v13, 0.0  ;;  %v2081_v41 = vadd.f32 %v8671_v2, %v1547_v50  ;;  %5809 = vset.pattern.permute.xlu1 %v8642_v27  ;;  %v8673_v31 = vld [vmem:[#allocation60_spill] sm:$0xff]  ;;  %8675 = vst [vmem:[#allocation58_spill] sm:$0xff] %v7679_v49 }
 0x283   : > { %v2539_v47 = vmul.f32 %v7505_v15, %v2468_v36  ;;  %v2079_v46 = vadd.f32 %v8673_v31, %v1539_v16  ;;  %5811 = vperm.xlu1 %5809, %v8674_v39   ;;  %v8676_v50 = vld [vmem:[#allocation40_spill] sm:$0xff]  ;;  %v7684_v36 = vpop.permute.xlu0 %5661 }
 0x284   : > { %v2537_v35 = vmul.f32 %v7505_v15, %v2466_v55  ;;  %v4994_v25 = vpop.f32.mrb[16].mxu0  ;;  %v2469_v13 = vadd.f32 %v7457_v3, %v2081_v41  ;;  %v2728_v63 = vpack.c.bf16 %v2669_v33, %v2668_v17  ;;  %v8677_v55 = vld [vmem:[#allocation53_spill] sm:$0xff]  ;;  %v2729_v31 = vpack.c.bf16 %v2671_v45, %v2670_v4 }
 0x285   : > { %v1560_v28 = vadd.f32 %v4994_v25, %v8676_v50  ;;  %v1551_v2 = vpop.f32.mrb[17].mxu0  ;;  %v2467_v26 = vadd.f32 %v8677_v55, %v2079_v46  ;;  %v5664_v44 = vunpack.i.h.bf16 %v7684_v36  ;;  %v5663_v33 = vunpack.i.l.bf16 %v7684_v36  ;;  %v8680_v25 = vld [vmem:[#allocation34_spill] sm:$0xff] }
 0x286   : > { %v1552_v54 = vadd.f32 %v1551_v2, %v8678_v20  ;;  %v4995_v16 = vpop.f32.mrb[18].mxu0  ;;  %v2540_v49 = vmul.f32 %v7505_v15, %v2469_v13  ;;  %5056 = vmatprep.mubr.msk.bf16.mxu1 %vm2788_vm3, %v2728_v63  ;;  %v5595_v41 = vpop.permute.xlu1 %5594  ;;  %v7695_v46 = vadd.f32 %v7514_v62, %v2539_v47  ;;  %v2608_v20 = vadd.f32 %v7514_v62, %v2537_v35  ;;  %v8681_v63 = vld [vmem:[#allocation63_spill] sm:$0xff] }
 0x287   : > { %v2084_v42 = vadd.f32 %v7454_v19, %v1560_v28  ;;  %v1563_v3 = vadd.f32 %v4995_v16, %v8679_v60  ;;  %v1554_v17 = vpop.f32.mrb[19].mxu0  ;;  %v2538_v4 = vmul.f32 %v7505_v15, %v2467_v26  ;;  %5816 = vperm.xlu1 %5809, %v8680_v25   ;;  %v5597_v50 = vunpack.i.h.bf16 %v5595_v41  ;;  %v8682_v26 = vld [vmem:[#allocation48_spill] sm:$0xff]  ;;  %v7714_v55 = vpop.permute.xlu0 %5689  ;;  %v8691_v28 = vld [vmem:[#allocation49_spill] sm:$0xff] }
 0x288   : > { %v2082_v45 = vadd.f32 %v7470_v9, %v1552_v54  ;;  %5057 = vmatmul.mubr.msk.bf16.gmra.mrb[40].mxu1 %vm2788_vm3, %v2729_v31  ;;  %v1555_v2 = vadd.f32 %v1554_v17, %v8682_v26  ;;  %v7709_v9 = vpop.f32.mrb[12].mxu1  ;;  %v2611_v54 = vadd.f32 %v7514_v62, %v2540_v49  ;;  %v2674_v31 = vmax.f32 %v7695_v46, 0.0 }
 0x289   : > { %v2472_v60 = vadd.f32 %v7503_v8, %v2084_v42  ;;  %v2085_v13 = vadd.f32 %v8681_v63, %v1563_v3  ;;  %v2609_v47 = vadd.f32 %v7514_v62, %v2538_v4  ;;  %8683 = vst [vmem:[#allocation56_spill] sm:$0xff] %v7709_v9  ;;  %v5596_v42 = vunpack.i.l.bf16 %v5595_v41  ;;  %v7716_v16 = vpop.f32.mrb[13].mxu1  ;;  %v8685_v4 = vld [vmem:[#allocation65_spill] sm:$0xff] }
 0x28a   : > { %v2470_v35 = vadd.f32 %v7492_v43, %v2082_v45  ;;  %8684 = vst [vmem:[#allocation38_spill] sm:$0xff] %v7716_v16  ;;  %v2672_v3 = vmax.f32 %v2608_v20, 0.0  ;;  %v2083_v17 = vadd.f32 %v8685_v4, %v1555_v2  ;;  %v7727_v41 = vmul.f32 %v5597_v50, %v7196_v40  ;;  %v7730_v20 = vpop.f32.mrb[14].mxu1 }
 0x28b   : > { %v2543_v36 = vmul.f32 %v7505_v15, %v2472_v60  ;;  %v2473_v8 = vadd.f32 %v7497_v57, %v2085_v13  ;;  %5820 = vset.pattern.permute.xlu1 %v8631_v7  ;;  %v5601_v45 = vpop.permute.xlu1 %5600  ;;  %v2673_v63 = vmax.f32 %v2609_v47, 0.0  ;;  %8686 = vst [vmem:[#allocation43_spill] sm:$0xff] %v7730_v20  ;;  %v8688_v47 = vld [vmem:[#allocation44_spill] sm:$0xff]  ;;  %v7737_v19 = vpop.f32.mrb[15].mxu1  ;;  %v7740_v50 = vmul.f32 %v5596_v42, %v7196_v40 }
 0x28c   : > { %v2541_v43 = vmul.f32 %v7505_v15, %v2470_v35  ;;  %v4998_v49 = vpop.f32.mrb[20].mxu0  ;;  %5822 = vperm.xlu1 %5820, %v8680_v25   ;;  %v8687_v35 = vld [vmem:[#allocation70_spill] sm:$0xff]  ;;  %v5603_v2 = vunpack.i.h.bf16 %v5601_v45  ;;  %8689 = vst [vmem:[#allocation61_spill] sm:$0xff] %v7737_v19  ;;  %v7743_v25 = vmul.f32 %v5664_v44, %v7193_v37  ;;  %v8693_v19 = vld [vmem:[#allocation45_spill] sm:$0xff] }
 0x28d   : > { %v7723_v60 = vadd.f32 %v7514_v62, %v2543_v36  ;;  %v2544_v57 = vmul.f32 %v7505_v15, %v2473_v8  ;;  %v1567_v46 = vpop.f32.mrb[21].mxu0  ;;  %v2471_v26 = vadd.f32 %v8687_v35, %v2083_v17  ;;  %v1576_v4 = vadd.f32 %v4998_v49, %v8688_v47 }
 0x28e   : > { %v7733_v13 = vadd.f32 %v7514_v62, %v2541_v43  ;;  %v4999_v36 = vpop.f32.mrb[22].mxu0  ;;  %v2675_v8 = vmax.f32 %v2611_v54, 0.0  ;;  %8690 = vst [vmem:[#allocation39_spill] sm:$0xff] %v7743_v25  ;;  %v1568_v16 = vadd.f32 %v1567_v46, %v8691_v28  ;;  %v5602_v35 = vunpack.i.l.bf16 %v5601_v45  ;;  %v8692_v54 = vld [vmem:[#allocation66_spill] sm:$0xff] }
 0x28f   : > { %v1570_v20 = vpop.f32.mrb[23].mxu0  ;;  %v7747_v43 = vadd.f32 %v7514_v62, %v2544_v57  ;;  %v2542_v17 = vmul.f32 %v7505_v15, %v2471_v26  ;;  %v2088_v49 = vadd.f32 %v7538_v48, %v1576_v4  ;;  %v7752_v47 = vmul.f32 %v5663_v33, %v7193_v37 }
 0x290   : > { %v2086_v42 = vadd.f32 %v8692_v54, %v1568_v16  ;;  %v1579_v9 = vadd.f32 %v4999_v36, %v8693_v19  ;;  %v2730_v44 = vpack.c.bf16 %v2673_v63, %v2672_v3  ;;  %5826 = vset.pattern.permute.xlu1 %v8636_v53  ;;  %v5612_v28 = vpop.permute.xlu1 %5611  ;;  %v7760_v26 = vmul.f32 %v5603_v2, %v7193_v37  ;;  %v8694_v19 = vld [vmem:[#allocation50_spill] sm:$0xff]  ;;  %v5696_v63 = vpop.permute.xlu0 %5695 }
 0x291   : > { %v2476_v48 = vadd.f32 %v7585_v30, %v2088_v49  ;;  %5828 = vperm.xlu1 %5826, %v8674_v39   ;;  %v1571_v3 = vadd.f32 %v1570_v20, %v8694_v19  ;;  %v2731_v45 = vpack.c.bf16 %v2675_v8, %v2674_v31  ;;  %v2613_v36 = vadd.f32 %v7514_v62, %v2542_v17  ;;  %v7774_v49 = vpop.f32.mrb[16].mxu1 }
 0x292   : > { %v2474_v33 = vadd.f32 %v7519_v34, %v2086_v42  ;;  %v2089_v16 = vadd.f32 %v7531_v18, %v1579_v9  ;;  %5060 = vmatprep.mubr.msk.bf16.mxu1 %vm2788_vm3, %v2730_v44  ;;  %v7771_v2 = vmul.f32 %v5602_v35, %v7193_v37  ;;  %8695 = vst [vmem:[#allocation54_spill] sm:$0xff] %v7774_v49  ;;  %v8696_v9 = vld [vmem:[#allocation64_spill] sm:$0xff]  ;;  %v5614_v31 = vunpack.i.h.bf16 %v5612_v28  ;;  %v7784_v19 = vpop.f32.mrb[17].mxu1  ;;  %v8703_v49 = vld [vmem:[#allocation51_spill] sm:$0xff] }
 0x293   : > { %v2547_v30 = vmul.f32 %v7505_v15, %v2476_v48  ;;  %v2087_v20 = vadd.f32 %v8696_v9, %v1571_v3  ;;  %5061 = vmatmul.mubr.msk.bf16.gmra.mrb[44].mxu1 %vm2788_vm3, %v2731_v45  ;;  %v5613_v35 = vunpack.i.l.bf16 %v5612_v28  ;;  %v5698_v42 = vunpack.i.h.bf16 %v5696_v63  ;;  %8697 = vst [vmem:[#allocation46_spill] sm:$0xff] %v7784_v19  ;;  %v8698_v3 = vld [vmem:[#allocation37_spill] sm:$0xff]  ;;  %v8700_v9 = vld [vmem:[#allocation35_spill] sm:$0xff] }
 0x294   : > { %v5002_v39 = vpop.f32.mrb[24].mxu0  ;;  %v2545_v34 = vmul.f32 %v7505_v15, %v2474_v33  ;;  %v2477_v18 = vadd.f32 %v7573_v12, %v2089_v16  ;;  %v5617_v8 = vpop.permute.xlu1 %5616  ;;  %v5697_v44 = vunpack.i.l.bf16 %v5696_v63  ;;  %v8699_v45 = vunpack.i.l.bf16 %v7547_v56 }
 0x295   : > { %v1583_v54 = vpop.f32.mrb[25].mxu0  ;;  %v7781_v17 = vadd.f32 %v7514_v62, %v2547_v30  ;;  %5843 = vset.pattern.permute.xlu1 %v8642_v27  ;;  %v2475_v16 = vadd.f32 %v7512_v29, %v2087_v20  ;;  %v7795_v63 = vpop.f32.mrb[18].mxu1  ;;  %v2677_v27 = vmax.f32 %v2613_v36, 0.0  ;;  %v2035_v46 = vmul.f32 %v5698_v42, %v7196_v40 }
 0x296   : > { %v5003_v48 = vpop.f32.mrb[26].mxu0  ;;  %v7787_v12 = vadd.f32 %v7514_v62, %v2545_v34  ;;  %v2548_v33 = vmul.f32 %v7505_v15, %v2477_v18  ;;  %v1151_v30 = vmul.f32 %v8699_v45, %v8698_v3  ;;  %5845 = vperm.xlu1 %5843, %v8700_v9   ;;  %8701 = vst [vmem:[#allocation62_spill] sm:$0xff] %v7795_v63  ;;  %v7800_v57 = vpop.f32.mrb[19].mxu1  ;;  %v5619_v63 = vunpack.i.h.bf16 %v5617_v8 }
 0x297   : > { %v1586_v28 = vpop.f32.mrb[27].mxu0  ;;  %v1157_v34 = vmul.f32 %v5613_v35, %v8698_v3  ;;  %8702 = vst [vmem:[#allocation60_spill] sm:$0xff] %v7800_v57  ;;  %v2546_v18 = vmul.f32 %v7505_v15, %v2475_v16  ;;  %v2034_v20 = vmul.f32 %v5697_v44, %v7196_v40  ;;  %v5618_v36 = vunpack.i.l.bf16 %v5617_v8  ;;  %v8704_v16 = vld [vmem:[#allocation36_spill] sm:$0xff]  ;;  %v7827_v42 = vpop.f32.mrb[20].mxu1 }
 0x298   : > { %v7803_v29 = vadd.f32 %v7514_v62, %v2548_v33  ;;  %v1592_v45 = vadd.f32 %v5002_v39, %v1151_v30  ;;  %v1584_v4 = vadd.f32 %v1583_v54, %v8703_v49  ;;  %v1158_v57 = vmul.f32 %v5614_v31, %v8698_v3  ;;  %v8705_v44 = vld [vmem:[#allocation68_spill] sm:$0xff] }
 0x299   : > { %v1616_v19 = vadd.f32 %v7563_v6, %v1157_v34  ;;  %v5623_v25 = vpop.permute.xlu1 %5622  ;;  %v7811_v35 = vadd.f32 %v7514_v62, %v2546_v18  ;;  %v1160_v6 = vmul.f32 %v5619_v63, %v8698_v3  ;;  %v1159_v8 = vmul.f32 %v5618_v36, %v8698_v3 }
 0x29a   : > { %v2092_v33 = vadd.f32 %v7644_v11, %v1592_v45  ;;  %5850 = vperm.xlu1 %5843, %v8704_v16   ;;  %v2090_v49 = vadd.f32 %v8705_v44, %v1584_v4  ;;  %v8706_v11 = vunpack.i.h.bf16 %v7547_v56  ;;  %v1619_v4 = vadd.f32 %v7577_v10, %v1158_v57 }
 0x29b   : > { %v2681_v30 = vmax.f32 %v7811_v35, 0.0  ;;  %v7821_v34 = vadd.f32 %v2034_v20, %v1616_v19  ;;  %v1624_v63 = vadd.f32 %v7559_v24, %v1159_v8  ;;  %v8707_v44 = vmax.f32 %v7733_v13, 0.0  ;;  %v7834_v20 = vpop.f32.mrb[21].mxu1 }
 0x29c   : > { %v5006_v54 = vpop.f32.mrb[28].mxu0  ;;  %v2480_v18 = vadd.f32 %v7528_v0, %v2092_v33  ;;  %v1152_v31 = vmul.f32 %v8706_v11, %v8698_v3  ;;  %v2478_v36 = vadd.f32 %v7650_v23, %v2090_v49  ;;  %v1627_v56 = vadd.f32 %v7570_v5, %v1160_v6  ;;  %v8708_v11 = vld [vmem:[#allocation52_spill] sm:$0xff]  ;;  %v8711_v6 = vld [vmem:[#allocation67_spill] sm:$0xff] }
 0x29d   : > { %v1599_v45 = vpop.f32.mrb[29].mxu0  ;;  %v2732_v35 = vpack.c.bf16 %v2677_v27, %v8707_v44  ;;  %v1587_v39 = vadd.f32 %v1586_v28, %v8708_v11  ;;  %v8709_v13 = vmax.f32 %v7723_v60, 0.0  ;;  %v8710_v57 = vmax.f32 %v7747_v43, 0.0 }
 0x29e   : > { %v5007_v19 = vpop.f32.mrb[30].mxu0  ;;  %v2551_v0 = vmul.f32 %v7505_v15, %v2480_v18  ;;  %v1595_v33 = vadd.f32 %v5003_v48, %v1152_v31  ;;  %5859 = vset.pattern.permute.xlu1 %v8631_v7  ;;  %v7840_v24 = vpop.permute.xlu1 %5628  ;;  %v2549_v10 = vmul.f32 %v7505_v15, %v2478_v36  ;;  %v5625_v8 = vunpack.i.h.bf16 %v5623_v25 }
 0x29f   : > { %v7842_v23 = vpop.f32.mrb[31].mxu0  ;;  %5064 = vmatprep.mubr.msk.bf16.mxu1 %vm2788_vm3, %v2732_v35  ;;  %v2733_v27 = vpack.c.bf16 %v8710_v57, %v8709_v13  ;;  %v5624_v5 = vunpack.i.l.bf16 %v5623_v25  ;;  %5861 = vperm.xlu1 %5859, %v8704_v16   ;;  %v7851_v48 = vpop.f32.mrb[22].mxu1  ;;  %v2091_v49 = vadd.f32 %v8711_v6, %v1587_v39  ;;  %v8712_v18 = vunpack.i.l.bf16 %v7663_v1 }
 0x2a0   : > { %v7854_v7 = vadd.f32 %v7514_v62, %v2551_v0  ;;  %v2093_v28 = vadd.f32 %v7631_v58, %v1595_v33  ;;  %v7861_v31 = vpop.f32.mrb[23].mxu1  ;;  %v2099_v43 = vadd.f32 %v2035_v46, %v1619_v4  ;;  %v2037_v25 = vmul.f32 %v5625_v8, %v7196_v40 }
 0x2a1   : > { %v1155_v60 = vmul.f32 %v8712_v18, %v8698_v3  ;;  %5065 = vmatmul.mubr.msk.bf16.gmra.mrb[48].mxu1 %vm2788_vm3, %v2733_v27  ;;  %v2036_v16 = vmul.f32 %v5624_v5, %v7196_v40  ;;  %v8713_v36 = vunpack.i.l.bf16 %v7636_v59  ;;  %v7870_v58 = vadd.f32 %v7514_v62, %v2549_v10 }
 0x2a2   : > { %v2481_v39 = vadd.f32 %v7522_v21, %v2093_v28  ;;  %v2479_v35 = vadd.f32 %v7647_v32, %v2091_v49  ;;  %v2686_v46 = vmax.f32 %v7854_v7, 0.0  ;;  %v2101_v33 = vadd.f32 %v2037_v25, %v1627_v56 }
 0x2a3   : > { %v1153_v44 = vmul.f32 %v8713_v36, %v8698_v3  ;;  %v1608_v0 = vadd.f32 %v5006_v54, %v1155_v60  ;;  %v2100_v4 = vadd.f32 %v2036_v16, %v1624_v63  ;;  %5865 = vset.pattern.permute.xlu1 %v8636_v53  ;;  %v7876_v13 = vpop.permute.xlu1 %5639  ;;  %v8714_v21 = vunpack.i.h.bf16 %v7663_v1  ;;  %v7885_v54 = vpop.f32.mrb[24].mxu1  ;;  %v8715_v63 = vld [vmem:[#allocation71_spill] sm:$0xff] }
 0x2a4   : > { %v2552_v57 = vmul.f32 %v7505_v15, %v2481_v39  ;;  %v2550_v27 = vmul.f32 %v7505_v15, %v2479_v35  ;;  %5867 = vperm.xlu1 %5865, %v8700_v9   ;;  %v2489_v53 = vadd.f32 %v7601_v52, %v2101_v33  ;;  %v8716_v8 = vmax.f32 %v7787_v12, 0.0  ;;  %v7892_v28 = vpop.f32.mrb[25].mxu1  ;;  %v5701_v35 = vpop.permute.xlu0 %5700 }
 0x2a5   : > { %v1600_v11 = vadd.f32 %v1599_v45, %v1153_v44  ;;  %v2096_v10 = vadd.f32 %v7740_v50, %v1608_v0  ;;  %v1156_v32 = vmul.f32 %v8714_v21, %v8698_v3  ;;  %v2488_v45 = vadd.f32 %v7666_v61, %v2100_v4  ;;  %v7897_v49 = vpop.f32.mrb[26].mxu1 }
 0x2a6   : > { %v2734_v5 = vpack.c.bf16 %v2681_v30, %v8716_v8  ;;  %v2623_v50 = vadd.f32 %v7514_v62, %v2552_v57  ;;  %v2621_v1 = vadd.f32 %v7514_v62, %v2550_v27  ;;  %v2684_v61 = vmax.f32 %v7870_v58, 0.0  ;;  %v7906_v60 = vpop.f32.mrb[27].mxu1 }
 0x2a7   : > { %v2094_v56 = vadd.f32 %v8715_v63, %v1600_v11  ;;  %v2484_v6 = vadd.f32 %v7557_v22, %v2096_v10  ;;  %v1611_v9 = vadd.f32 %v5007_v19, %v1156_v32  ;;  %v7901_v52 = vmul.f32 %v7505_v15, %v2488_v45  ;;  %v5645_v30 = vpop.permute.xlu1 %5644 }
 0x2a8   : > { %5068 = vmatprep.mubr.msk.bf16.mxu1 %vm2788_vm3, %v2734_v5  ;;  %v5631_v12 = vunpack.i.h.bf16 %v7840_v24  ;;  %v2687_v25 = vmax.f32 %v2623_v50, 0.0  ;;  %v7909_v22 = vmul.f32 %v7505_v15, %v2489_v53  ;;  %v8717_v58 = vunpack.i.h.bf16 %v7636_v59 }
 0x2a9   : > { %v2482_v18 = vadd.f32 %v7771_v2, %v2094_v56  ;;  %v2555_v19 = vmul.f32 %v7505_v15, %v2484_v6  ;;  %v2097_v16 = vadd.f32 %v7727_v41, %v1611_v9  ;;  %v5630_v2 = vunpack.i.l.bf16 %v7840_v24 }
 0x2aa   : > { %v2423_v44 = vmul.f32 %v5631_v12, %v7193_v37  ;;  %v1154_v39 = vmul.f32 %v8717_v58, %v8698_v3  ;;  %v2685_v0 = vmax.f32 %v2621_v1, 0.0  ;;  %v8718_v11 = vmax.f32 %v7781_v17, 0.0 }
 0x2ab   : > { %v2553_v36 = vmul.f32 %v7505_v15, %v2482_v18  ;;  %v2626_v4 = vadd.f32 %v7514_v62, %v2555_v19  ;;  %v2485_v33 = vadd.f32 %v7550_v51, %v2097_v16  ;;  %v8719_v41 = vmax.f32 %v7803_v29, 0.0  ;;  %v7934_v29 = vpop.f32.mrb[28].mxu1 }
 0x2ac   : > { %v2422_v24 = vmul.f32 %v5630_v2, %v7193_v37  ;;  %v2487_v10 = vadd.f32 %v2423_v44, %v2099_v43  ;;  %v1603_v59 = vadd.f32 %v7842_v23, %v1154_v39  ;;  %v5642_v32 = vunpack.i.h.bf16 %v7876_v13  ;;  %v5651_v45 = vpop.permute.xlu1 %5650  ;;  %v8720_v43 = vld [vmem:[#allocation69_spill] sm:$0xff]  ;;  %v7939_v23 = vpop.f32.mrb[29].mxu1 }
 0x2ad   : > { %v2735_v57 = vpack.c.bf16 %v8719_v41, %v8718_v11  ;;  %v7926_v27 = vadd.f32 %v7514_v62, %v2553_v36  ;;  %v2556_v21 = vmul.f32 %v7505_v15, %v2485_v33  ;;  %v5641_v51 = vunpack.i.l.bf16 %v7876_v13  ;;  %v7944_v6 = vpop.f32.mrb[30].mxu1 }
 0x2ae   : > { %v5703_v17 = vunpack.i.h.bf16 %v5701_v35  ;;  %v2690_v53 = vmax.f32 %v2626_v4, 0.0  ;;  %v2486_v63 = vadd.f32 %v2422_v24, %v7821_v34  ;;  %v2558_v56 = vmul.f32 %v7505_v15, %v2487_v10  ;;  %v7949_v19 = vpop.f32.mrb[31].mxu1 }
 0x2af   : > { %5069 = vmatmul.mubr.msk.bf16.gmra.mrb[52].mxu1 %vm2788_vm3, %v2735_v57  ;;  %v2095_v8 = vadd.f32 %v8720_v43, %v1603_v59  ;;  %v2688_v5 = vmax.f32 %v7926_v27, 0.0  ;;  %v2627_v50 = vadd.f32 %v7514_v62, %v2556_v21  ;;  %v5702_v1 = vunpack.i.l.bf16 %v5701_v35  ;;  %v5913_v57 = vld [vmem:[#allocation17] sm:$0xff]   ;;  %v8721_v59 = vld [vmem:[#allocation72_spill] sm:$0xff] }
 0x2b0   : > { %v1161_v13 = vmul.f32 %v5641_v51, %v8698_v3  ;;  %v2557_v9 = vmul.f32 %v7505_v15, %v2486_v63  ;;  %v2039_v34 = vmul.f32 %v5703_v17, %v7196_v40  ;;  %v2736_v12 = vpack.c.bf16 %v2685_v0, %v2684_v61  ;;  %5112 = vmatprep.subr.bf16.mxu0 %v5913_v57 }
 0x2b1   : > { %v2483_v18 = vadd.f32 %v7760_v26, %v2095_v8  ;;  %v2691_v16 = vmax.f32 %v2627_v50, 0.0  ;;  %v2629_v36 = vadd.f32 %v7514_v62, %v2558_v56  ;;  %v2038_v44 = vmul.f32 %v5702_v1, %v7196_v40  ;;  %v5657_v4 = vpop.permute.xlu1 %5656  ;;  %5113 = vmatpush3.bf16.msra.mxu0 %v5913_v57 }
 0x2b2   : > { %v2737_v2 = vpack.c.bf16 %v2687_v25, %v2686_v46  ;;  %v2628_v58 = vadd.f32 %v7514_v62, %v2557_v9  ;;  %5072 = vmatprep.mubr.msk.bf16.mxu1 %vm2788_vm3, %v2736_v12  ;;  %v5647_v26 = vunpack.i.h.bf16 %v5645_v30  ;;  %v5646_v35 = vunpack.i.l.bf16 %v5645_v30 }
 0x2b3   : > { %v2554_v39 = vmul.f32 %v7505_v15, %v2483_v18  ;;  %v1632_v61 = vadd.f32 %v7616_v14, %v1161_v13  ;;  %v1162_v0 = vmul.f32 %v5642_v32, %v8698_v3  ;;  %v5653_v33 = vunpack.i.h.bf16 %v5651_v45  ;;  %v8722_v32 = vld [vmem:[#allocation41_spill] sm:$0xff]  ;;  %v5706_v13 = vpop.permute.xlu0 %5705 }
 0x2b4   : > { %v5652_v11 = vunpack.i.l.bf16 %v5651_v45  ;;  %v1164_v7 = vmul.f32 %v5647_v26, %v8698_v3  ;;  %v1163_v46 = vmul.f32 %v5646_v35, %v8698_v3  ;;  %v2739_v25 = vpack.c.bf16 %v2691_v16, %v2690_v53 }
 0x2b5   : > { %v2625_v41 = vadd.f32 %v7514_v62, %v2554_v39  ;;  %v1635_v27 = vadd.f32 %v7624_v38, %v1162_v0  ;;  %v2041_v30 = vmul.f32 %v5653_v33, %v7196_v40  ;;  %v2692_v24 = vmax.f32 %v2628_v58, 0.0 }
 0x2b6   : > { %v2040_v14 = vmul.f32 %v5652_v11, %v7196_v40  ;;  %v1640_v21 = vadd.f32 %v8721_v59, %v1163_v46  ;;  %v1643_v51 = vadd.f32 %v8722_v32, %v1164_v7  ;;  %v2693_v17 = vmax.f32 %v2629_v36, 0.0  ;;  %v5668_v56 = vpop.permute.xlu1 %5667 }
 0x2b7   : > { %5073 = vmatmul.mubr.msk.bf16.gmra.mrb[56].mxu1 %vm2788_vm3, %v2737_v2  ;;  %v2689_v10 = vmax.f32 %v2625_v41, 0.0  ;;  %v5692_v45 = vunpack.i.h.bf16 %v7714_v55  ;;  %v5659_v53 = vunpack.i.h.bf16 %v5657_v4  ;;  %v5658_v63 = vunpack.i.l.bf16 %v5657_v4  ;;  %v8723_v2 = vld [vmem:[#allocation39_spill] sm:$0xff]  ;;  %v7982_v33 = vpop.permute.xlu0 %5721 }
 0x2b8   : > { %v2630_v38 = vadd.f32 %v7514_v62, %v7901_v52  ;;  %v2104_v43 = vadd.f32 %v2040_v14, %v1640_v21  ;;  %v2105_v8 = vadd.f32 %v2041_v30, %v1643_v51  ;;  %v2740_v1 = vpack.c.bf16 %v2693_v17, %v2692_v24 }
 0x2b9   : > { %v2738_v50 = vpack.c.bf16 %v2689_v10, %v2688_v5  ;;  %v2102_v9 = vadd.f32 %v2038_v44, %v1632_v61  ;;  %v2103_v18 = vadd.f32 %v2039_v34, %v1635_v27  ;;  %v2427_v12 = vmul.f32 %v5659_v53, %v7193_v37 }
 0x2ba   : > { %v2426_v16 = vmul.f32 %v5658_v63, %v7193_v37  ;;  %v2492_v36 = vadd.f32 %v7752_v47, %v2104_v43  ;;  %v2493_v58 = vadd.f32 %v8723_v2, %v2105_v8  ;;  %v2631_v52 = vadd.f32 %v7514_v62, %v7909_v22  ;;  %v5673_v34 = vpop.permute.xlu1 %5672  ;;  %v8727_v2 = vld [vmem:[#allocation58_spill] sm:$0xff] }
 0x2bb   : > { %5076 = vmatprep.mubr.msk.bf16.mxu1 %vm2788_vm3, %v2738_v50  ;;  %v2694_v39 = vmax.f32 %v2630_v38, 0.0  ;;  %v5691_v5 = vunpack.i.l.bf16 %v7714_v55  ;;  %v2491_v35 = vadd.f32 %v2427_v12, %v2103_v18  ;;  %v5669_v44 = vunpack.i.l.bf16 %v5668_v56  ;;  %v8000_v50 = vpop.permute.xlu0 %5749 }
 0x2bc   : > { %v2490_v26 = vadd.f32 %v2426_v16, %v2102_v9  ;;  %v2563_v4 = vmul.f32 %v7505_v15, %v2492_v36  ;;  %v2564_v61 = vmul.f32 %v7505_v15, %v2493_v58  ;;  %v5670_v0 = vunpack.i.h.bf16 %v5668_v56  ;;  %v8724_v56 = vld [vmem:[#allocation57_spill] sm:$0xff]  ;;  %v8726_v16 = vld [vmem:[#allocation59_spill] sm:$0xff] }
 0x2bd   : > { %v2695_v47 = vmax.f32 %v2631_v52, 0.0  ;;  %v2433_v11 = vmul.f32 %v5692_v45, %v7193_v37  ;;  %v2562_v55 = vmul.f32 %v7505_v15, %v2491_v35  ;;  %v5708_v41 = vunpack.i.h.bf16 %v5706_v13 }
 0x2be   : > { %v2561_v22 = vmul.f32 %v7505_v15, %v2490_v26  ;;  %v5707_v46 = vunpack.i.l.bf16 %v5706_v13  ;;  %v5675_v57 = vunpack.i.h.bf16 %v5673_v34  ;;  %v5674_v27 = vunpack.i.l.bf16 %v5673_v34 }
 0x2bf   : > { %5077 = vmatmul.mubr.msk.bf16.gmra.mrb[60].mxu1 %vm2788_vm3, %v2739_v25  ;;  %v2741_v7 = vpack.c.bf16 %v2695_v47, %v2694_v39  ;;  %v2633_v14 = vadd.f32 %v7514_v62, %v2562_v55  ;;  %v1165_v24 = vmul.f32 %v5669_v44, %v8698_v3  ;;  %v2634_v10 = vadd.f32 %v7514_v62, %v2563_v4  ;;  %v5679_v21 = vpop.permute.xlu1 %5678 }
 0x2c0   : > { %5080 = vmatprep.mubr.msk.bf16.mxu1 %vm2788_vm3, %v2740_v1  ;;  %v2632_v30 = vadd.f32 %v7514_v62, %v2561_v22  ;;  %v1168_v25 = vmul.f32 %v5675_v57, %v8698_v3  ;;  %v1167_v59 = vmul.f32 %v5674_v27, %v8698_v3  ;;  %v1166_v15 = vmul.f32 %v5670_v0, %v8698_v3  ;;  %v8725_v1 = vld [vmem:[#allocation55_spill] sm:$0xff] }
 0x2c1   : > { %v2635_v32 = vadd.f32 %v7514_v62, %v2564_v61  ;;  %v2432_v51 = vmul.f32 %v5691_v5, %v7193_v37  ;;  %v5681_v17 = vunpack.i.h.bf16 %v5679_v21  ;;  %v5680_v45 = vunpack.i.l.bf16 %v5679_v21 }
 0x2c2   : > { %v2696_v53 = vmax.f32 %v2632_v30, 0.0  ;;  %v2043_v63 = vmul.f32 %v5708_v41, %v7196_v40  ;;  %v1656_v38 = vadd.f32 %v8724_v56, %v1167_v59  ;;  %v2697_v43 = vmax.f32 %v2633_v14, 0.0  ;;  %v8012_v41 = vpop.permute.xlu0 %5777 }
 0x2c3   : > { %v2698_v8 = vmax.f32 %v2634_v10, 0.0  ;;  %v1659_v13 = vadd.f32 %v8725_v1, %v1168_v25  ;;  %v2045_v9 = vmul.f32 %v5681_v17, %v7196_v40  ;;  %v2044_v18 = vmul.f32 %v5680_v45, %v7196_v40  ;;  %v8020_v10 = vld [vmem:[#allocation11] ss:$0 sm:$0xff] }
 0x2c4   : > { %v2699_v62 = vmax.f32 %v2635_v32, 0.0  ;;  %v2042_v12 = vmul.f32 %v5707_v46, %v7196_v40  ;;  %v1648_v36 = vadd.f32 %v8726_v16, %v1165_v24  ;;  %v1651_v58 = vadd.f32 %v8727_v2, %v1166_v15  ;;  %v5685_v35 = vpop.permute.xlu1 %5684  ;;  %v8014_v46 = vld [vmem:[#allocation10] ss:$0 sm:$0xff] }
 0x2c5   : > { %v2742_v52 = vpack.c.bf16 %v2697_v43, %v2696_v53  ;;  %v2108_v39 = vadd.f32 %v2044_v18, %v1656_v38  ;;  %v2109_v5 = vadd.f32 %v2045_v9, %v1659_v13  ;;  %v5687_v44 = vunpack.i.h.bf16 %v5685_v35  ;;  %v5914_v13 = vld [vmem:[#allocation17 + $0x8] sm:$0xff]  }
 0x2c6   : > { %v2743_v26 = vpack.c.bf16 %v2699_v62, %v2698_v8  ;;  %v5686_v34 = vunpack.i.l.bf16 %v5685_v35  ;;  %v2106_v0 = vadd.f32 %v2042_v12, %v1648_v36  ;;  %v2107_v47 = vadd.f32 %v2043_v63, %v1651_v58  ;;  %5114 = vmatprep.subr.bf16.mxu0 %v5914_v13  ;;  %v5915_v35 = vld [vmem:[#allocation17 + $0x10] sm:$0xff]  }
 0x2c7   : > { %5081 = vmatmul.mubr.msk.bf16.gmra.mrb[64].mxu1 %vm2788_vm3, %v2741_v7  ;;  %v2496_v4 = vadd.f32 %v2432_v51, %v2108_v39  ;;  %v2497_v61 = vadd.f32 %v2433_v11, %v2109_v5  ;;  %v2431_v22 = vmul.f32 %v5687_v44, %v7193_v37  ;;  %v5784_v51 = vpop.permute.xlu0 %5783  ;;  %v5724_v36 = vunpack.i.h.bf16 %v7982_v33  ;;  %5115 = vmatpush3.bf16.msra.mxu0 %v5914_v13 }
 0x2c8   : > { %5084 = vmatprep.mubr.msk.bf16.mxu1 %vm2788_vm3, %v2742_v52  ;;  %v2430_v55 = vmul.f32 %v5686_v34, %v7193_v37  ;;  %v5786_v9 = vunpack.i.h.bf16 %v5784_v51  ;;  %v5785_v18 = vunpack.i.l.bf16 %v5784_v51  ;;  %v5723_v2 = vunpack.i.l.bf16 %v7982_v33  ;;  %v8729_v33 = vld [vmem:[#allocation43_spill] sm:$0xff]  ;;  %5116 = vmatprep.subr.bf16.mxu0 %v5915_v35  ;;  %v5916_v51 = vld [vmem:[#allocation17 + $0x18] sm:$0xff]  }
 0x2c9   : > { %v2567_v7 = vmul.f32 %v8014_v46, %v2496_v4  ;;  %v2568_v57 = vmul.f32 %v8014_v46, %v2497_v61  ;;  %v2495_v30 = vadd.f32 %v2431_v22, %v2107_v47  ;;  %v5712_v14 = vpop.permute.xlu1 %5711  ;;  %v8728_v4 = vld [vmem:[#allocation56_spill] sm:$0xff] }
 0x2ca   : > { %v2494_v27 = vadd.f32 %v2430_v55, %v2106_v0  ;;  %v5714_v53 = vunpack.i.h.bf16 %v5712_v14  ;;  %v5713_v63 = vunpack.i.l.bf16 %v5712_v14  ;;  %v2437_v44 = vmul.f32 %v5786_v9, %v7193_v37 }
 0x2cb   : > { %v2566_v11 = vmul.f32 %v8014_v46, %v2495_v30  ;;  %v2638_v25 = vadd.f32 %v8020_v10, %v2567_v7  ;;  %v2639_v59 = vadd.f32 %v8020_v10, %v2568_v57  ;;  %v2436_v34 = vmul.f32 %v5785_v18, %v7193_v37  ;;  %v8730_v57 = vld [vmem:[#allocation38_spill] sm:$0xff]  ;;  %v8731_v30 = vld [vmem:[#allocation61_spill] sm:$0xff]  ;;  %5117 = vmatpush3.bf16.msra.mxu0 %v5915_v35 }
 0x2cc   : > { %v2565_v24 = vmul.f32 %v8014_v46, %v2494_v27  ;;  %v1169_v58 = vmul.f32 %v5713_v63, %v8698_v3  ;;  %v1170_v52 = vmul.f32 %v5714_v53, %v8698_v3  ;;  %v2047_v55 = vmul.f32 %v5724_v36, %v7196_v40  ;;  %5118 = vmatprep.subr.bf16.mxu0 %v5916_v51 }
 0x2cd   : > { %v2637_v21 = vadd.f32 %v8020_v10, %v2566_v11  ;;  %v5717_v32 = vpop.permute.xlu1 %5716  ;;  %v2702_v17 = vmax.f32 %v2638_v25, 0.0  ;;  %v2703_v45 = vmax.f32 %v2639_v59, 0.0  ;;  %v2046_v7 = vmul.f32 %v5723_v2, %v7196_v40 }
 0x2ce   : > { %v2636_v15 = vadd.f32 %v8020_v10, %v2565_v24  ;;  %v5719_v56 = vunpack.i.h.bf16 %v5717_v32  ;;  %v5718_v38 = vunpack.i.l.bf16 %v5717_v32  ;;  %v1664_v27 = vadd.f32 %v8730_v57, %v1169_v58 }
 0x2cf   : > { %5085 = vmatmul.mubr.msk.bf16.gmra.mrb[68].mxu1 %vm2788_vm3, %v2743_v26  ;;  %v2701_v8 = vmax.f32 %v2637_v21, 0.0  ;;  %v2745_v1 = vpack.c.bf16 %v2703_v45, %v2702_v17  ;;  %v1667_v14 = vadd.f32 %v8731_v30, %v1170_v52  ;;  %5119 = vmatpush3.bf16.msra.mxu0 %v5916_v51  ;;  %v5789_v52 = vpop.permute.xlu0 %5788 }
 0x2d0   : > { %v2700_v43 = vmax.f32 %v2636_v15, 0.0  ;;  %v1172_v62 = vmul.f32 %v5719_v56, %v8698_v3  ;;  %v1171_v12 = vmul.f32 %v5718_v38, %v8698_v3  ;;  %v2110_v17 = vadd.f32 %v2046_v7, %v1664_v27 }
 0x2d1   : > { %v2111_v45 = vadd.f32 %v2047_v55, %v1667_v14  ;;  %v5752_v55 = vunpack.i.h.bf16 %v8000_v50  ;;  %v5751_v7 = vunpack.i.l.bf16 %v8000_v50 }
 0x2d2   : > { %v2744_v16 = vpack.c.bf16 %v2701_v8, %v2700_v43  ;;  %v5728_v39 = vpop.permute.xlu1 %5727  ;;  %v1672_v61 = vadd.f32 %v8728_v4, %v1171_v12  ;;  %v1675_v0 = vadd.f32 %v8729_v33, %v1172_v62  ;;  %v5790_v33 = vunpack.i.l.bf16 %v5789_v52 }
 0x2d3   : > { %v5730_v5 = vunpack.i.h.bf16 %v5728_v39  ;;  %v5729_v26 = vunpack.i.l.bf16 %v5728_v39 }
 0x2d4   : > { %5088 = vmatprep.mubr.msk.bf16.mxu1 %vm2788_vm3, %v2744_v16 }
 0x2d5   : > { %v2049_v47 = vmul.f32 %v5730_v5, %v7196_v40  ;;  %v2048_v22 = vmul.f32 %v5729_v26, %v7196_v40 }
 0x2d7   : > { %5089 = vmatmul.mubr.msk.bf16.gmra.mrb[72].mxu1 %vm2788_vm3, %v2745_v1  ;;  %v2112_v24 = vadd.f32 %v2048_v22, %v1672_v61  ;;  %v2113_v11 = vadd.f32 %v2049_v47, %v1675_v0  ;;  %v5734_v25 = vpop.permute.xlu1 %5733  ;;  %v5791_v61 = vunpack.i.h.bf16 %v5789_v52 }
 0x2d8   : > { %v5736_v59 = vunpack.i.h.bf16 %v5734_v25  ;;  %v5735_v15 = vunpack.i.l.bf16 %v5734_v25  ;;  %v2440_v25 = vmul.f32 %v5790_v33, %v7193_v37 }
 0x2d9   : > { %v2500_v21 = vadd.f32 %v2436_v34, %v2112_v24  ;;  %v2501_v32 = vadd.f32 %v2437_v44, %v2113_v11  ;;  %v2441_v11 = vmul.f32 %v5791_v61, %v7193_v37 }
 0x2da   : > { %v2435_v53 = vmul.f32 %v5736_v59, %v7193_v37  ;;  %v2434_v63 = vmul.f32 %v5735_v15, %v7193_v37  ;;  %v8732_v59 = vld [vmem:[#allocation54_spill] sm:$0xff] }
 0x2db   : > { %v2571_v56 = vmul.f32 %v8014_v46, %v2500_v21  ;;  %v2572_v38 = vmul.f32 %v8014_v46, %v2501_v32  ;;  %v8733_v21 = vld [vmem:[#allocation62_spill] sm:$0xff] }
 0x2dc   : > { %v2498_v43 = vadd.f32 %v2434_v63, %v2110_v17  ;;  %v2499_v8 = vadd.f32 %v2435_v53, %v2111_v45  ;;  %v5740_v1 = vpop.permute.xlu1 %5739  ;;  %v2051_v17 = vmul.f32 %v5752_v55, %v7196_v40  ;;  %v2050_v45 = vmul.f32 %v5751_v7, %v7196_v40  ;;  %v8734_v53 = vld [vmem:[#allocation46_spill] sm:$0xff]  ;;  %v5806_v55 = vpop.permute.xlu0 %5805 }
 0x2dd   : > { %v2642_v13 = vadd.f32 %v8020_v10, %v2571_v56  ;;  %v2643_v9 = vadd.f32 %v8020_v10, %v2572_v38  ;;  %v5742_v39 = vunpack.i.h.bf16 %v5740_v1  ;;  %v5741_v5 = vunpack.i.l.bf16 %v5740_v1  ;;  %v8735_v56 = vld [vmem:[#allocation60_spill] sm:$0xff] }
 0x2de   : > { %v2569_v18 = vmul.f32 %v8014_v46, %v2498_v43  ;;  %v2570_v62 = vmul.f32 %v8014_v46, %v2499_v8 }
 0x2df   : > { %v2706_v12 = vmax.f32 %v2642_v13, 0.0  ;;  %v2707_v16 = vmax.f32 %v2643_v9, 0.0  ;;  %v1173_v57 = vmul.f32 %v5741_v5, %v8698_v3  ;;  %v1174_v27 = vmul.f32 %v5742_v39, %v8698_v3 }
 0x2e0   : > { %v2640_v36 = vadd.f32 %v8020_v10, %v2569_v18  ;;  %v2641_v2 = vadd.f32 %v8020_v10, %v2570_v62  ;;  %v5745_v58 = vpop.permute.xlu1 %5744 }
 0x2e1   : > { %v5747_v26 = vunpack.i.h.bf16 %v5745_v58  ;;  %v5746_v35 = vunpack.i.l.bf16 %v5745_v58  ;;  %v2747_v4 = vpack.c.bf16 %v2707_v16, %v2706_v12  ;;  %v1680_v63 = vadd.f32 %v8734_v53, %v1173_v57 }
 0x2e2   : > { %v2704_v44 = vmax.f32 %v2640_v36, 0.0  ;;  %v2705_v34 = vmax.f32 %v2641_v2, 0.0  ;;  %v1683_v38 = vadd.f32 %v8735_v56, %v1174_v27  ;;  %v5779_v56 = vunpack.i.l.bf16 %v8012_v41 }
 0x2e3   : > { %v1176_v0 = vmul.f32 %v5747_v26, %v8698_v3  ;;  %v1175_v47 = vmul.f32 %v5746_v35, %v8698_v3  ;;  %v2114_v12 = vadd.f32 %v2050_v45, %v1680_v63  ;;  %v5780_v63 = vunpack.i.h.bf16 %v8012_v41 }
 0x2e4   : > { %v2746_v22 = vpack.c.bf16 %v2705_v34, %v2704_v44  ;;  %v2115_v16 = vadd.f32 %v2051_v17, %v1683_v38 }
 0x2e5   : > { %v5756_v30 = vpop.permute.xlu1 %5755  ;;  %v1688_v15 = vadd.f32 %v8732_v59, %v1175_v47  ;;  %v1691_v32 = vadd.f32 %v8733_v21, %v1176_v0  ;;  %v5807_v59 = vunpack.i.l.bf16 %v5806_v55 }
 0x2e6   : > { %v5758_v14 = vunpack.i.h.bf16 %v5756_v30  ;;  %v5757_v24 = vunpack.i.l.bf16 %v5756_v30  ;;  %5092 = vmatprep.mubr.msk.bf16.mxu1 %vm2788_vm3, %v2746_v22 }
 0x2e7   : > { %5093 = vmatmul.mubr.msk.bf16.gmra.mrb[76].mxu1 %vm2788_vm3, %v2747_v4 }
 0x2e8   : > { %v2053_v50 = vmul.f32 %v5758_v14, %v7196_v40  ;;  %v2052_v51 = vmul.f32 %v5757_v24, %v7196_v40 }
 0x2ea   : > { %v2116_v43 = vadd.f32 %v2052_v51, %v1688_v15  ;;  %v2117_v8 = vadd.f32 %v2053_v50, %v1691_v32  ;;  %v5762_v1 = vpop.permute.xlu1 %5761 }
 0x2eb   : > { %v5764_v13 = vunpack.i.h.bf16 %v5762_v1  ;;  %v5763_v9 = vunpack.i.l.bf16 %v5762_v1 }
 0x2ec   : > { %v2504_v18 = vadd.f32 %v2440_v25, %v2116_v43  ;;  %v2505_v62 = vadd.f32 %v2441_v11, %v2117_v8  ;;  %v5808_v25 = vunpack.i.h.bf16 %v5806_v55  ;;  %v2444_v43 = vmul.f32 %v5807_v59, %v7193_v37 }
 0x2ed   : > { %v2439_v36 = vmul.f32 %v5764_v13, %v7193_v37  ;;  %v2438_v2 = vmul.f32 %v5763_v9, %v7193_v37 }
 0x2ee   : > { %v2575_v58 = vmul.f32 %v8014_v46, %v2504_v18  ;;  %v2576_v52 = vmul.f32 %v8014_v46, %v2505_v62  ;;  %v2445_v38 = vmul.f32 %v5808_v25, %v7193_v37 }
 0x2ef   : > { %v2502_v39 = vadd.f32 %v2438_v2, %v2114_v12  ;;  %v2503_v5 = vadd.f32 %v2439_v36, %v2115_v16  ;;  %v5768_v26 = vpop.permute.xlu1 %5767  ;;  %v2055_v36 = vmul.f32 %v5780_v63, %v7196_v40  ;;  %v2054_v2 = vmul.f32 %v5779_v56, %v7196_v40 }
 0x2f0   : > { %v2646_v35 = vadd.f32 %v8020_v10, %v2575_v58  ;;  %v2647_v44 = vadd.f32 %v8020_v10, %v2576_v52  ;;  %v5770_v7 = vunpack.i.h.bf16 %v5768_v26  ;;  %v5769_v57 = vunpack.i.l.bf16 %v5768_v26 }
 0x2f1   : > { %v2573_v34 = vmul.f32 %v8014_v46, %v2502_v39  ;;  %v2574_v4 = vmul.f32 %v8014_v46, %v2503_v5 }
 0x2f2   : > { %v2710_v61 = vmax.f32 %v2646_v35, 0.0  ;;  %v2711_v33 = vmax.f32 %v2647_v44, 0.0  ;;  %v1177_v50 = vmul.f32 %v5769_v57, %v8698_v3  ;;  %v1178_v51 = vmul.f32 %v5770_v7, %v8698_v3 }
 0x2f3   : > { %v2644_v0 = vadd.f32 %v8020_v10, %v2573_v34  ;;  %v2645_v47 = vadd.f32 %v8020_v10, %v2574_v4  ;;  %v5773_v22 = vpop.permute.xlu1 %5772  ;;  %v5834_v4 = vpop.permute.xlu0 %5833 }
 0x2f4   : > { %v5775_v27 = vunpack.i.h.bf16 %v5773_v22  ;;  %v5774_v30 = vunpack.i.l.bf16 %v5773_v22  ;;  %v2749_v11 = vpack.c.bf16 %v2711_v33, %v2710_v61  ;;  %v1696_v18 = vadd.f32 %v7834_v20, %v1177_v50 }
 0x2f5   : > { %v2708_v14 = vmax.f32 %v2644_v0, 0.0  ;;  %v2709_v24 = vmax.f32 %v2645_v47, 0.0  ;;  %v1699_v62 = vadd.f32 %v7861_v31, %v1178_v51 }
 0x2f6   : > { %v1180_v15 = vmul.f32 %v5775_v27, %v8698_v3  ;;  %v1179_v21 = vmul.f32 %v5774_v30, %v8698_v3 }
 0x2f7   : > { %v2748_v32 = vpack.c.bf16 %v2709_v24, %v2708_v14  ;;  %v2119_v5 = vadd.f32 %v2055_v36, %v1699_v62  ;;  %v5840_v59 = vpop.permute.xlu0 %5839 }
 0x2f8   : > { %v5795_v17 = vpop.permute.xlu1 %5794  ;;  %v1704_v8 = vadd.f32 %v7827_v42, %v1179_v21  ;;  %v1707_v1 = vadd.f32 %v7851_v48, %v1180_v15  ;;  %v2118_v48 = vadd.f32 %v2054_v2, %v1696_v18 }
 0x2f9   : > { %v5797_v45 = vunpack.i.h.bf16 %v5795_v17  ;;  %v5796_v53 = vunpack.i.l.bf16 %v5795_v17  ;;  %5096 = vmatprep.mubr.msk.bf16.mxu1 %vm2788_vm3, %v2748_v32 }
 0x2fa   : > { %5097 = vmatmul.mubr.msk.bf16.gmra.mrb[80].mxu1 %vm2788_vm3, %v2749_v11 }
 0x2fb   : > { %v2057_v13 = vmul.f32 %v5797_v45, %v7196_v40  ;;  %v2056_v9 = vmul.f32 %v5796_v53, %v7196_v40  ;;  %v5842_v45 = vunpack.i.h.bf16 %v5840_v59  ;;  %v5841_v53 = vunpack.i.l.bf16 %v5840_v59 }
 0x2fd   : > { %v2120_v12 = vadd.f32 %v2056_v9, %v1704_v8  ;;  %v2121_v41 = vadd.f32 %v2057_v13, %v1707_v1  ;;  %v5801_v16 = vpop.permute.xlu1 %5800  ;;  %v5835_v8 = vunpack.i.l.bf16 %v5834_v4 }
 0x2fe   : > { %v5803_v58 = vunpack.i.h.bf16 %v5801_v16  ;;  %v5802_v52 = vunpack.i.l.bf16 %v5801_v16  ;;  %v2058_v16 = vmul.f32 %v5841_v53, %v7196_v40 }
 0x2ff   : > { %v2508_v42 = vadd.f32 %v2444_v43, %v2120_v12  ;;  %v2509_v39 = vadd.f32 %v2445_v38, %v2121_v41  ;;  %v5836_v43 = vunpack.i.h.bf16 %v5834_v4  ;;  %v2059_v41 = vmul.f32 %v5842_v45, %v7196_v40 }
 0x300   : > { %v2443_v26 = vmul.f32 %v5803_v58, %v7193_v37  ;;  %v2442_v35 = vmul.f32 %v5802_v52, %v7193_v37  ;;  %v2448_v52 = vmul.f32 %v5835_v8, %v7193_v37 }
 0x301   : > { %v2579_v20 = vmul.f32 %v8014_v46, %v2508_v42  ;;  %v2580_v31 = vmul.f32 %v8014_v46, %v2509_v39  ;;  %v2449_v58 = vmul.f32 %v5836_v43, %v7193_v37 }
 0x302   : > { %v2506_v44 = vadd.f32 %v2442_v35, %v2118_v48  ;;  %v2507_v34 = vadd.f32 %v2443_v26, %v2119_v5  ;;  %v5812_v61 = vpop.permute.xlu1 %5811 }
 0x303   : > { %v2650_v33 = vadd.f32 %v8020_v10, %v2579_v20  ;;  %v2651_v0 = vadd.f32 %v8020_v10, %v2580_v31  ;;  %v5814_v14 = vunpack.i.h.bf16 %v5812_v61  ;;  %v5813_v24 = vunpack.i.l.bf16 %v5812_v61 }
 0x304   : > { %v2577_v47 = vmul.f32 %v8014_v46, %v2506_v44  ;;  %v2578_v22 = vmul.f32 %v8014_v46, %v2507_v34 }
 0x305   : > { %v2714_v55 = vmax.f32 %v2650_v33, 0.0  ;;  %v2715_v7 = vmax.f32 %v2651_v0, 0.0  ;;  %v1181_v63 = vmul.f32 %v5813_v24, %v8698_v3  ;;  %v1182_v56 = vmul.f32 %v5814_v14, %v8698_v3  ;;  %v5856_v33 = vpop.permute.xlu0 %5855 }
 0x306   : > { %v2648_v57 = vadd.f32 %v8020_v10, %v2577_v47  ;;  %v2649_v27 = vadd.f32 %v8020_v10, %v2578_v22  ;;  %v5817_v30 = vpop.permute.xlu1 %5816 }
 0x307   : > { %v5819_v11 = vunpack.i.h.bf16 %v5817_v30  ;;  %v5818_v25 = vunpack.i.l.bf16 %v5817_v30  ;;  %v2751_v32 = vpack.c.bf16 %v2715_v7, %v2714_v55  ;;  %v1712_v36 = vadd.f32 %v7892_v28, %v1181_v63 }
 0x308   : > { %v2712_v15 = vmax.f32 %v2648_v57, 0.0  ;;  %v2713_v21 = vmax.f32 %v2649_v27, 0.0  ;;  %v1715_v2 = vadd.f32 %v7906_v60, %v1182_v56  ;;  %v5858_v56 = vunpack.i.h.bf16 %v5856_v33 }
 0x309   : > { %v1184_v50 = vmul.f32 %v5819_v11, %v8698_v3  ;;  %v1183_v51 = vmul.f32 %v5818_v25, %v8698_v3  ;;  %v2122_v35 = vadd.f32 %v2058_v16, %v1712_v36  ;;  %v5874_v24 = vpop.permute.xlu0 %5873 }
 0x30a   : > { %v2750_v17 = vpack.c.bf16 %v2713_v21, %v2712_v15  ;;  %v2123_v20 = vadd.f32 %v2059_v41, %v1715_v2 }
 0x30b   : > { %v5823_v38 = vpop.permute.xlu1 %5822  ;;  %v1720_v9 = vadd.f32 %v7885_v54, %v1183_v51  ;;  %v1723_v18 = vadd.f32 %v7897_v49, %v1184_v50  ;;  %v5876_v51 = vunpack.i.h.bf16 %v5874_v24 }
 0x30c   : > { %v5825_v1 = vunpack.i.h.bf16 %v5823_v38  ;;  %v5824_v13 = vunpack.i.l.bf16 %v5823_v38  ;;  %5100 = vmatprep.mubr.msk.bf16.mxu1 %vm2788_vm3, %v2750_v17  ;;  %v5875_v17 = vunpack.i.l.bf16 %v5874_v24  ;;  %v5857_v38 = vunpack.i.l.bf16 %v5856_v33 }
 0x30d   : > { %5101 = vmatmul.mubr.msk.bf16.gmra.mrb[84].mxu1 %vm2788_vm3, %v2751_v32 }
 0x30e   : > { %v2061_v62 = vmul.f32 %v5825_v1, %v7196_v40  ;;  %v2060_v12 = vmul.f32 %v5824_v13, %v7196_v40  ;;  %v2062_v2 = vmul.f32 %v5857_v38, %v7196_v40 }
 0x310   : > { %v2124_v42 = vadd.f32 %v2060_v12, %v1720_v9  ;;  %v2125_v54 = vadd.f32 %v2061_v62, %v1723_v18  ;;  %v5829_v39 = vpop.permute.xlu1 %5828  ;;  %v2453_v18 = vmul.f32 %v5876_v51, %v7193_v37  ;;  %v2452_v62 = vmul.f32 %v5875_v17, %v7193_v37 }
 0x311   : > { %v5831_v49 = vunpack.i.h.bf16 %v5829_v39  ;;  %v5830_v48 = vunpack.i.l.bf16 %v5829_v39 }
 0x312   : > { %v2512_v5 = vadd.f32 %v2448_v52, %v2124_v42  ;;  %v2513_v26 = vadd.f32 %v2449_v58, %v2125_v54 }
 0x313   : > { %v2447_v31 = vmul.f32 %v5831_v49, %v7193_v37  ;;  %v2446_v44 = vmul.f32 %v5830_v48, %v7193_v37 }
 0x314   : > { %v2583_v28 = vmul.f32 %v8014_v46, %v2512_v5  ;;  %v2584_v60 = vmul.f32 %v8014_v46, %v2513_v26 }
 0x315   : > { %v2510_v34 = vadd.f32 %v2446_v44, %v2122_v35  ;;  %v2511_v4 = vadd.f32 %v2447_v31, %v2123_v20  ;;  %v5846_v61 = vpop.permute.xlu1 %5845 }
 0x316   : > { %v2654_v0 = vadd.f32 %v8020_v10, %v2583_v28  ;;  %v2655_v47 = vadd.f32 %v8020_v10, %v2584_v60  ;;  %v5848_v11 = vunpack.i.h.bf16 %v5846_v61  ;;  %v5847_v25 = vunpack.i.l.bf16 %v5846_v61 }
 0x317   : > { %v2581_v22 = vmul.f32 %v8014_v46, %v2510_v34  ;;  %v2582_v55 = vmul.f32 %v8014_v46, %v2511_v4 }
 0x318   : > { %v2718_v7 = vmax.f32 %v2654_v0, 0.0  ;;  %v2719_v57 = vmax.f32 %v2655_v47, 0.0  ;;  %v1185_v43 = vmul.f32 %v5847_v25, %v8698_v3  ;;  %v1186_v8 = vmul.f32 %v5848_v11, %v8698_v3 }
 0x319   : > { %v2652_v27 = vadd.f32 %v8020_v10, %v2581_v22  ;;  %v2653_v30 = vadd.f32 %v8020_v10, %v2582_v55  ;;  %v5851_v14 = vpop.permute.xlu1 %5850 }
 0x31a   : > { %v5853_v59 = vunpack.i.h.bf16 %v5851_v14  ;;  %v5852_v15 = vunpack.i.l.bf16 %v5851_v14  ;;  %v2753_v50 = vpack.c.bf16 %v2719_v57, %v2718_v7  ;;  %v1728_v58 = vadd.f32 %v7939_v23, %v1185_v43  ;;  %v8165_v7 = vld [vmem:[#allocation14] ss:$0 sm:$0xff] }
 0x31b   : > { %v2716_v21 = vmax.f32 %v2652_v27, 0.0  ;;  %v2717_v32 = vmax.f32 %v2653_v30, 0.0  ;;  %v1731_v52 = vadd.f32 %v7949_v19, %v1186_v8  ;;  %v8167_v27 = vld [vmem:[#allocation16] ss:$0 sm:$0xff] }
 0x31c   : > { %v1188_v45 = vmul.f32 %v5853_v59, %v8698_v3  ;;  %v1187_v53 = vmul.f32 %v5852_v15, %v8698_v3  ;;  %v2063_v3 = vmul.f32 %v5858_v56, %v7196_v40 }
 0x31d   : > { %v2752_v63 = vpack.c.bf16 %v2717_v32, %v2716_v21 }
 0x31e   : > { %v5862_v1 = vpop.permute.xlu1 %5861  ;;  %v1736_v12 = vadd.f32 %v7934_v29, %v1187_v53  ;;  %v1739_v41 = vadd.f32 %v7944_v6, %v1188_v45  ;;  %v2126_v6 = vadd.f32 %v2062_v2, %v1728_v58  ;;  %v2127_v26 = vadd.f32 %v2063_v3, %v1731_v52 }
 0x31f   : > { %v5864_v13 = vunpack.i.h.bf16 %v5862_v1  ;;  %v5863_v9 = vunpack.i.l.bf16 %v5862_v1  ;;  %5104 = vmatprep.mubr.msk.bf16.mxu1 %vm2788_vm3, %v2752_v63 }
 0x320   : > { %5105 = vmatmul.mubr.msk.bf16.gmra.mrb[88].mxu1 %vm2788_vm3, %v2753_v50 }
 0x321   : > { %v2065_v16 = vmul.f32 %v5864_v13, %v7196_v40  ;;  %v2064_v36 = vmul.f32 %v5863_v9, %v7196_v40 }
 0x323   : > { %v2128_v42 = vadd.f32 %v2064_v36, %v1736_v12  ;;  %v2129_v54 = vadd.f32 %v2065_v16, %v1739_v41  ;;  %v5868_v39 = vpop.permute.xlu1 %5867 }
 0x324   : > { %v5870_v49 = vunpack.i.h.bf16 %v5868_v39  ;;  %v5869_v48 = vunpack.i.l.bf16 %v5868_v39 }
 0x325   : > { %v2516_v29 = vadd.f32 %v2452_v62, %v2128_v42  ;;  %v2517_v5 = vadd.f32 %v2453_v18, %v2129_v54 }
 0x326   : > { %v2451_v35 = vmul.f32 %v5870_v49, %v7193_v37  ;;  %v2450_v20 = vmul.f32 %v5869_v48, %v7193_v37 }
 0x327   : > { %v2587_v31 = vmul.f32 %v8014_v46, %v2516_v29  ;;  %v2588_v40 = vmul.f32 %v8014_v46, %v2517_v5 }
 0x328   : > { %v2514_v23 = vadd.f32 %v2450_v20, %v2126_v6  ;;  %v2515_v44 = vadd.f32 %v2451_v35, %v2127_v26 }
 0x329   : > { %v2658_v19 = vadd.f32 %v8020_v10, %v2587_v31  ;;  %v2659_v28 = vadd.f32 %v8020_v10, %v2588_v40 }
 0x32a   : > { %v2585_v60 = vmul.f32 %v8014_v46, %v2514_v23  ;;  %v2586_v34 = vmul.f32 %v8014_v46, %v2515_v44 }
 0x32b   : > { %v2722_v4 = vmax.f32 %v2658_v19, 0.0  ;;  %v2723_v61 = vmax.f32 %v2659_v28, 0.0 }
 0x32c   : > { %v2656_v33 = vadd.f32 %v8020_v10, %v2585_v60  ;;  %v2657_v37 = vadd.f32 %v8020_v10, %v2586_v34 }
 0x32d   : > { %v2755_v0 = vpack.c.bf16 %v2723_v61, %v2722_v4 }
 0x32e   : > { %v2720_v47 = vmax.f32 %v2656_v33, 0.0  ;;  %v2721_v22 = vmax.f32 %v2657_v37, 0.0 }
 0x330   : > { %v2754_v55 = vpack.c.bf16 %v2721_v22, %v2720_v47 }
 0x332   : > { %5108 = vmatprep.mubr.msk.bf16.mxu1 %vm2788_vm3, %v2754_v55 }
 0x333   : > { %5109 = vmatmul.mubr.msk.bf16.gmra.mrb[92].mxu1 %vm2788_vm3, %v2755_v0 }
 0x34a   : > { %v5050_v57 = vpop.f32.mrb[32].mxu1 }
 0x34b   : > { %v3183_v46 = vmul.f32 %v5050_v57, %v8165_v7  ;;  %v2919_v30 = vpop.f32.mrb[33].mxu1 }
 0x34c   : > { %v3181_v14 = vmul.f32 %v8165_v7, %v2919_v30  ;;  %v5051_v24 = vpop.f32.mrb[34].mxu1 }
 0x34d   : > { %v3254_v10 = vadd.f32 %v8167_v27, %v3183_v46  ;;  %v3184_v11 = vmul.f32 %v5051_v24, %v8165_v7  ;;  %v2922_v25 = vpop.f32.mrb[35].mxu1 }
 0x34e   : > { %v3252_v59 = vadd.f32 %v8167_v27, %v3181_v14  ;;  %v3182_v15 = vmul.f32 %v8165_v7, %v2922_v25 }
 0x34f   : > { %v3255_v21 = vadd.f32 %v8167_v27, %v3184_v11  ;;  %v3318_v50 = vmax.f32 %v3254_v10, 0.0 }
 0x350   : > { %v3253_v32 = vadd.f32 %v8167_v27, %v3182_v15  ;;  %v3316_v17 = vmax.f32 %v3252_v59, 0.0 }
 0x351   : > { %v3319_v51 = vmax.f32 %v3255_v21, 0.0 }
 0x352   : > { %v3317_v45 = vmax.f32 %v3253_v32, 0.0 }
 0x353   : > { %v3381_v53 = vpack.c.bf16 %v3319_v51, %v3318_v50  ;;  %v5054_v56 = vpop.f32.mrb[36].mxu1 }
 0x354   : > { %v3380_v63 = vpack.c.bf16 %v3317_v45, %v3316_v17  ;;  %v3187_v38 = vmul.f32 %v5054_v56, %v8165_v7  ;;  %v2935_v43 = vpop.f32.mrb[37].mxu1 }
 0x355   : > { %v3185_v8 = vmul.f32 %v8165_v7, %v2935_v43  ;;  %v5055_v1 = vpop.f32.mrb[38].mxu1 }
 0x356   : > { %5120 = vmatprep.mubr.msk.bf16.mxu0 %vm2788_vm3, %v3380_v63  ;;  %v3258_v13 = vadd.f32 %v8167_v27, %v3187_v38  ;;  %v3188_v9 = vmul.f32 %v5055_v1, %v8165_v7  ;;  %v2938_v18 = vpop.f32.mrb[39].mxu1 }
 0x357   : > { %5121 = vmatmul.mubr.msk.bf16.vlgmr.msra.gmra.mrb[32].mxu0 %vm2788_vm3, %v3381_v53  ;;  %v3256_v62 = vadd.f32 %v8167_v27, %v3185_v8  ;;  %v3186_v12 = vmul.f32 %v8165_v7, %v2938_v18 }
 0x358   : > { %v3259_v41 = vadd.f32 %v8167_v27, %v3188_v9  ;;  %v3322_v36 = vmax.f32 %v3258_v13, 0.0 }
 0x359   : > { %v3257_v16 = vadd.f32 %v8167_v27, %v3186_v12  ;;  %v3320_v2 = vmax.f32 %v3256_v62, 0.0 }
 0x35a   : > { %v3323_v3 = vmax.f32 %v3259_v41, 0.0 }
 0x35b   : > { %v3321_v58 = vmax.f32 %v3257_v16, 0.0  ;;  %v5058_v52 = vpop.f32.mrb[40].mxu1 }
 0x35c   : > { %v3383_v42 = vpack.c.bf16 %v3323_v3, %v3322_v36  ;;  %v3191_v54 = vmul.f32 %v5058_v52, %v8165_v7  ;;  %v2951_v39 = vpop.f32.mrb[41].mxu1 }
 0x35d   : > { %v3382_v49 = vpack.c.bf16 %v3321_v58, %v3320_v2  ;;  %v3189_v48 = vmul.f32 %v8165_v7, %v2951_v39  ;;  %v5059_v29 = vpop.f32.mrb[42].mxu1 }
 0x35e   : > { %v3262_v5 = vadd.f32 %v8167_v27, %v3191_v54  ;;  %v3192_v6 = vmul.f32 %v5059_v29, %v8165_v7  ;;  %v2954_v26 = vpop.f32.mrb[43].mxu1 }
 0x35f   : > { %v3260_v35 = vadd.f32 %v8167_v27, %v3189_v48  ;;  %v3190_v20 = vmul.f32 %v8165_v7, %v2954_v26  ;;  %5124 = vmatprep.mubr.msk.bf16.mxu0 %vm2788_vm3, %v3382_v49 }
 0x360   : > { %v3263_v31 = vadd.f32 %v8167_v27, %v3192_v6  ;;  %5125 = vmatmul.mubr.msk.bf16.gmra.mrb[36].mxu0 %vm2788_vm3, %v3383_v42  ;;  %v3326_v23 = vmax.f32 %v3262_v5, 0.0 }
 0x361   : > { %v3261_v40 = vadd.f32 %v8167_v27, %v3190_v20  ;;  %v3324_v19 = vmax.f32 %v3260_v35, 0.0 }
 0x362   : > { %v3327_v44 = vmax.f32 %v3263_v31, 0.0 }
 0x363   : > { %v3325_v28 = vmax.f32 %v3261_v40, 0.0 }
 0x364   : > { %v3385_v60 = vpack.c.bf16 %v3327_v44, %v3326_v23 }
 0x365   : > { %v3384_v34 = vpack.c.bf16 %v3325_v28, %v3324_v19 }
 0x366   : > { %v5062_v4 = vpop.f32.mrb[44].mxu1 }
 0x367   : > { %5128 = vmatprep.mubr.msk.bf16.mxu0 %vm2788_vm3, %v3384_v34  ;;  %v3195_v61 = vmul.f32 %v5062_v4, %v8165_v7  ;;  %v2967_v33 = vpop.f32.mrb[45].mxu1 }
 0x368   : > { %5129 = vmatmul.mubr.msk.bf16.gmra.mrb[40].mxu0 %vm2788_vm3, %v3385_v60  ;;  %v3193_v37 = vmul.f32 %v8165_v7, %v2967_v33  ;;  %v5063_v0 = vpop.f32.mrb[46].mxu1 }
 0x369   : > { %v3266_v47 = vadd.f32 %v8167_v27, %v3195_v61  ;;  %v3196_v22 = vmul.f32 %v5063_v0, %v8165_v7  ;;  %v2970_v55 = vpop.f32.mrb[47].mxu1 }
 0x36a   : > { %v3264_v57 = vadd.f32 %v8167_v27, %v3193_v37  ;;  %v3194_v46 = vmul.f32 %v8165_v7, %v2970_v55 }
 0x36b   : > { %v3267_v30 = vadd.f32 %v8167_v27, %v3196_v22  ;;  %v3330_v24 = vmax.f32 %v3266_v47, 0.0 }
 0x36c   : > { %v3265_v14 = vadd.f32 %v8167_v27, %v3194_v46  ;;  %v3328_v11 = vmax.f32 %v3264_v57, 0.0 }
 0x36d   : > { %v3331_v10 = vmax.f32 %v3267_v30, 0.0 }
 0x36e   : > { %v3329_v25 = vmax.f32 %v3265_v14, 0.0 }
 0x36f   : > { %v3387_v59 = vpack.c.bf16 %v3331_v10, %v3330_v24 }
 0x370   : > { %v3386_v15 = vpack.c.bf16 %v3329_v25, %v3328_v11 }
 0x372   : > { %5132 = vmatprep.mubr.msk.bf16.mxu0 %vm2788_vm3, %v3386_v15 }
 0x373   : > { %5133 = vmatmul.mubr.msk.bf16.gmra.mrb[44].mxu0 %vm2788_vm3, %v3387_v59 }
 0x374   : > { %v5066_v21 = vpop.f32.mrb[48].mxu1 }
 0x375   : > { %v3199_v32 = vmul.f32 %v5066_v21, %v8165_v7  ;;  %v2983_v50 = vpop.f32.mrb[49].mxu1 }
 0x376   : > { %v3197_v51 = vmul.f32 %v8165_v7, %v2983_v50  ;;  %v5067_v17 = vpop.f32.mrb[50].mxu1 }
 0x377   : > { %v3270_v45 = vadd.f32 %v8167_v27, %v3199_v32  ;;  %v3200_v53 = vmul.f32 %v5067_v17, %v8165_v7  ;;  %v2986_v63 = vpop.f32.mrb[51].mxu1 }
 0x378   : > { %v3268_v56 = vadd.f32 %v8167_v27, %v3197_v51  ;;  %v3198_v38 = vmul.f32 %v8165_v7, %v2986_v63 }
 0x379   : > { %v3271_v43 = vadd.f32 %v8167_v27, %v3200_v53  ;;  %v3334_v1 = vmax.f32 %v3270_v45, 0.0 }
 0x37a   : > { %v3269_v8 = vadd.f32 %v8167_v27, %v3198_v38  ;;  %v3332_v9 = vmax.f32 %v3268_v56, 0.0 }
 0x37b   : > { %v3335_v13 = vmax.f32 %v3271_v43, 0.0 }
 0x37c   : > { %v3333_v18 = vmax.f32 %v3269_v8, 0.0 }
 0x37d   : > { %v3389_v62 = vpack.c.bf16 %v3335_v13, %v3334_v1 }
 0x37e   : > { %v3388_v12 = vpack.c.bf16 %v3333_v18, %v3332_v9 }
 0x380   : > { %5136 = vmatprep.mubr.msk.bf16.mxu0 %vm2788_vm3, %v3388_v12 }
 0x381   : > { %5137 = vmatmul.mubr.msk.bf16.gmra.mrb[48].mxu0 %vm2788_vm3, %v3389_v62 }
 0x382   : > { %v5070_v41 = vpop.f32.mrb[52].mxu1 }
 0x383   : > { %v3203_v16 = vmul.f32 %v5070_v41, %v8165_v7  ;;  %v2999_v36 = vpop.f32.mrb[53].mxu1 }
 0x384   : > { %v3201_v3 = vmul.f32 %v8165_v7, %v2999_v36  ;;  %v5071_v2 = vpop.f32.mrb[54].mxu1 }
 0x385   : > { %v3274_v58 = vadd.f32 %v8167_v27, %v3203_v16  ;;  %v3204_v52 = vmul.f32 %v5071_v2, %v8165_v7  ;;  %v3002_v42 = vpop.f32.mrb[55].mxu1 }
 0x386   : > { %v3272_v54 = vadd.f32 %v8167_v27, %v3201_v3  ;;  %v3202_v39 = vmul.f32 %v8165_v7, %v3002_v42 }
 0x387   : > { %v3275_v49 = vadd.f32 %v8167_v27, %v3204_v52  ;;  %v3338_v29 = vmax.f32 %v3274_v58, 0.0 }
 0x388   : > { %v3273_v48 = vadd.f32 %v8167_v27, %v3202_v39  ;;  %v3336_v6 = vmax.f32 %v3272_v54, 0.0 }
 0x389   : > { %v3339_v5 = vmax.f32 %v3275_v49, 0.0 }
 0x38a   : > { %v3337_v26 = vmax.f32 %v3273_v48, 0.0  ;;  %v5074_v35 = vpop.f32.mrb[56].mxu1 }
 0x38b   : > { %v3391_v20 = vpack.c.bf16 %v3339_v5, %v3338_v29  ;;  %v3207_v31 = vmul.f32 %v5074_v35, %v8165_v7  ;;  %v3015_v40 = vpop.f32.mrb[57].mxu1 }
 0x38c   : > { %v3390_v23 = vpack.c.bf16 %v3337_v26, %v3336_v6  ;;  %v3205_v44 = vmul.f32 %v8165_v7, %v3015_v40  ;;  %v5075_v19 = vpop.f32.mrb[58].mxu1 }
 0x38d   : > { %v3278_v28 = vadd.f32 %v8167_v27, %v3207_v31  ;;  %v3208_v60 = vmul.f32 %v5075_v19, %v8165_v7  ;;  %v3018_v34 = vpop.f32.mrb[59].mxu1 }
 0x38e   : > { %v3276_v4 = vadd.f32 %v8167_v27, %v3205_v44  ;;  %v3206_v61 = vmul.f32 %v8165_v7, %v3018_v34  ;;  %5140 = vmatprep.mubr.msk.bf16.mxu0 %vm2788_vm3, %v3390_v23 }
 0x38f   : > { %v3279_v33 = vadd.f32 %v8167_v27, %v3208_v60  ;;  %5141 = vmatmul.mubr.msk.bf16.gmra.mrb[52].mxu0 %vm2788_vm3, %v3391_v20  ;;  %v3342_v0 = vmax.f32 %v3278_v28, 0.0 }
 0x390   : > { %v3277_v37 = vadd.f32 %v8167_v27, %v3206_v61  ;;  %v3340_v22 = vmax.f32 %v3276_v4, 0.0 }
 0x391   : > { %v3343_v47 = vmax.f32 %v3279_v33, 0.0 }
 0x392   : > { %v3341_v55 = vmax.f32 %v3277_v37, 0.0  ;;  %v5078_v57 = vpop.f32.mrb[60].mxu1 }
 0x393   : > { %v3393_v46 = vpack.c.bf16 %v3343_v47, %v3342_v0  ;;  %v3211_v30 = vmul.f32 %v5078_v57, %v8165_v7  ;;  %v3031_v14 = vpop.f32.mrb[61].mxu1 }
 0x394   : > { %v3392_v24 = vpack.c.bf16 %v3341_v55, %v3340_v22  ;;  %v3209_v10 = vmul.f32 %v8165_v7, %v3031_v14  ;;  %v5079_v11 = vpop.f32.mrb[62].mxu1 }
 0x395   : > { %v3282_v25 = vadd.f32 %v8167_v27, %v3211_v30  ;;  %v3212_v59 = vmul.f32 %v5079_v11, %v8165_v7  ;;  %v3034_v15 = vpop.f32.mrb[63].mxu1 }
 0x396   : > { %v3280_v21 = vadd.f32 %v8167_v27, %v3209_v10  ;;  %v3210_v32 = vmul.f32 %v8165_v7, %v3034_v15  ;;  %5144 = vmatprep.mubr.msk.bf16.mxu0 %vm2788_vm3, %v3392_v24 }
 0x397   : > { %v3283_v50 = vadd.f32 %v8167_v27, %v3212_v59  ;;  %5145 = vmatmul.mubr.msk.bf16.gmra.mrb[56].mxu0 %vm2788_vm3, %v3393_v46  ;;  %v3346_v17 = vmax.f32 %v3282_v25, 0.0 }
 0x398   : > { %v3281_v51 = vadd.f32 %v8167_v27, %v3210_v32  ;;  %v3344_v53 = vmax.f32 %v3280_v21, 0.0 }
 0x399   : > { %v3347_v45 = vmax.f32 %v3283_v50, 0.0 }
 0x39a   : > { %v3345_v63 = vmax.f32 %v3281_v51, 0.0  ;;  %v5082_v56 = vpop.f32.mrb[64].mxu1 }
 0x39b   : > { %v3395_v38 = vpack.c.bf16 %v3347_v45, %v3346_v17  ;;  %v3215_v43 = vmul.f32 %v5082_v56, %v8165_v7  ;;  %v3047_v8 = vpop.f32.mrb[65].mxu1 }
 0x39c   : > { %v3394_v1 = vpack.c.bf16 %v3345_v63, %v3344_v53  ;;  %v3213_v13 = vmul.f32 %v8165_v7, %v3047_v8  ;;  %v5083_v9 = vpop.f32.mrb[66].mxu1 }
 0x39d   : > { %v3286_v18 = vadd.f32 %v8167_v27, %v3215_v43  ;;  %v3216_v62 = vmul.f32 %v5083_v9, %v8165_v7  ;;  %v3050_v12 = vpop.f32.mrb[67].mxu1 }
 0x39e   : > { %v3284_v41 = vadd.f32 %v8167_v27, %v3213_v13  ;;  %v3214_v16 = vmul.f32 %v8165_v7, %v3050_v12  ;;  %5148 = vmatprep.mubr.msk.bf16.mxu0 %vm2788_vm3, %v3394_v1 }
 0x39f   : > { %v3287_v36 = vadd.f32 %v8167_v27, %v3216_v62  ;;  %5149 = vmatmul.mubr.msk.bf16.gmra.mrb[60].mxu0 %vm2788_vm3, %v3395_v38  ;;  %v3350_v2 = vmax.f32 %v3286_v18, 0.0 }
 0x3a0   : > { %v3285_v3 = vadd.f32 %v8167_v27, %v3214_v16  ;;  %v3348_v52 = vmax.f32 %v3284_v41, 0.0 }
 0x3a1   : > { %v3351_v58 = vmax.f32 %v3287_v36, 0.0 }
 0x3a2   : > { %v3349_v42 = vmax.f32 %v3285_v3, 0.0  ;;  %v5086_v54 = vpop.f32.mrb[68].mxu1 }
 0x3a3   : > { %v3397_v39 = vpack.c.bf16 %v3351_v58, %v3350_v2  ;;  %v3219_v49 = vmul.f32 %v5086_v54, %v8165_v7  ;;  %v3063_v48 = vpop.f32.mrb[69].mxu1 }
 0x3a4   : > { %v3396_v29 = vpack.c.bf16 %v3349_v42, %v3348_v52  ;;  %v3217_v5 = vmul.f32 %v8165_v7, %v3063_v48  ;;  %v5087_v6 = vpop.f32.mrb[70].mxu1 }
 0x3a5   : > { %v3290_v26 = vadd.f32 %v8167_v27, %v3219_v49  ;;  %v3220_v35 = vmul.f32 %v5087_v6, %v8165_v7  ;;  %v3066_v20 = vpop.f32.mrb[71].mxu1 }
 0x3a6   : > { %v3288_v31 = vadd.f32 %v8167_v27, %v3217_v5  ;;  %5152 = vmatprep.mubr.msk.bf16.mxu0 %vm2788_vm3, %v3396_v29  ;;  %v3218_v40 = vmul.f32 %v8165_v7, %v3066_v20 }
 0x3a7   : > { %v3291_v23 = vadd.f32 %v8167_v27, %v3220_v35  ;;  %5153 = vmatmul.mubr.msk.bf16.gmra.mrb[64].mxu0 %vm2788_vm3, %v3397_v39  ;;  %v3354_v19 = vmax.f32 %v3290_v26, 0.0 }
 0x3a8   : > { %v3289_v44 = vadd.f32 %v8167_v27, %v3218_v40  ;;  %v3352_v60 = vmax.f32 %v3288_v31, 0.0 }
 0x3a9   : > { %v3355_v28 = vmax.f32 %v3291_v23, 0.0 }
 0x3aa   : > { %v3353_v34 = vmax.f32 %v3289_v44, 0.0  ;;  %v5090_v4 = vpop.f32.mrb[72].mxu1 }
 0x3ab   : > { %v3399_v61 = vpack.c.bf16 %v3355_v28, %v3354_v19  ;;  %v3223_v33 = vmul.f32 %v5090_v4, %v8165_v7  ;;  %v3079_v37 = vpop.f32.mrb[73].mxu1 }
 0x3ac   : > { %v3398_v0 = vpack.c.bf16 %v3353_v34, %v3352_v60  ;;  %v3221_v47 = vmul.f32 %v8165_v7, %v3079_v37  ;;  %v5091_v22 = vpop.f32.mrb[74].mxu1 }
 0x3ad   : > { %v3294_v55 = vadd.f32 %v8167_v27, %v3223_v33  ;;  %v3224_v57 = vmul.f32 %v5091_v22, %v8165_v7  ;;  %v3082_v46 = vpop.f32.mrb[75].mxu1 }
 0x3ae   : > { %5156 = vmatprep.mubr.msk.bf16.mxu0 %vm2788_vm3, %v3398_v0  ;;  %v3292_v30 = vadd.f32 %v8167_v27, %v3221_v47  ;;  %v3222_v14 = vmul.f32 %v8165_v7, %v3082_v46 }
 0x3af   : > { %5157 = vmatmul.mubr.msk.bf16.gmra.mrb[68].mxu0 %vm2788_vm3, %v3399_v61  ;;  %v3295_v24 = vadd.f32 %v8167_v27, %v3224_v57  ;;  %v3358_v11 = vmax.f32 %v3294_v55, 0.0 }
 0x3b0   : > { %v3293_v10 = vadd.f32 %v8167_v27, %v3222_v14  ;;  %v3356_v59 = vmax.f32 %v3292_v30, 0.0 }
 0x3b1   : > { %v3359_v25 = vmax.f32 %v3295_v24, 0.0 }
 0x3b2   : > { %v3357_v15 = vmax.f32 %v3293_v10, 0.0 }
 0x3b3   : > { %v3401_v21 = vpack.c.bf16 %v3359_v25, %v3358_v11 }
 0x3b4   : > { %v3400_v32 = vpack.c.bf16 %v3357_v15, %v3356_v59 }
 0x3b6   : > { %5160 = vmatprep.mubr.msk.bf16.mxu0 %vm2788_vm3, %v3400_v32 }
 0x3b7   : > { %5161 = vmatmul.mubr.msk.bf16.gmra.mrb[72].mxu0 %vm2788_vm3, %v3401_v21 }
 0x3ba   : > { %v5094_v50 = vpop.f32.mrb[76].mxu1 }
 0x3bb   : > { %v3227_v51 = vmul.f32 %v5094_v50, %v8165_v7  ;;  %v3095_v17 = vpop.f32.mrb[77].mxu1 }
 0x3bc   : > { %v3225_v45 = vmul.f32 %v8165_v7, %v3095_v17  ;;  %v5095_v53 = vpop.f32.mrb[78].mxu1 }
 0x3bd   : > { %v3298_v63 = vadd.f32 %v8167_v27, %v3227_v51  ;;  %v3228_v56 = vmul.f32 %v5095_v53, %v8165_v7  ;;  %v3098_v38 = vpop.f32.mrb[79].mxu1 }
 0x3be   : > { %v3296_v43 = vadd.f32 %v8167_v27, %v3225_v45  ;;  %v3226_v8 = vmul.f32 %v8165_v7, %v3098_v38 }
 0x3bf   : > { %v3299_v1 = vadd.f32 %v8167_v27, %v3228_v56  ;;  %v3362_v9 = vmax.f32 %v3298_v63, 0.0 }
 0x3c0   : > { %v3297_v13 = vadd.f32 %v8167_v27, %v3226_v8  ;;  %v3360_v62 = vmax.f32 %v3296_v43, 0.0 }
 0x3c1   : > { %v3363_v18 = vmax.f32 %v3299_v1, 0.0 }
 0x3c2   : > { %v3361_v12 = vmax.f32 %v3297_v13, 0.0 }
 0x3c3   : > { %v3403_v41 = vpack.c.bf16 %v3363_v18, %v3362_v9 }
 0x3c4   : > { %v3402_v16 = vpack.c.bf16 %v3361_v12, %v3360_v62 }
 0x3c6   : > { %5164 = vmatprep.mubr.msk.bf16.mxu0 %vm2788_vm3, %v3402_v16 }
 0x3c7   : > { %5165 = vmatmul.mubr.msk.bf16.gmra.mrb[76].mxu0 %vm2788_vm3, %v3403_v41 }
 0x3cd   : > { %v5098_v36 = vpop.f32.mrb[80].mxu1 }
 0x3ce   : > { %v3231_v3 = vmul.f32 %v5098_v36, %v8165_v7  ;;  %v3111_v2 = vpop.f32.mrb[81].mxu1 }
 0x3cf   : > { %v3229_v58 = vmul.f32 %v8165_v7, %v3111_v2  ;;  %v5099_v52 = vpop.f32.mrb[82].mxu1 }
 0x3d0   : > { %v3302_v42 = vadd.f32 %v8167_v27, %v3231_v3  ;;  %v3232_v54 = vmul.f32 %v5099_v52, %v8165_v7  ;;  %v3114_v39 = vpop.f32.mrb[83].mxu1 }
 0x3d1   : > { %v3300_v49 = vadd.f32 %v8167_v27, %v3229_v58  ;;  %v3230_v48 = vmul.f32 %v8165_v7, %v3114_v39 }
 0x3d2   : > { %v3303_v29 = vadd.f32 %v8167_v27, %v3232_v54  ;;  %v3366_v6 = vmax.f32 %v3302_v42, 0.0 }
 0x3d3   : > { %v3301_v5 = vadd.f32 %v8167_v27, %v3230_v48  ;;  %v3364_v35 = vmax.f32 %v3300_v49, 0.0 }
 0x3d4   : > { %v3367_v26 = vmax.f32 %v3303_v29, 0.0  ;;  %v8329_v29 = vld [vmem:[#allocation19] ss:$0 sm:$0xff] }
 0x3d5   : > { %v3365_v20 = vmax.f32 %v3301_v5, 0.0 }
 0x3d6   : > { %v3405_v31 = vpack.c.bf16 %v3367_v26, %v3366_v6  ;;  %v8331_v6 = vld [vmem:[#allocation20] ss:$0 sm:$0xff] }
 0x3d7   : > { %v3404_v40 = vpack.c.bf16 %v3365_v20, %v3364_v35 }
 0x3d9   : > { %5168 = vmatprep.mubr.msk.bf16.mxu0 %vm2788_vm3, %v3404_v40 }
 0x3da   : > { %5169 = vmatmul.mubr.msk.bf16.gmra.mrb[80].mxu0 %vm2788_vm3, %v3405_v31 }
 0x3e0   : > { %v5102_v23 = vpop.f32.mrb[84].mxu1 }
 0x3e1   : > { %v3235_v44 = vmul.f32 %v5102_v23, %v8165_v7  ;;  %v3127_v19 = vpop.f32.mrb[85].mxu1 }
 0x3e2   : > { %v3233_v28 = vmul.f32 %v8165_v7, %v3127_v19  ;;  %v5103_v60 = vpop.f32.mrb[86].mxu1 }
 0x3e3   : > { %v3306_v34 = vadd.f32 %v8167_v27, %v3235_v44  ;;  %v3236_v4 = vmul.f32 %v5103_v60, %v8165_v7  ;;  %v3130_v61 = vpop.f32.mrb[87].mxu1 }
 0x3e4   : > { %v3304_v33 = vadd.f32 %v8167_v27, %v3233_v28  ;;  %v3234_v37 = vmul.f32 %v8165_v7, %v3130_v61 }
 0x3e5   : > { %v3307_v0 = vadd.f32 %v8167_v27, %v3236_v4  ;;  %v3370_v22 = vmax.f32 %v3306_v34, 0.0 }
 0x3e6   : > { %v3305_v47 = vadd.f32 %v8167_v27, %v3234_v37  ;;  %v3368_v57 = vmax.f32 %v3304_v33, 0.0 }
 0x3e7   : > { %v3371_v55 = vmax.f32 %v3307_v0, 0.0 }
 0x3e8   : > { %v3369_v46 = vmax.f32 %v3305_v47, 0.0 }
 0x3e9   : > { %v3407_v30 = vpack.c.bf16 %v3371_v55, %v3370_v22 }
 0x3ea   : > { %v3406_v14 = vpack.c.bf16 %v3369_v46, %v3368_v57 }
 0x3ec   : > { %5172 = vmatprep.mubr.msk.bf16.mxu0 %vm2788_vm3, %v3406_v14 }
 0x3ed   : > { %5173 = vmatmul.mubr.msk.bf16.gmra.mrb[84].mxu0 %vm2788_vm3, %v3407_v30 }
 0x3f3   : > { %v5106_v24 = vpop.f32.mrb[88].mxu1 }
 0x3f4   : > { %v3239_v10 = vmul.f32 %v5106_v24, %v8165_v7  ;;  %v3143_v11 = vpop.f32.mrb[89].mxu1 }
 0x3f5   : > { %v3237_v25 = vmul.f32 %v8165_v7, %v3143_v11  ;;  %v5107_v59 = vpop.f32.mrb[90].mxu1 }
 0x3f6   : > { %v3310_v15 = vadd.f32 %v8167_v27, %v3239_v10  ;;  %v3240_v21 = vmul.f32 %v5107_v59, %v8165_v7  ;;  %v3146_v32 = vpop.f32.mrb[91].mxu1 }
 0x3f7   : > { %v3308_v50 = vadd.f32 %v8167_v27, %v3237_v25  ;;  %v3238_v51 = vmul.f32 %v8165_v7, %v3146_v32 }
 0x3f8   : > { %v3311_v17 = vadd.f32 %v8167_v27, %v3240_v21  ;;  %v3374_v53 = vmax.f32 %v3310_v15, 0.0 }
 0x3f9   : > { %v3309_v45 = vadd.f32 %v8167_v27, %v3238_v51  ;;  %v3372_v56 = vmax.f32 %v3308_v50, 0.0 }
 0x3fa   : > { %v3375_v63 = vmax.f32 %v3311_v17, 0.0 }
 0x3fb   : > { %v3373_v38 = vmax.f32 %v3309_v45, 0.0 }
 0x3fc   : > { %v3409_v43 = vpack.c.bf16 %v3375_v63, %v3374_v53 }
 0x3fd   : > { %v3408_v8 = vpack.c.bf16 %v3373_v38, %v3372_v56 }
 0x3ff   : > { %5176 = vmatprep.mubr.msk.bf16.mxu0 %vm2788_vm3, %v3408_v8 }
 0x400   : > { %5177 = vmatmul.mubr.msk.bf16.gmra.mrb[88].mxu0 %vm2788_vm3, %v3409_v43 }
 0x406   : > { %v5110_v1 = vpop.f32.mrb[92].mxu1 }
 0x407   : > { %v3243_v13 = vmul.f32 %v5110_v1, %v8165_v7  ;;  %v3159_v9 = vpop.f32.mrb[93].mxu1 }
 0x408   : > { %v3241_v18 = vmul.f32 %v8165_v7, %v3159_v9  ;;  %v5111_v62 = vpop.f32.mrb[94].mxu1 }
 0x409   : > { %v3314_v12 = vadd.f32 %v8167_v27, %v3243_v13  ;;  %v3244_v41 = vmul.f32 %v5111_v62, %v8165_v7  ;;  %v3162_v16 = vpop.f32.mrb[95].mxu1 }
 0x40a   : > { %v3312_v36 = vadd.f32 %v8167_v27, %v3241_v18  ;;  %v3242_v3 = vmul.f32 %v8165_v7, %v3162_v16 }
 0x40b   : > { %v3315_v2 = vadd.f32 %v8167_v27, %v3244_v41  ;;  %v3378_v52 = vmax.f32 %v3314_v12, 0.0 }
 0x40c   : > { %v3313_v58 = vadd.f32 %v8167_v27, %v3242_v3  ;;  %v3376_v54 = vmax.f32 %v3312_v36, 0.0 }
 0x40d   : > { %v3379_v42 = vmax.f32 %v3315_v2, 0.0 }
 0x40e   : > { %v3377_v39 = vmax.f32 %v3313_v58, 0.0 }
 0x40f   : > { %v3411_v49 = vpack.c.bf16 %v3379_v42, %v3378_v52 }
 0x410   : > { %v3410_v48 = vpack.c.bf16 %v3377_v39, %v3376_v54 }
 0x412   : > { %5180 = vmatprep.mubr.msk.bf16.mxu0 %vm2788_vm3, %v3410_v48 }
 0x413   : > { %5181 = vmatmul.mubr.msk.bf16.gmra.mrb[92].mxu0 %vm2788_vm3, %v3411_v49 }
 0x42a   : > { %v5122_v5 = vpop.f32.mrb[32].mxu0 }
 0x42b   : > { %v3574_v7 = vpop.f32.mrb[33].mxu0  ;;  %v3838_v26 = vmul.f32 %v5122_v5, %v8329_v29 }
 0x42c   : > { %v3836_v27 = vmul.f32 %v8329_v29, %v3574_v7  ;;  %v5123_v35 = vpop.f32.mrb[34].mxu0 }
 0x42d   : > { %v3577_v20 = vpop.f32.mrb[35].mxu0  ;;  %v3839_v40 = vmul.f32 %v5123_v35, %v8329_v29  ;;  %v3909_v44 = vadd.f32 %v8331_v6, %v3838_v26 }
 0x42e   : > { %v3907_v31 = vadd.f32 %v8331_v6, %v3836_v27  ;;  %v3837_v23 = vmul.f32 %v8329_v29, %v3577_v20 }
 0x42f   : > { %v3910_v60 = vadd.f32 %v8331_v6, %v3839_v40  ;;  %v3973_v4 = vmax.f32 %v3909_v44, 0.0 }
 0x430   : > { %v3908_v19 = vadd.f32 %v8331_v6, %v3837_v23  ;;  %v3971_v28 = vmax.f32 %v3907_v31, 0.0 }
 0x431   : > { %v3974_v47 = vmax.f32 %v3910_v60, 0.0 }
 0x432   : > { %v3972_v34 = vmax.f32 %v3908_v19, 0.0 }
 0x433   : > { %v5126_v33 = vpop.f32.mrb[36].mxu0 }
 0x434   : > { %v4035_v61 = vmax.f32 %v3971_v28, %v3972_v34  ;;  %v3842_v37 = vmul.f32 %v5126_v33, %v8329_v29  ;;  %v3590_v0 = vpop.f32.mrb[37].mxu0 }
 0x435   : > { %v3840_v55 = vmul.f32 %v8329_v29, %v3590_v0  ;;  %v5127_v57 = vpop.f32.mrb[38].mxu0 }
 0x436   : > { %v4036_v22 = vmax.f32 %v4035_v61, %v3973_v4  ;;  %v3843_v46 = vmul.f32 %v5127_v57, %v8329_v29  ;;  %v3593_v30 = vpop.f32.mrb[39].mxu0  ;;  %v3913_v11 = vadd.f32 %v8331_v6, %v3842_v37 }
 0x437   : > { %v3911_v24 = vadd.f32 %v8331_v6, %v3840_v55  ;;  %v3841_v10 = vmul.f32 %v8329_v29, %v3593_v30 }
 0x438   : > { %v4037_v14 = vmax.f32 %v4036_v22, %v3974_v47  ;;  %v3914_v15 = vadd.f32 %v8331_v6, %v3843_v46  ;;  %v3977_v17 = vmax.f32 %v3913_v11, 0.0 }
 0x439   : > { %v3912_v59 = vadd.f32 %v8331_v6, %v3841_v10  ;;  %v3975_v32 = vmax.f32 %v3911_v24, 0.0 }
 0x43a   : > { %v4038_v25 = vrot.slane %v4037_v14, 4  ;;  %v3978_v8 = vmax.f32 %v3914_v15, 0.0 }
 0x43b   : > { %v3976_v50 = vmax.f32 %v3912_v59, 0.0  ;;  %v5130_v51 = vpop.f32.mrb[40].mxu0 }
 0x43c   : > { %v4039_v21 = vmax.f32 %v4037_v14, %v4038_v25  ;;  %v3606_v45 = vpop.f32.mrb[41].mxu0  ;;  %v3846_v56 = vmul.f32 %v5130_v51, %v8329_v29 }
 0x43d   : > { %v4044_v63 = vmax.f32 %v3975_v32, %v3976_v50  ;;  %v3844_v38 = vmul.f32 %v8329_v29, %v3606_v45  ;;  %v5131_v43 = vpop.f32.mrb[42].mxu0 }
 0x43e   : > { %v4040_v53 = vrot.slane %v4039_v21, 2  ;;  %v3609_v1 = vpop.f32.mrb[43].mxu0  ;;  %v3847_v18 = vmul.f32 %v5131_v43, %v8329_v29  ;;  %v3917_v16 = vadd.f32 %v8331_v6, %v3846_v56 }
 0x43f   : > { %v4045_v13 = vmax.f32 %v4044_v63, %v3977_v17  ;;  %v3915_v9 = vadd.f32 %v8331_v6, %v3844_v38  ;;  %v3845_v62 = vmul.f32 %v8329_v29, %v3609_v1 }
 0x440   : > { %v4041_v12 = vmax.f32 %v4039_v21, %v4040_v53  ;;  %v3918_v58 = vadd.f32 %v8331_v6, %v3847_v18  ;;  %v3981_v39 = vmax.f32 %v3917_v16, 0.0 }
 0x441   : > { %v4046_v41 = vmax.f32 %v4045_v13, %v3978_v8  ;;  %v3916_v36 = vadd.f32 %v8331_v6, %v3845_v62  ;;  %v3979_v2 = vmax.f32 %v3915_v9, 0.0 }
 0x442   : > { %v4042_v42 = vrot.slane %v4041_v12, 1  ;;  %v3982_v5 = vmax.f32 %v3918_v58, 0.0 }
 0x443   : > { %v4047_v3 = vrot.slane %v4046_v41, 4  ;;  %v3980_v52 = vmax.f32 %v3916_v36, 0.0 }
 0x444   : > { %v4043_v27 = vmax.f32 %v4041_v12, %v4042_v42 }
 0x445   : > { %v4048_v54 = vmax.f32 %v4046_v41, %v4047_v3  ;;  %v4053_v49 = vmax.f32 %v3979_v2, %v3980_v52 }
 0x446   : > { %v5134_v26 = vpop.f32.mrb[44].mxu0  ;;  %v4693_v33 = vpack.c.bf16 %v4043_v27, %v4043_v27 }
 0x447   : > { %v4049_v48 = vrot.slane %v4048_v54, 2  ;;  %v4054_v7 = vmax.f32 %v4053_v49, %v3981_v39  ;;  %v3622_v35 = vpop.f32.mrb[45].mxu0  ;;  %v3850_v40 = vmul.f32 %v5134_v26, %v8329_v29 }
 0x448   : > { %v3848_v23 = vmul.f32 %v8329_v29, %v3622_v35  ;;  %v5135_v44 = vpop.f32.mrb[46].mxu0  ;;  %v4243_v24 = vunpack.c.l.b16 %v4693_v33 }
 0x449   : > { %v4050_v20 = vmax.f32 %v4048_v54, %v4049_v48  ;;  %v4055_v31 = vmax.f32 %v4054_v7, %v3982_v5  ;;  %v3851_v19 = vmul.f32 %v5135_v44, %v8329_v29  ;;  %v3625_v28 = vpop.f32.mrb[47].mxu0  ;;  %v3921_v47 = vadd.f32 %v8331_v6, %v3850_v40 }
 0x44a   : > { %v3919_v4 = vadd.f32 %v8331_v6, %v3848_v23  ;;  %v3849_v61 = vmul.f32 %v8329_v29, %v3625_v28 }
 0x44b   : > { %v4051_v60 = vrot.slane %v4050_v20, 1  ;;  %v4056_v34 = vrot.slane %v4055_v31, 4  ;;  %v3922_v55 = vadd.f32 %v8331_v6, %v3851_v19  ;;  %v3985_v25 = vmax.f32 %v3921_v47, 0.0 }
 0x44c   : > { %v3920_v22 = vadd.f32 %v8331_v6, %v3849_v61  ;;  %v3983_v30 = vmax.f32 %v3919_v4, 0.0 }
 0x44d   : > { %v4052_v37 = vmax.f32 %v4050_v20, %v4051_v60  ;;  %v4057_v0 = vmax.f32 %v4055_v31, %v4056_v34  ;;  %v3986_v32 = vmax.f32 %v3922_v55, 0.0 }
 0x44e   : > { %v3984_v14 = vmax.f32 %v3920_v22, 0.0 }
 0x44f   : > { %v4694_v57 = vpack.c.bf16 %v4052_v37, %v4052_v37  ;;  %v4058_v46 = vrot.slane %v4057_v0, 2 }
 0x450   : > { %v4062_v59 = vmax.f32 %v3983_v30, %v3984_v14 }
 0x451   : > { %v4244_v10 = vunpack.c.l.b16 %v4694_v57  ;;  %v4059_v11 = vmax.f32 %v4057_v0, %v4058_v46 }
 0x452   : > { %v4063_v50 = vmax.f32 %v4062_v59, %v3985_v25 }
 0x453   : > { %v4260_v15 = vsel %vm4259_vm4, %v4244_v10, %v4243_v24  ;;  %v4060_v21 = vrot.slane %v4059_v11, 1 }
 0x454   : > { %v5138_v51 = vpop.f32.mrb[48].mxu0  ;;  %v4064_v45 = vmax.f32 %v4063_v50, %v3986_v32 }
 0x455   : > { %v4061_v17 = vmax.f32 %v4059_v11, %v4060_v21  ;;  %v3638_v53 = vpop.f32.mrb[49].mxu0  ;;  %v3854_v63 = vmul.f32 %v5138_v51, %v8329_v29 }
 0x456   : > { %v3852_v56 = vmul.f32 %v8329_v29, %v3638_v53  ;;  %v5139_v38 = vpop.f32.mrb[50].mxu0  ;;  %v4065_v8 = vrot.slane %v4064_v45, 4 }
 0x457   : > { %v4695_v43 = vpack.c.bf16 %v4061_v17, %v4061_v17  ;;  %v3641_v1 = vpop.f32.mrb[51].mxu0  ;;  %v3855_v9 = vmul.f32 %v5139_v38, %v8329_v29  ;;  %v3925_v41 = vadd.f32 %v8331_v6, %v3854_v63 }
 0x458   : > { %v3923_v13 = vadd.f32 %v8331_v6, %v3852_v56  ;;  %v3853_v18 = vmul.f32 %v8329_v29, %v3641_v1  ;;  %v4066_v12 = vmax.f32 %v4064_v45, %v4065_v8 }
 0x459   : > { %v4245_v62 = vunpack.c.l.b16 %v4695_v43  ;;  %v3926_v58 = vadd.f32 %v8331_v6, %v3855_v9  ;;  %v3989_v54 = vmax.f32 %v3925_v41, 0.0 }
 0x45a   : > { %v3924_v16 = vadd.f32 %v8331_v6, %v3853_v18  ;;  %v4067_v3 = vrot.slane %v4066_v12, 2  ;;  %v3987_v2 = vmax.f32 %v3923_v13, 0.0 }
 0x45b   : > { %v4262_v36 = vsel %vm4261_vm5, %v4245_v62, %v4260_v15  ;;  %v3990_v5 = vmax.f32 %v3926_v58, 0.0 }
 0x45c   : > { %v3988_v52 = vmax.f32 %v3924_v16, 0.0  ;;  %v4068_v42 = vmax.f32 %v4066_v12, %v4067_v3 }
 0x45e   : > { %v4071_v39 = vmax.f32 %v3987_v2, %v3988_v52  ;;  %v4069_v49 = vrot.slane %v4068_v42, 1 }
 0x460   : > { %v4072_v7 = vmax.f32 %v4071_v39, %v3989_v54  ;;  %v4070_v27 = vmax.f32 %v4068_v42, %v4069_v49 }
 0x462   : > { %v5142_v48 = vpop.f32.mrb[52].mxu0  ;;  %v4073_v40 = vmax.f32 %v4072_v7, %v3990_v5  ;;  %v4696_v44 = vpack.c.bf16 %v4070_v27, %v4070_v27 }
 0x463   : > { %v3654_v26 = vpop.f32.mrb[53].mxu0  ;;  %v3858_v35 = vmul.f32 %v5142_v48, %v8329_v29 }
 0x464   : > { %v3856_v20 = vmul.f32 %v8329_v29, %v3654_v26  ;;  %v5143_v31 = vpop.f32.mrb[54].mxu0  ;;  %v4074_v34 = vrot.slane %v4073_v40, 4  ;;  %v4246_v4 = vunpack.c.l.b16 %v4696_v44 }
 0x465   : > { %v3657_v23 = vpop.f32.mrb[55].mxu0  ;;  %v3859_v28 = vmul.f32 %v5143_v31, %v8329_v29  ;;  %v3929_v61 = vadd.f32 %v8331_v6, %v3858_v35 }
 0x466   : > { %v3927_v19 = vadd.f32 %v8331_v6, %v3856_v20  ;;  %v3857_v60 = vmul.f32 %v8329_v29, %v3657_v23  ;;  %v4075_v37 = vmax.f32 %v4073_v40, %v4074_v34  ;;  %v4264_v0 = vsel %vm4263_vm6, %v4246_v4, %v4262_v36 }
 0x467   : > { %v3930_v22 = vadd.f32 %v8331_v6, %v3859_v28  ;;  %v3993_v14 = vmax.f32 %v3929_v61, 0.0 }
 0x468   : > { %v3928_v33 = vadd.f32 %v8331_v6, %v3857_v60  ;;  %v3991_v47 = vmax.f32 %v3927_v19, 0.0  ;;  %v4076_v46 = vrot.slane %v4075_v37, 2 }
 0x469   : > { %v3994_v32 = vmax.f32 %v3930_v22, 0.0 }
 0x46a   : > { %v3992_v55 = vmax.f32 %v3928_v33, 0.0  ;;  %v5146_v57 = vpop.f32.mrb[56].mxu0  ;;  %v4077_v59 = vmax.f32 %v4075_v37, %v4076_v46 }
 0x46b   : > { %v3670_v30 = vpop.f32.mrb[57].mxu0  ;;  %v3862_v10 = vmul.f32 %v5146_v57, %v8329_v29 }
 0x46c   : > { %v4080_v24 = vmax.f32 %v3991_v47, %v3992_v55  ;;  %v3860_v11 = vmul.f32 %v8329_v29, %v3670_v30  ;;  %v5147_v25 = vpop.f32.mrb[58].mxu0  ;;  %v4078_v45 = vrot.slane %v4077_v59, 1 }
 0x46d   : > { %v3863_v15 = vmul.f32 %v5147_v25, %v8329_v29  ;;  %v3673_v21 = vpop.f32.mrb[59].mxu0  ;;  %v3933_v63 = vadd.f32 %v8331_v6, %v3862_v10 }
 0x46e   : > { %v4081_v50 = vmax.f32 %v4080_v24, %v3993_v14  ;;  %v3931_v51 = vadd.f32 %v8331_v6, %v3860_v11  ;;  %v3861_v17 = vmul.f32 %v8329_v29, %v3673_v21  ;;  %v4079_v38 = vmax.f32 %v4077_v59, %v4078_v45 }
 0x46f   : > { %v3934_v43 = vadd.f32 %v8331_v6, %v3863_v15  ;;  %v3997_v16 = vmax.f32 %v3933_v63, 0.0 }
 0x470   : > { %v4082_v53 = vmax.f32 %v4081_v50, %v3994_v32  ;;  %v3932_v56 = vadd.f32 %v8331_v6, %v3861_v17  ;;  %v3995_v1 = vmax.f32 %v3931_v51, 0.0  ;;  %v4697_v18 = vpack.c.bf16 %v4079_v38, %v4079_v38 }
 0x471   : > { %v3998_v52 = vmax.f32 %v3934_v43, 0.0 }
 0x472   : > { %v4083_v8 = vrot.slane %v4082_v53, 4  ;;  %v3996_v13 = vmax.f32 %v3932_v56, 0.0  ;;  %v5150_v9 = vpop.f32.mrb[60].mxu0  ;;  %v4247_v58 = vunpack.c.l.b16 %v4697_v18 }
 0x473   : > { %v3866_v62 = vmul.f32 %v5150_v9, %v8329_v29  ;;  %v3686_v12 = vpop.f32.mrb[61].mxu0 }
 0x474   : > { %v4084_v41 = vmax.f32 %v4082_v53, %v4083_v8  ;;  %v4089_v36 = vmax.f32 %v3995_v1, %v3996_v13  ;;  %v3864_v3 = vmul.f32 %v8329_v29, %v3686_v12  ;;  %v5151_v2 = vpop.f32.mrb[62].mxu0  ;;  %v4266_v7 = vsel %vm4265_vm7, %v4247_v58, %v4264_v0 }
 0x475   : > { %v3867_v42 = vmul.f32 %v5151_v2, %v8329_v29  ;;  %v3689_v54 = vpop.f32.mrb[63].mxu0  ;;  %v3937_v26 = vadd.f32 %v8331_v6, %v3866_v62 }
 0x476   : > { %v4085_v39 = vrot.slane %v4084_v41, 2  ;;  %v4090_v49 = vmax.f32 %v4089_v36, %v3997_v16  ;;  %v3935_v48 = vadd.f32 %v8331_v6, %v3864_v3  ;;  %v3865_v5 = vmul.f32 %v8329_v29, %v3689_v54 }
 0x477   : > { %v3938_v31 = vadd.f32 %v8331_v6, %v3867_v42  ;;  %v4001_v60 = vmax.f32 %v3937_v26, 0.0 }
 0x478   : > { %v4086_v27 = vmax.f32 %v4084_v41, %v4085_v39  ;;  %v4091_v35 = vmax.f32 %v4090_v49, %v3998_v52  ;;  %v3936_v20 = vadd.f32 %v8331_v6, %v3865_v5  ;;  %v3999_v44 = vmax.f32 %v3935_v48, 0.0 }
 0x479   : > { %v4002_v46 = vmax.f32 %v3938_v31, 0.0 }
 0x47a   : > { %v4087_v40 = vrot.slane %v4086_v27, 1  ;;  %v4092_v23 = vrot.slane %v4091_v35, 4  ;;  %v4000_v19 = vmax.f32 %v3936_v20, 0.0  ;;  %v5154_v28 = vpop.f32.mrb[64].mxu0 }
 0x47b   : > { %v3702_v34 = vpop.f32.mrb[65].mxu0  ;;  %v3870_v47 = vmul.f32 %v5154_v28, %v8329_v29 }
 0x47c   : > { %v4088_v4 = vmax.f32 %v4086_v27, %v4087_v40  ;;  %v4093_v61 = vmax.f32 %v4091_v35, %v4092_v23  ;;  %v4098_v33 = vmax.f32 %v3999_v44, %v4000_v19  ;;  %v3868_v37 = vmul.f32 %v8329_v29, %v3702_v34  ;;  %v5155_v0 = vpop.f32.mrb[66].mxu0 }
 0x47d   : > { %v3705_v22 = vpop.f32.mrb[67].mxu0  ;;  %v3871_v24 = vmul.f32 %v5155_v0, %v8329_v29  ;;  %v3941_v15 = vadd.f32 %v8331_v6, %v3870_v47 }
 0x47e   : > { %v4698_v55 = vpack.c.bf16 %v4088_v4, %v4088_v4  ;;  %v4094_v57 = vrot.slane %v4093_v61, 2  ;;  %v4099_v30 = vmax.f32 %v4098_v33, %v4001_v60  ;;  %v3939_v14 = vadd.f32 %v8331_v6, %v3868_v37 }
 0x47f   : > { %v3869_v10 = vmul.f32 %v8329_v29, %v3705_v22  ;;  %v3942_v53 = vadd.f32 %v8331_v6, %v3871_v24  ;;  %v4005_v9 = vmax.f32 %v3941_v15, 0.0 }
 0x480   : > { %v4248_v11 = vunpack.c.l.b16 %v4698_v55  ;;  %v4095_v25 = vmax.f32 %v4093_v61, %v4094_v57  ;;  %v4100_v59 = vmax.f32 %v4099_v30, %v4002_v46  ;;  %v4003_v45 = vmax.f32 %v3939_v14, 0.0 }
 0x481   : > { %v3940_v21 = vadd.f32 %v8331_v6, %v3869_v10  ;;  %v4006_v2 = vmax.f32 %v3942_v53, 0.0 }
 0x482   : > { %v4268_v32 = vsel %vm4267_vm8, %v4248_v11, %v4266_v7  ;;  %v4096_v50 = vrot.slane %v4095_v25, 1  ;;  %v4101_v51 = vrot.slane %v4100_v59, 4  ;;  %v5158_v17 = vpop.f32.mrb[68].mxu0 }
 0x483   : > { %v4004_v63 = vmax.f32 %v3940_v21, 0.0  ;;  %v3874_v56 = vmul.f32 %v5158_v17, %v8329_v29  ;;  %v3718_v38 = vpop.f32.mrb[69].mxu0 }
 0x484   : > { %v4097_v43 = vmax.f32 %v4095_v25, %v4096_v50  ;;  %v4102_v8 = vmax.f32 %v4100_v59, %v4101_v51  ;;  %v3872_v1 = vmul.f32 %v8329_v29, %v3718_v38  ;;  %v5159_v13 = vpop.f32.mrb[70].mxu0 }
 0x485   : > { %v4107_v18 = vmax.f32 %v4003_v45, %v4004_v63  ;;  %v3875_v62 = vmul.f32 %v5159_v13, %v8329_v29  ;;  %v3721_v12 = vpop.f32.mrb[71].mxu0  ;;  %v3945_v52 = vadd.f32 %v8331_v6, %v3874_v56 }
 0x486   : > { %v4699_v41 = vpack.c.bf16 %v4097_v43, %v4097_v43  ;;  %v4103_v16 = vrot.slane %v4102_v8, 2  ;;  %v3943_v36 = vadd.f32 %v8331_v6, %v3872_v1  ;;  %v3873_v3 = vmul.f32 %v8329_v29, %v3721_v12 }
 0x487   : > { %v4108_v58 = vmax.f32 %v4107_v18, %v4005_v9  ;;  %v3946_v48 = vadd.f32 %v8331_v6, %v3875_v62  ;;  %v4009_v31 = vmax.f32 %v3945_v52, 0.0 }
 0x488   : > { %v4249_v42 = vunpack.c.l.b16 %v4699_v41  ;;  %v4104_v54 = vmax.f32 %v4102_v8, %v4103_v16  ;;  %v3944_v39 = vadd.f32 %v8331_v6, %v3873_v3  ;;  %v4007_v26 = vmax.f32 %v3943_v36, 0.0 }
 0x489   : > { %v4109_v49 = vmax.f32 %v4108_v58, %v4006_v2  ;;  %v4010_v4 = vmax.f32 %v3946_v48, 0.0 }
 0x48a   : > { %v4270_v5 = vsel %vm4269_vm9, %v4249_v42, %v4268_v32  ;;  %v4105_v7 = vrot.slane %v4104_v54, 1  ;;  %v4008_v27 = vmax.f32 %v3944_v39, 0.0  ;;  %v5162_v35 = vpop.f32.mrb[72].mxu0 }
 0x48b   : > { %v4110_v20 = vrot.slane %v4109_v49, 4  ;;  %v3734_v40 = vpop.f32.mrb[73].mxu0  ;;  %v3878_v19 = vmul.f32 %v5162_v35, %v8329_v29 }
 0x48c   : > { %v4106_v23 = vmax.f32 %v4104_v54, %v4105_v7  ;;  %v4116_v44 = vmax.f32 %v4007_v26, %v4008_v27  ;;  %v3876_v28 = vmul.f32 %v8329_v29, %v3734_v40  ;;  %v5163_v60 = vpop.f32.mrb[74].mxu0 }
 0x48d   : > { %v4111_v34 = vmax.f32 %v4109_v49, %v4110_v20  ;;  %v3879_v61 = vmul.f32 %v5163_v60, %v8329_v29  ;;  %v3737_v33 = vpop.f32.mrb[75].mxu0  ;;  %v3949_v30 = vadd.f32 %v8331_v6, %v3878_v19 }
 0x48e   : > { %v4700_v37 = vpack.c.bf16 %v4106_v23, %v4106_v23  ;;  %v4117_v0 = vmax.f32 %v4116_v44, %v4009_v31  ;;  %v3947_v47 = vadd.f32 %v8331_v6, %v3876_v28  ;;  %v3877_v22 = vmul.f32 %v8329_v29, %v3737_v33 }
 0x48f   : > { %v4112_v55 = vrot.slane %v4111_v34, 2  ;;  %v3950_v10 = vadd.f32 %v8331_v6, %v3879_v61  ;;  %v4013_v51 = vmax.f32 %v3949_v30, 0.0 }
 0x490   : > { %v4250_v57 = vunpack.c.l.b16 %v4700_v37  ;;  %v4118_v46 = vmax.f32 %v4117_v0, %v4010_v4  ;;  %v3948_v14 = vadd.f32 %v8331_v6, %v3877_v22  ;;  %v4011_v25 = vmax.f32 %v3947_v47, 0.0 }
 0x491   : > { %v4113_v24 = vmax.f32 %v4111_v34, %v4112_v55  ;;  %v4014_v53 = vmax.f32 %v3950_v10, 0.0 }
 0x492   : > { %v4119_v11 = vrot.slane %v4118_v46, 4  ;;  %v4012_v59 = vmax.f32 %v3948_v14, 0.0  ;;  %v4272_v15 = vsel %vm4271_vm10, %v4250_v57, %v4270_v5 }
 0x493   : > { %v4280_v21 = vpack.c.b16 %v4272_v15, %v4272_v15  ;;  %v4114_v32 = vrot.slane %v4113_v24, 1 }
 0x494   : > { %v4120_v50 = vmax.f32 %v4118_v46, %v4119_v11  ;;  %v4125_v17 = vmax.f32 %v4011_v25, %v4012_v59 }
 0x495   : > { %4284 = vst [vmem:[%s8429_s28] sm:$0xf] %v4280_v21  ;;  %v4115_v56 = vmax.f32 %v4113_v24, %v4114_v32 }
 0x496   : > { %v4121_v45 = vrot.slane %v4120_v50, 2  ;;  %v4126_v63 = vmax.f32 %v4125_v17, %v4013_v51 }
 0x497   : > { %v4701_v13 = vpack.c.bf16 %v4115_v56, %v4115_v56 }
 0x498   : > { %v4122_v38 = vmax.f32 %v4120_v50, %v4121_v45  ;;  %v4127_v43 = vmax.f32 %v4126_v63, %v4014_v53 }
 0x499   : > { %v4251_v58 = vunpack.c.l.b16 %v4701_v13 }
 0x49a   : > { %v4123_v8 = vrot.slane %v4122_v38, 1  ;;  %v4128_v1 = vrot.slane %v4127_v43, 4  ;;  %v5166_v62 = vpop.f32.mrb[76].mxu0 }
 0x49b   : > { %v3750_v16 = vpop.f32.mrb[77].mxu0  ;;  %v3882_v36 = vmul.f32 %v5166_v62, %v8329_v29 }
 0x49c   : > { %v4124_v9 = vmax.f32 %v4122_v38, %v4123_v8  ;;  %v4129_v18 = vmax.f32 %v4127_v43, %v4128_v1  ;;  %v3880_v3 = vmul.f32 %v8329_v29, %v3750_v16  ;;  %v5167_v2 = vpop.f32.mrb[78].mxu0 }
 0x49d   : > { %v3753_v54 = vpop.f32.mrb[79].mxu0  ;;  %v3883_v49 = vmul.f32 %v5167_v2, %v8329_v29  ;;  %v3953_v26 = vadd.f32 %v8331_v6, %v3882_v36 }
 0x49e   : > { %v4702_v12 = vpack.c.bf16 %v4124_v9, %v4124_v9  ;;  %v4130_v41 = vrot.slane %v4129_v18, 2  ;;  %v3951_v39 = vadd.f32 %v8331_v6, %v3880_v3  ;;  %v3881_v48 = vmul.f32 %v8329_v29, %v3753_v54 }
 0x49f   : > { %v3954_v31 = vadd.f32 %v8331_v6, %v3883_v49  ;;  %v4017_v44 = vmax.f32 %v3953_v26, 0.0 }
 0x4a0   : > { %v4252_v52 = vunpack.c.l.b16 %v4702_v12  ;;  %v4131_v42 = vmax.f32 %v4129_v18, %v4130_v41  ;;  %v3952_v27 = vadd.f32 %v8331_v6, %v3881_v48  ;;  %v4015_v20 = vmax.f32 %v3951_v39, 0.0 }
 0x4a1   : > { %v4018_v60 = vmax.f32 %v3954_v31, 0.0 }
 0x4a2   : > { %v4273_v5 = vsel %vm4259_vm4, %v4252_v52, %v4251_v58  ;;  %v4132_v7 = vrot.slane %v4131_v42, 1  ;;  %v4016_v40 = vmax.f32 %v3952_v27, 0.0 }
 0x4a4   : > { %v4133_v35 = vmax.f32 %v4131_v42, %v4132_v7  ;;  %v4134_v19 = vmax.f32 %v4015_v20, %v4016_v40 }
 0x4a6   : > { %v4703_v23 = vpack.c.bf16 %v4133_v35, %v4133_v35  ;;  %v4135_v34 = vmax.f32 %v4134_v19, %v4017_v44 }
 0x4a8   : > { %v4253_v28 = vunpack.c.l.b16 %v4703_v23  ;;  %v4136_v61 = vmax.f32 %v4135_v34, %v4018_v60 }
 0x4aa   : > { %v4274_v4 = vsel %vm4261_vm5, %v4253_v28, %v4273_v5  ;;  %v4137_v33 = vrot.slane %v4136_v61, 4 }
 0x4ac   : > { %v4138_v37 = vmax.f32 %v4136_v61, %v4137_v33 }
 0x4ad   : > { %v5170_v0 = vpop.f32.mrb[80].mxu0 }
 0x4ae   : > { %v4139_v47 = vrot.slane %v4138_v37, 2  ;;  %v3766_v22 = vpop.f32.mrb[81].mxu0  ;;  %v3886_v55 = vmul.f32 %v5170_v0, %v8329_v29 }
 0x4af   : > { %v3884_v57 = vmul.f32 %v8329_v29, %v3766_v22  ;;  %v5171_v46 = vpop.f32.mrb[82].mxu0 }
 0x4b0   : > { %v4140_v30 = vmax.f32 %v4138_v37, %v4139_v47  ;;  %v3769_v14 = vpop.f32.mrb[83].mxu0  ;;  %v3887_v10 = vmul.f32 %v5171_v46, %v8329_v29  ;;  %v3957_v59 = vadd.f32 %v8331_v6, %v3886_v55 }
 0x4b1   : > { %v3955_v24 = vadd.f32 %v8331_v6, %v3884_v57  ;;  %v3885_v11 = vmul.f32 %v8329_v29, %v3769_v14 }
 0x4b2   : > { %v4141_v25 = vrot.slane %v4140_v30, 1  ;;  %v3958_v50 = vadd.f32 %v8331_v6, %v3887_v10  ;;  %v4021_v45 = vmax.f32 %v3957_v59, 0.0 }
 0x4b3   : > { %v3956_v15 = vadd.f32 %v8331_v6, %v3885_v11  ;;  %v4019_v32 = vmax.f32 %v3955_v24, 0.0 }
 0x4b4   : > { %v4142_v21 = vmax.f32 %v4140_v30, %v4141_v25  ;;  %v4022_v56 = vmax.f32 %v3958_v50, 0.0 }
 0x4b5   : > { %v4020_v51 = vmax.f32 %v3956_v15, 0.0 }
 0x4b6   : > { %v4704_v17 = vpack.c.bf16 %v4142_v21, %v4142_v21 }
 0x4b7   : > { %v4143_v53 = vmax.f32 %v4019_v32, %v4020_v51 }
 0x4b8   : > { %v4254_v63 = vunpack.c.l.b16 %v4704_v17 }
 0x4b9   : > { %v4144_v38 = vmax.f32 %v4143_v53, %v4021_v45 }
 0x4ba   : > { %v4275_v43 = vsel %vm4263_vm6, %v4254_v63, %v4274_v4 }
 0x4bb   : > { %v4145_v8 = vmax.f32 %v4144_v38, %v4022_v56 }
 0x4bd   : > { %v4146_v1 = vrot.slane %v4145_v8, 4 }
 0x4bf   : > { %v4147_v13 = vmax.f32 %v4145_v8, %v4146_v1 }
 0x4c0   : > { %v5174_v9 = vpop.f32.mrb[84].mxu0 }
 0x4c1   : > { %v4148_v18 = vrot.slane %v4147_v13, 2  ;;  %v3782_v62 = vpop.f32.mrb[85].mxu0  ;;  %v3890_v12 = vmul.f32 %v5174_v9, %v8329_v29 }
 0x4c2   : > { %v3888_v41 = vmul.f32 %v8329_v29, %v3782_v62  ;;  %v5175_v16 = vpop.f32.mrb[86].mxu0 }
 0x4c3   : > { %v4149_v36 = vmax.f32 %v4147_v13, %v4148_v18  ;;  %v3785_v3 = vpop.f32.mrb[87].mxu0  ;;  %v3891_v58 = vmul.f32 %v5175_v16, %v8329_v29  ;;  %v3961_v54 = vadd.f32 %v8331_v6, %v3890_v12 }
 0x4c4   : > { %v3959_v2 = vadd.f32 %v8331_v6, %v3888_v41  ;;  %v3889_v52 = vmul.f32 %v8329_v29, %v3785_v3 }
 0x4c5   : > { %v4150_v42 = vrot.slane %v4149_v36, 1  ;;  %v3962_v5 = vadd.f32 %v8331_v6, %v3891_v58  ;;  %v4025_v27 = vmax.f32 %v3961_v54, 0.0 }
 0x4c6   : > { %v3960_v39 = vadd.f32 %v8331_v6, %v3889_v52  ;;  %v4023_v48 = vmax.f32 %v3959_v2, 0.0 }
 0x4c7   : > { %v4151_v49 = vmax.f32 %v4149_v36, %v4150_v42  ;;  %v4026_v31 = vmax.f32 %v3962_v5, 0.0 }
 0x4c8   : > { %v4024_v7 = vmax.f32 %v3960_v39, 0.0 }
 0x4c9   : > { %v4705_v26 = vpack.c.bf16 %v4151_v49, %v4151_v49 }
 0x4ca   : > { %v4152_v35 = vmax.f32 %v4023_v48, %v4024_v7 }
 0x4cb   : > { %v4255_v20 = vunpack.c.l.b16 %v4705_v26 }
 0x4cc   : > { %v4153_v40 = vmax.f32 %v4152_v35, %v4025_v27 }
 0x4cd   : > { %v4276_v23 = vsel %vm4265_vm7, %v4255_v20, %v4275_v43 }
 0x4ce   : > { %v4154_v44 = vmax.f32 %v4153_v40, %v4026_v31 }
 0x4d0   : > { %v4155_v19 = vrot.slane %v4154_v44, 4 }
 0x4d2   : > { %v4156_v28 = vmax.f32 %v4154_v44, %v4155_v19 }
 0x4d3   : > { %v5178_v60 = vpop.f32.mrb[88].mxu0 }
 0x4d4   : > { %v4157_v34 = vrot.slane %v4156_v28, 2  ;;  %v3798_v4 = vpop.f32.mrb[89].mxu0  ;;  %v3894_v61 = vmul.f32 %v5178_v60, %v8329_v29 }
 0x4d5   : > { %v3892_v33 = vmul.f32 %v8329_v29, %v3798_v4  ;;  %v5179_v37 = vpop.f32.mrb[90].mxu0 }
 0x4d6   : > { %v4158_v0 = vmax.f32 %v4156_v28, %v4157_v34  ;;  %v3801_v47 = vpop.f32.mrb[91].mxu0  ;;  %v3895_v55 = vmul.f32 %v5179_v37, %v8329_v29  ;;  %v3965_v30 = vadd.f32 %v8331_v6, %v3894_v61 }
 0x4d7   : > { %v3963_v22 = vadd.f32 %v8331_v6, %v3892_v33  ;;  %v3893_v57 = vmul.f32 %v8329_v29, %v3801_v47 }
 0x4d8   : > { %v4159_v46 = vrot.slane %v4158_v0, 1  ;;  %v3966_v11 = vadd.f32 %v8331_v6, %v3895_v55  ;;  %v4029_v15 = vmax.f32 %v3965_v30, 0.0 }
 0x4d9   : > { %v3964_v14 = vadd.f32 %v8331_v6, %v3893_v57  ;;  %v4027_v10 = vmax.f32 %v3963_v22, 0.0 }
 0x4da   : > { %v4160_v24 = vmax.f32 %v4158_v0, %v4159_v46  ;;  %v4030_v50 = vmax.f32 %v3966_v11, 0.0 }
 0x4db   : > { %v4028_v25 = vmax.f32 %v3964_v14, 0.0 }
 0x4dc   : > { %v4706_v59 = vpack.c.bf16 %v4160_v24, %v4160_v24 }
 0x4dd   : > { %v4161_v21 = vmax.f32 %v4027_v10, %v4028_v25 }
 0x4de   : > { %v4256_v32 = vunpack.c.l.b16 %v4706_v59 }
 0x4df   : > { %v4162_v51 = vmax.f32 %v4161_v21, %v4029_v15 }
 0x4e0   : > { %v4277_v17 = vsel %vm4267_vm8, %v4256_v32, %v4276_v23 }
 0x4e1   : > { %v4163_v45 = vmax.f32 %v4162_v51, %v4030_v50 }
 0x4e3   : > { %v4164_v53 = vrot.slane %v4163_v45, 4 }
 0x4e5   : > { %v4165_v63 = vmax.f32 %v4163_v45, %v4164_v53 }
 0x4e6   : > { %v5182_v56 = vpop.f32.mrb[92].mxu0 }
 0x4e7   : > { %v4166_v38 = vrot.slane %v4165_v63, 2  ;;  %v3814_v43 = vpop.f32.mrb[93].mxu0  ;;  %v3898_v8 = vmul.f32 %v5182_v56, %v8329_v29 }
 0x4e8   : > { %v3896_v1 = vmul.f32 %v8329_v29, %v3814_v43  ;;  %v5183_v13 = vpop.f32.mrb[94].mxu0 }
 0x4e9   : > { %v4167_v9 = vmax.f32 %v4165_v63, %v4166_v38  ;;  %v3817_v18 = vpop.f32.mrb[95].mxu0  ;;  %v3899_v12 = vmul.f32 %v5183_v13, %v8329_v29  ;;  %v3969_v36 = vadd.f32 %v8331_v6, %v3898_v8 }
 0x4ea   : > { %v3967_v62 = vadd.f32 %v8331_v6, %v3896_v1  ;;  %v3897_v41 = vmul.f32 %v8329_v29, %v3817_v18 }
 0x4eb   : > { %v4168_v16 = vrot.slane %v4167_v9, 1  ;;  %v3970_v52 = vadd.f32 %v8331_v6, %v3899_v12  ;;  %v4033_v39 = vmax.f32 %v3969_v36, 0.0 }
 0x4ec   : > { %v3968_v3 = vadd.f32 %v8331_v6, %v3897_v41  ;;  %v4031_v58 = vmax.f32 %v3967_v62, 0.0 }
 0x4ed   : > { %v4169_v2 = vmax.f32 %v4167_v9, %v4168_v16  ;;  %v4034_v5 = vmax.f32 %v3970_v52, 0.0 }
 0x4ee   : > { %v4032_v42 = vmax.f32 %v3968_v3, 0.0 }
 0x4ef   : > { %v4707_v54 = vpack.c.bf16 %v4169_v2, %v4169_v2 }
 0x4f0   : > { %v4170_v49 = vmax.f32 %v4031_v58, %v4032_v42 }
 0x4f1   : > { %v4257_v48 = vunpack.c.l.b16 %v4707_v54 }
 0x4f2   : > { %v4171_v7 = vmax.f32 %v4170_v49, %v4033_v39 }
 0x4f3   : > { %v4278_v29 = vsel %vm4269_vm9, %v4257_v48, %v4277_v17 }
 0x4f4   : > { %v4172_v26 = vmax.f32 %v4171_v7, %v4034_v5 }
 0x4f6   : > { %v4173_v27 = vrot.slane %v4172_v26, 4 }
 0x4f8   : > { %v4174_v35 = vmax.f32 %v4172_v26, %v4173_v27 }
 0x4fa   : > { %v4175_v20 = vrot.slane %v4174_v35, 2 }
 0x4fc   : > { %v4176_v31 = vmax.f32 %v4174_v35, %v4175_v20 }
 0x4fe   : > { %v4177_v6 = vrot.slane %v4176_v31, 1 }
 0x500   : > { %v4178_v40 = vmax.f32 %v4176_v31, %v4177_v6 }
 0x502   : > { %v4708_v23 = vpack.c.bf16 %v4178_v40, %v4178_v40 }
 0x504   : > { %v4258_v44 = vunpack.c.l.b16 %v4708_v23 }
 0x506   : > { %v4279_v19 = vsel %vm4271_vm10, %v4258_v44, %v4278_v29 }
 0x507   : > { %v4281_v28 = vpack.c.b16 %v4279_v19, %v4279_v19 }
 0x509   : > { %4285 = vst [vmem:[%s8429_s28 + $0x4] sm:$0xf] %v4281_v28 }
 0x50a   : > { %6272 = shalt.err (!%p6269_p0)
}
 0x50b   : > { %s6273_s12 = scalar_lea.hbm %s8484_s29, 128  ;;  %s6277_s1 = scalar_lea.hbm %s8736_s20, 256 }
 0x50c   : > { %p6274_p6 = scmp.ne.s32.totalorder %s8484_s29, %s6273_s12  ;;  %p6278_p4 = scmp.lt.u32.totalorder %s8484_s29, %s8736_s20 }
 0x50d   : > { %p6279_p5 = scmp.lt.u32.totalorder %s6277_s1, %s6273_s12  ;;  %p6281_p9 = scmp.lt.u32.totalorder %s6273_s12, %s8484_s29 }
 0x50e   : > { %p6275_p2 = pnand %p6274_p6, %p8737_p8 }
 0x50f   : > { %p6280_p7 = por %p6279_p5, %p6278_p4 }
 0x510   : > { %p6276_p10 = pneg %p6275_p2 }
 0x511   : > { %p6282_p11 = por %p6281_p9, %p6280_p7 }
 0x513   : > { %p6283_p3 = pnand %p6282_p11, %p6276_p10 }
 0x515   : > { %6286 = shalt.err (!%p6283_p3)
}
 0x516   : > { %s6374_s15 = smov 64   ;;  %s6375_s19 = smov 4  }
 0x517   : > { %5230 = dma.vmem_to_hbm [thread:$0]  (%p8737_p8), %s8486_s3, 128, %s8484_s29, %s4287_s16, %s6374_s15, %s6374_s15, %s6375_s19  }
 0x518 PF: > { %s4315_s7 = sand.u32 1, %s6341_s21   ;;  %p8738_p12 = scmp.ne.s32.totalorder %s8595_s17, 0 }
 0x519   : > { %p8739_p1 = scmp.ge.s32.totalorder %s6353_s24, 2  ;;  %s4316_s4 = scalar_lea.sflag [#allocation4], %s4315_s7 }
 0x51b   : > { %p5271_p13 = pnand %p8739_p1, %p8738_p12 }
 0x51d   : > { %6336 = dma.done.wait (!%p5271_p13), %s4316_s4, 128  }
 0x51e   : > { %6338 = vsyncadd (!%p5271_p13), %s4316_s4, 4294967168  ;;  %p33_p0 = scmp.ge.s32.totalorder %s6723_s13, 4   ;;  %s8740_s21 = smov %s6345_s22 }
 0x51f   : > { %s8741_s22 = smov %s6349_s23  ;;  %s8742_s23 = smov %s6734_s18 }
 0x520   : > { %s8743_s24 = smov %s6723_s13  ;;  %35 = sbr.rel (!%p33_p0) target bundleno = 22 (0x16), region = 166 }
 0x527   :  { %4321 = vsyncpa [#allocation3], 1 }
 0x528   :  { %4323 = vsyncpa [#allocation3 + $0x1], 1 }
 0x529   :  { %4324 = vsyncpa [#allocation6], 1 }
 0x52a   :  { %4326 = vsyncpa [#allocation6 + $0x1], 1 }
 0x52b   :  { %4327 = vsyncpa [#allocation9], 1 }
 0x52c   :  { %4328 = vsyncpa [#allocation12], 1 }
 0x52d   :  { %4329 = vsyncpa [#allocation15], 1 }
 0x52e   :  { %4330 = vsyncpa [#allocation18], 1 }
 0x52f   :  { %4331 = vsyncpa [#allocation21], 1 }
 0x530   :  { %4332 = vsyncpa [#allocation4], 1 }
 0x531   :  { %4334 = vsyncpa [#allocation4 + $0x1], 1 }

</bundles_post_ra>
